<compile_context>
chip_gen: v6e
topology: v6e:2x2x1
jax: 0.10.0
libtpu: 0.0.40
codegen_flags: <defaults>
</compile_context>

<pallas_src>
import functools

import jax
import jax.numpy as jnp
import numpy as np
from jax.experimental import pallas as pl
from jax.experimental.pallas import tpu as pltpu

SELU_ALPHA = 1.6732632423543772848170429916717
SELU_SCALE = 1.0507009873554804934193349852946


def _round_up(n, m):
    return ((n + m - 1) // m) * m


def nltm_kernel(x_ref, w_ref, out_ref, *, IN, H, H_pad, r_w2, r_wh, r_b):
    hi = jax.lax.Precision.HIGHEST
    x = x_ref[...]                                                        # (TB, IN)

    # --- fused first pass: [pre1_raw | out_raw] = x @ [W1eff | Weff] + [b1eff | beff]
    xw = jnp.dot(x, w_ref[0:IN, :], preferred_element_type=jnp.float32,
                 precision=hi)                                            # (TB, SLAB_W)
    xw = xw + w_ref[r_b:r_b + 1, :]                                       # packed bias row
    pre1 = xw[:, 0:H]                                                     # (TB, H)
    out_full = xw[:, H_pad:H_pad + 128]                                   # (TB, 128); lanes 0:OUT real, rest 0

    # --- SELU -> (AlphaDropout = id) -> Linear -> Tanh -> (Dropout = id)
    neg = SELU_ALPHA * (jnp.exp(jnp.minimum(pre1, 0.0)) - 1.0)            # clamp keeps dead branch finite
    h1 = SELU_SCALE * jnp.where(pre1 > 0, pre1, neg)                      # (TB, H)
    h2 = jnp.tanh(
        jnp.dot(h1, w_ref[r_w2:r_w2 + H, 0:H],
                preferred_element_type=jnp.float32, precision=hi)
        + w_ref[r_b + 8:r_b + 9, 0:H])                                    # (TB, H)

    # --- fused, lane-aligned heads: D at lanes 0:128, gate logits at lanes 128:256
    head = jnp.dot(h2, w_ref[r_wh:r_wh + H, :],
                   preferred_element_type=jnp.float32, precision=hi)
    head = head + w_ref[r_b + 16:r_b + 17, :]                             # (TB, SLAB_W)
    d_full = head[:, 0:128]                                               # lanes 0:OUT real, rest 0
    alpha_full = jax.nn.sigmoid(head[:, 128:256])                         # lanes 0:OUT real

    # skip == True branch of the original forward; padded lanes are exactly 0.5*0 + 0 = 0
    out_ref[...] = alpha_full * out_full + d_full                         # lane-dense (TB, 128) store


def fold_params(params):
    """Host-side folding of the affine prefix, head fusion, and single-slab packing."""
    IN = params["mat"].shape[0]
    H = params["w2"].shape[0]
    OUT = params["wd"].shape[1]

    H_pad = _round_up(H, 128)               # keep the W1eff/Weff boundary at a vreg boundary
    SLAB_W = max(H_pad + 128, 256)          # 256 for H=128
    IN_pad = _round_up(IN, 8)
    H8 = _round_up(H, 8)

    # out = lt_inv(old_model(x @ mat)) == x @ Weff + beff
    weff = params["mat"] @ params["wold"] @ params["wlt"]                 # (IN, OUT)
    beff = params["bold"] @ params["wlt"] + params["blt"]                 # (1, OUT)
    # pre1 = [x, out] @ W1 + b1 == x @ W1eff + b1eff
    w1eff = params["w1x"] + weff @ params["w1o"]                          # (IN, H)
    b1eff = beff @ params["w1o"] + params["b1"]                           # (1, H)

    r_w2 = IN_pad                    # second-layer weight rows
    r_wh = IN_pad + H8               # fused head weight rows
    r_b = IN_pad + 2 * H8            # bias rows (each at an 8-row-aligned offset)
    R = r_b + 24

    slab = np.zeros((R, SLAB_W), np.float32)
    # fused first-pass weights: [W1eff | Weff] (Weff starts at lane H_pad)
    slab[0:IN, 0:H] = np.asarray(w1eff)
    slab[0:IN, H_pad:H_pad + OUT] = np.asarray(weff)
    # second layer
    slab[r_w2:r_w2 + H, 0:H] = np.asarray(params["w2"])
    # fused heads, lane-aligned: Wd at lane 0, Wg at lane 128
    slab[r_wh:r_wh + H, 0:OUT] = np.asarray(params["wd"])
    slab[r_wh:r_wh + H, 128:128 + OUT] = np.asarray(params["wg"])
    # packed bias rows (layouts match the corresponding matmul outputs)
    slab[r_b, 0:H] = np.asarray(b1eff)[0]
    slab[r_b, H_pad:H_pad + OUT] = np.asarray(beff)[0]
    slab[r_b + 8, 0:H] = np.asarray(params["b2"])[0]
    slab[r_b + 16, 0:OUT] = np.asarray(params["bd"])[0]
    slab[r_b + 16, 128:128 + OUT] = np.asarray(params["bg"])[0]

    return dict(slab=jnp.asarray(slab), IN=IN, H=H, H_pad=H_pad, OUT=OUT,
                SLAB_W=SLAB_W, r_w2=r_w2, r_wh=r_wh, r_b=r_b)


def nonlinear_transformed_model(x, folded, *, tb=128):
    """Gridded pallas_call: rows split into TB-row blocks, weight slab resident in VMEM."""
    B = x.shape[0]
    IN, H, H_pad, OUT, SLAB_W = (folded[k] for k in ("IN", "H", "H_pad", "OUT", "SLAB_W"))
    slab = folded["slab"]
    R = slab.shape[0]

    TB = min(tb, _round_up(B, 8))
    Bp = _round_up(B, TB)
    if Bp != B:
        x = jnp.pad(x, ((0, Bp - B), (0, 0)))
    grid = (Bp // TB,)

    kern = functools.partial(nltm_kernel, IN=IN, H=H, H_pad=H_pad,
                             r_w2=folded["r_w2"], r_wh=folded["r_wh"], r_b=folded["r_b"])

    flops = 2 * Bp * (IN * SLAB_W + H * H + H * SLAB_W)
    transcendentals = Bp * (2 * H + 128)                      # exp (SELU) + tanh + sigmoid
    bytes_accessed = 4 * (Bp * IN + R * SLAB_W + Bp * 128)

    y_full = pl.pallas_call(
        kern,
        out_shape=jax.ShapeDtypeStruct((Bp, 128), jnp.float32),
        grid=grid,
        in_specs=[
            pl.BlockSpec((TB, IN), lambda i: (i, 0)),         # activations: one block per step
            pl.BlockSpec((R, SLAB_W), lambda i: (0, 0)),      # weights: constant block -> resident
        ],
        out_specs=pl.BlockSpec((TB, 128), lambda i: (i, 0)),  # lane-dense output block
        compiler_params=pltpu.CompilerParams(
            dimension_semantics=("parallel",)),                # v7x: split row blocks across TCs
        cost_estimate=pl.CostEstimate(flops=flops,
                                      transcendentals=transcendentals,
                                      bytes_accessed=bytes_accessed),
    )(x, slab)
    return y_full[:B, :OUT]


def _linear_init(key, fan_in, fan_out):
    """PyTorch-style uniform(-1/sqrt(fan_in), 1/sqrt(fan_in)) init.

    Returns W of shape (fan_in, fan_out) (pre-transposed for x @ W) and b of shape (1, fan_out).
    """
    kw, kb = jax.random.split(key)
    bound = 1.0 / jnp.sqrt(jnp.float32(fan_in))
    w = jax.random.uniform(kw, (fan_in, fan_out), jnp.float32, -bound, bound)
    b = jax.random.uniform(kb, (1, fan_out), jnp.float32, -bound, bound)
    return w, b


def make_params(key, input_dim, output_dim, h=128):
    ks = jax.random.split(key, 8)
    params = {}
    # LinearTransformedModel.mat: identity(input_dim) (as in __init__)
    params["mat"] = jnp.eye(input_dim, dtype=jnp.float32)
    # old_model ~ Linear(input_dim, output_dim)
    # TODO(synk): `old_model` is externally supplied in the original code; modeled as one Linear.
    params["wold"], params["bold"] = _linear_init(ks[0], input_dim, output_dim)
    # lt_inv: Linear(output_dim, output_dim)
    params["wlt"], params["blt"] = _linear_init(ks[1], output_dim, output_dim)
    # transform_model[0]: Linear(input_dim + output_dim, h), split into [x | out] halves
    w1, params["b1"] = _linear_init(ks[2], input_dim + output_dim, h)
    params["w1x"] = w1[:input_dim, :]
    params["w1o"] = w1[input_dim:, :]
    # transform_model[3]: Linear(h, h)
    params["w2"], params["b2"] = _linear_init(ks[3], h, h)
    # D_model: Linear(h, output_dim)
    params["wd"], params["bd"] = _linear_init(ks[4], h, output_dim)
    # gate[0]: Linear(h, output_dim)
    params["wg"], params["bg"] = _linear_init(ks[5], h, output_dim)
    return params


def reference_forward(x, params):
    """Pure-JAX, un-folded reference (step-by-step like the PyTorch module, eval mode)."""
    hi = jax.lax.Precision.HIGHEST
    trans_in = jnp.dot(x, params["mat"], precision=hi)
    old_out = jnp.dot(trans_in, params["wold"], precision=hi) + params["bold"]
    out = jnp.dot(old_out, params["wlt"], precision=hi) + params["blt"]
    pre1 = (jnp.dot(x, params["w1x"], precision=hi)
            + jnp.dot(out, params["w1o"], precision=hi) + params["b1"])
    neg = SELU_ALPHA * (jnp.exp(jnp.minimum(pre1, 0.0)) - 1.0)
    h1 = SELU_SCALE * jnp.where(pre1 > 0, pre1, neg)
    h2 = jnp.tanh(jnp.dot(h1, params["w2"], precision=hi) + params["b2"])
    D = jnp.dot(h2, params["wd"], precision=hi) + params["bd"]
    alpha = jax.nn.sigmoid(jnp.dot(h2, params["wg"], precision=hi) + params["bg"])
    return alpha * out + D


if __name__ == "__main__":
    # Batched up (perf review: amortize fixed launch cost over 128-256 rows per call).
    B, INPUT_DIM, OUTPUT_DIM, H = 256, 8, 4, 128

    key = jax.random.PRNGKey(0)
    k_x, k_p = jax.random.split(key)
    x = jax.random.normal(k_x, (B, INPUT_DIM), dtype=jnp.float32)
    params = make_params(k_p, INPUT_DIM, OUTPUT_DIM, H)
    folded = fold_params(params)

    y = nonlinear_transformed_model(x, folded)
    y = jax.block_until_ready(y)

    assert y.shape == (B, OUTPUT_DIM) and y.dtype == jnp.float32

    # Numerical check against the un-folded step-by-step reference (folding only reorders f32 sums).
    y_ref = reference_forward(x, params)
    np.testing.assert_allclose(np.asarray(y), np.asarray(y_ref), rtol=1e-3, atol=1e-3)

    print("KERNEL_OK")
</pallas_src>

<mosaic_0001>
module attributes {stable_mosaic.version = 11 : i64} {
  func.func @nltm_kernel(%arg0: i32, %arg1: memref<128x8xf32, #tpu.memory_space<vmem>>, %arg2: memref<288x256xf32, #tpu.memory_space<vmem>>, %arg3: memref<128x128xf32, #tpu.memory_space<vmem>>) attributes {dimension_semantics = [#tpu.dimension_semantics<parallel>], iteration_bounds = array<i64: 2>, scalar_prefetch = 0 : i64, scratch_operands = 0 : i64, tpu.core_type = #tpu.core_type<tc>, window_params = [{transform_indices = @transform_0, window_bounds = array<i64: 128, 8>}, {pipeline_mode = #tpu.pipeline_mode<synchronous>, transform_indices = @transform_1, window_bounds = array<i64: 288, 256>}, {transform_indices = @transform_2, window_bounds = array<i64: 128, 128>}]} {
    %c0 = arith.constant 0 : index
    %c0_0 = arith.constant 0 : index
    %0 = vector.load %arg1[%c0, %c0_0] : memref<128x8xf32, #tpu.memory_space<vmem>>, vector<128x8xf32>
    %c0_1 = arith.constant 0 : index
    %c0_2 = arith.constant 0 : index
    %1 = vector.load %arg2[%c0_1, %c0_2] : memref<288x256xf32, #tpu.memory_space<vmem>>, vector<8x256xf32>
    %cst = arith.constant dense<0.000000e+00> : vector<128x256xf32>
    %2 = tpu.matmul %0, %1, %cst {dimension_numbers = #tpu.dot_dimension_numbers<[1], [0], [0], [1], [0, 0, 1, 1], [], []>, precision = #tpu.contract_precision<fp32>} : vector<128x8xf32>, vector<8x256xf32>, vector<128x256xf32> -> vector<128x256xf32>
    %c264 = arith.constant 264 : index
    %c0_3 = arith.constant 0 : index
    %3 = vector.load %arg2[%c264, %c0_3] : memref<288x256xf32, #tpu.memory_space<vmem>>, vector<1x256xf32>
    %4 = vector.broadcast %3 : vector<1x256xf32> to vector<128x256xf32>
    %5 = arith.addf %2, %4 : vector<128x256xf32>
    %6 = vector.extract_strided_slice %5 {offsets = [0, 0], sizes = [128, 128], strides = [1, 1]} : vector<128x256xf32> to vector<128x128xf32>
    %7 = vector.extract_strided_slice %5 {offsets = [0, 128], sizes = [128, 128], strides = [1, 1]} : vector<128x256xf32> to vector<128x128xf32>
    %cst_4 = arith.constant 0.000000e+00 : f32
    %8 = vector.broadcast %cst_4 : f32 to vector<128x128xf32>
    %9 = arith.minimumf %6, %8 : vector<128x128xf32>
    %10 = math.exp %9 : vector<128x128xf32>
    %cst_5 = arith.constant 1.000000e+00 : f32
    %11 = vector.broadcast %cst_5 : f32 to vector<128x128xf32>
    %12 = arith.subf %10, %11 : vector<128x128xf32>
    %cst_6 = arith.constant 1.67326319 : f32
    %13 = vector.broadcast %cst_6 : f32 to vector<128x128xf32>
    %14 = arith.mulf %13, %12 : vector<128x128xf32>
    %cst_7 = arith.constant 0.000000e+00 : f32
    %15 = vector.broadcast %cst_7 : f32 to vector<128x128xf32>
    %16 = arith.cmpf ogt, %6, %15 : vector<128x128xf32>
    %17 = arith.select %16, %6, %14 : vector<128x128xi1>, vector<128x128xf32>
    %cst_8 = arith.constant 1.05070102 : f32
    %18 = vector.broadcast %cst_8 : f32 to vector<128x128xf32>
    %19 = arith.mulf %18, %17 : vector<128x128xf32>
    %c8 = arith.constant 8 : index
    %c0_9 = arith.constant 0 : index
    %20 = vector.load %arg2[%c8, %c0_9] : memref<288x256xf32, #tpu.memory_space<vmem>>, vector<128x128xf32>
    %cst_10 = arith.constant dense<0.000000e+00> : vector<128x128xf32>
    %21 = tpu.matmul %19, %20, %cst_10 {dimension_numbers = #tpu.dot_dimension_numbers<[1], [0], [0], [1], [0, 0, 1, 1], [], []>, precision = #tpu.contract_precision<fp32>} : vector<128x128xf32>, vector<128x128xf32>, vector<128x128xf32> -> vector<128x128xf32>
    %c272 = arith.constant 272 : index
    %c0_11 = arith.constant 0 : index
    %22 = vector.load %arg2[%c272, %c0_11] : memref<288x256xf32, #tpu.memory_space<vmem>>, vector<1x128xf32>
    %23 = vector.broadcast %22 : vector<1x128xf32> to vector<128x128xf32>
    %24 = arith.addf %21, %23 : vector<128x128xf32>
    %25 = math.tanh %24 : vector<128x128xf32>
    %c136 = arith.constant 136 : index
    %c0_12 = arith.constant 0 : index
    %26 = vector.load %arg2[%c136, %c0_12] : memref<288x256xf32, #tpu.memory_space<vmem>>, vector<128x256xf32>
    %cst_13 = arith.constant dense<0.000000e+00> : vector<128x256xf32>
    %27 = tpu.matmul %25, %26, %cst_13 {dimension_numbers = #tpu.dot_dimension_numbers<[1], [0], [0], [1], [0, 0, 1, 1], [], []>, precision = #tpu.contract_precision<fp32>} : vector<128x128xf32>, vector<128x256xf32>, vector<128x256xf32> -> vector<128x256xf32>
    %c280 = arith.constant 280 : index
    %c0_14 = arith.constant 0 : index
    %28 = vector.load %arg2[%c280, %c0_14] : memref<288x256xf32, #tpu.memory_space<vmem>>, vector<1x256xf32>
    %29 = vector.broadcast %28 : vector<1x256xf32> to vector<128x256xf32>
    %30 = arith.addf %27, %29 : vector<128x256xf32>
    %31 = vector.extract_strided_slice %30 {offsets = [0, 0], sizes = [128, 128], strides = [1, 1]} : vector<128x256xf32> to vector<128x128xf32>
    %32 = vector.extract_strided_slice %30 {offsets = [0, 128], sizes = [128, 128], strides = [1, 1]} : vector<128x256xf32> to vector<128x128xf32>
    %33 = arith.negf %32 : vector<128x128xf32>
    %34 = math.exp %33 : vector<128x128xf32>
    %cst_15 = arith.constant 1.000000e+00 : f32
    %35 = vector.broadcast %cst_15 : f32 to vector<128x128xf32>
    %36 = arith.addf %35, %34 : vector<128x128xf32>
    %37 = arith.divf %35, %36 : vector<128x128xf32>
    %38 = arith.mulf %37, %7 : vector<128x128xf32>
    %39 = arith.addf %38, %31 : vector<128x128xf32>
    %c0_16 = arith.constant 0 : index
    %c0_17 = arith.constant 0 : index
    %40 = vector.load %arg3[%c0_16, %c0_17] : memref<128x128xf32, #tpu.memory_space<vmem>>, vector<128x128xf32>
    tpu.vector_store %arg3[%c0_16, %c0_17], %39 {strides = array<i32>} : memref<128x128xf32, #tpu.memory_space<vmem>>, vector<128x128xf32>,
    return
  }
  func.func @transform_0(%arg0: i32) -> (i32, i32) {
    %c0_i32 = arith.constant 0 : i32
    %c0_i32_0 = arith.constant 0 : i32
    return %arg0, %c0_i32 : i32, i32
  }
  func.func @transform_1(%arg0: i32) -> (i32, i32) {
    %c0_i32 = arith.constant 0 : i32
    %c0_i32_0 = arith.constant 0 : i32
    %c0_i32_1 = arith.constant 0 : i32
    return %c0_i32, %c0_i32_0 : i32, i32
  }
  func.func @transform_2(%arg0: i32) -> (i32, i32) {
    %c0_i32 = arith.constant 0 : i32
    %c0_i32_0 = arith.constant 0 : i32
    return %arg0, %c0_i32 : i32, i32
  }
}

</mosaic_0001>

<bundles_post_ra>
// kernel: tpu_custom_call.1
= control target key start
LH: loop header
LB: loop body
LE: loop exit
PB: predicated region body
PF: predicated region fallthrough
CT: control target
= control target key end

     0   :  { %7 = vsyncpa [#allocation3], 0  ;;  %s8652_s0 = inlined_call_operand.vmem [shape: f32[256,8], index: 0, kind: input, shape index: {}]   ;;  %s8653_s1 = inlined_call_operand.hbm [shape: f32[288,256], index: 1, kind: input, shape index: {}]   ;;  %s8654_s2 = inlined_call_operand.hbm [shape: f32[256,128], index: 2, kind: output, shape index: {}]  }
   0x1   :  { %8 = vsyncpa [#allocation4], 0 }
   0x2   :  { %10 = vsyncpa [#allocation4 + $0x1], 0  ;;  %s5626_s9 = smov 0   ;;  %s5628_s10 = smov 0  }
   0x3   :  { %s5630_s11 = smov 0   ;;  %s5632_s12 = smov 0  }
   0x4 LB: > { %s5647_s13 = sadd.s32 4294967295, %s5602_s12   ;;  %s4754_s14 = sadd.s32 4294967294, %s5602_s12   ;;  %s5602_s12 = sphi %s5632_s12, %s9553_s12   ;;  %s5598_s11 = sphi %s5630_s11, %s9552_s11   ;;  %s5594_s10 = sphi %s5628_s10, %s9551_s10   ;;  %s5590_s9 = sphi %s5626_s9, %s9550_s9  }
   0x5   : > { %s5651_s15 = sadd.s32 1, %s5602_s12   ;;  %s70_s16 = sadd.s32 1, %s5598_s11 }
   0x6   : > { %s67_s17 = ssub.s32 %s5602_s12, %s5651_s15  ;;  %p80_p0 = scmp.ne.s32.totalorder %s5598_s11, %s5594_s10 }
   0x7   : > { %p68_p1 = scmp.eq.s32.totalorder %s67_s17, 0  ;;  %p81_p2 = scmp.eq.s32.totalorder %s5647_s13, 1 }
   0x8   : > { %p86_p3 = scmp.ne.s32.totalorder %s5594_s10, %s5590_s9  ;;  %p87_p4 = scmp.eq.s32.totalorder %s4754_s14, 1 }
   0x9   : > { %s5662_s18 = scalar_select %p68_p1, %s5598_s11, %s70_s16  }
   0xa   : > { %p5664_p5 = por %p81_p2, %p80_p0  ;;  %p5668_p6 = por %p87_p4, %p86_p3 }
   0xb   : > { %p4755_p7 = scmp.ge.s32.totalorder %s5602_s12, 1  ;;  %p94_p8 = scmp.lt.s32.totalorder %s5602_s12, 3 }
   0xc   : > { %s8949_s20 = scalar_select %p5668_p6, 1, 0 }
   0xd   : > { %p5343_p9 = scmp.eq.s32.totalorder %s5647_s13, 0  ;;  %p5675_p10 = pnand %p4755_p7, %p94_p8 }
   0xe   : > { %s5604_s22 = smov [#allocation2]  }
   0xf   : > { %s106_s23 = sshll.u32 %s5604_s22, 4  ;;  %p5335_p11 = pneg %p5675_p10  ;;  %s107_s23 = int_to_ptr.vmem [resolvable:$true] %s106_s23 }
  0x10   : > { %s5523_s24 = scalar_lea.vmem %s107_s23, 9216  ;;  %p5531_p3 = scmp.lt.s32.totalorder %s107_s23, %s107_s23 }
  0x11   : > { %p5336_p12 = pnand %p5343_p9, %p5335_p11  ;;  %p5524_p0 = scmp.ne.s32.totalorder %s107_s23, %s5523_s24 }
  0x12   : > { %p5532_p4 = scmp.lt.s32.totalorder %s5523_s24, %s5523_s24 }
  0x13   : > { %p5514_p13 = pneg %p5336_p12 }
  0x14   : > { %p5533_p6 = por %p5532_p4, %p5531_p3 }
  0x15   : > { %p5526_p1 = pnand %p5524_p0, %p5514_p13 }
  0x17   : > { %p5527_p2 = pneg %p5526_p1 }
  0x19   : > { %p5534_p7 = pnand %p5533_p6, %p5527_p2 }
  0x1b   : > { %5537 = shalt.err (!%p5534_p7)
}
  0x1c   : > { %s5605_s25 = smov 256   ;;  %s5606_s26 = smov 16  }
  0x1d   : > { %5338 = dma.hbm_to_vmem [thread:$0]  (!%p5336_p12), %s8653_s1, 9216, %s107_s23, [#allocation3], %s5605_s25, %s5605_s25, %s5606_s26  }
  0x1e   : > { %131 = sbr.rel (%p5675_p10) target bundleno = 1185 (0x4a1), region = 28 }
  0x23   : > { %5581 = dma.done.wait (%p5343_p9), [#allocation3], 9216  }
  0x24   : > { %5583 = vsyncadd (%p5343_p9), [#allocation3], 4294958080  ;;  %s4761_s29 = sshll.u32 %s5647_s13, 4  ;;  %v8657_v0 = vmov 0.0   ;;  %vm191_vm0 = vcmask 64512   ;;  %v177_v1 = vld [vmem:[#allocation2 + $0x8] sm:$0xff] }
  0x25   : > { %306 = vmatprep.mubr.f32.mxu0 %v8657_v0  ;;  %p154_p6 = scmp.lt.s32.totalorder %s4761_s29, 31  ;;  %557 = vmatprep.mubr.f32.mxu1 %v8657_v0  ;;  %v176_v2 = vld [vmem:[#allocation2] sm:$0xff]  ;;  %v5701_v4 = vand.u32 4294901760, %v177_v1  ;;  %s150_s6 = sand.u32 1, %s5594_s10  }
  0x26   : > { %v5703_v5 = vand.u32 4294901760, %v176_v2  ;;  %s8412_s7 = sshll.u32 %s150_s6, 7  ;;  %s4800_s14 = sshll.u32 %s5647_s13, 11 }
  0x27   : > { %s9555_s29 = smov (!%p154_p6, %s4761_s29), 31  ;;  %271 = vmatprep.subr.mxu0 %v5701_v4  ;;  %v514_v15 = vsub.f32 %v177_v1, %v5701_v4  ;;  %s8435_s8 = scalar_lea.vmem [#allocation5], %s8412_s7 }
  0x28   : > { %s4762_s30 = sshll.u32 %s9555_s29, 3  ;;  %v5718_v16 = vsub.f32 %v176_v2, %v5703_v5  ;;  %273 = vmatpush1.msra.mxu0 %v5703_v5  ;;  %s4680_s16 = sshll.u32 %s8435_s8, 4  ;;  %s8607_s16 = int_to_ptr.vmem [resolvable:$true] %s4680_s16 }
  0x29   : > { %s5698_s5 = scalar_lea.vmem %s8652_s0, %s4762_s30  ;;  %v515_v23 = vand.u32 4294901760, %v514_v15  ;;  %702 = vmatprep.subr.mxu0 %v514_v15  ;;  %s8605_s22 = scalar_lea.hbm %s8654_s2, %s4800_s14 }
  0x2a   : > { %v160_v3 = vld [vmem:[%s5698_s5] sm:$0xff]  ;;  %v161_v7 = vld [vmem:[%s5698_s5 + $0x8] sm:$0xff]  ;;  %v162_v8 = vld [vmem:[%s5698_s5 + $0x10] sm:$0xff]  ;;  %v521_v24 = vand.u32 4294901760, %v5718_v16  ;;  %s8612_s13 = scalar_lea.sflag [#allocation4], %s150_s6  ;;  %s5538_s23 = scalar_lea.vmem %s8607_s16, 2048 }
  0x2b   : > { %v193_v6 = vsel %vm191_vm0, %v160_v3, 0  ;;  %v163_v9 = vld [vmem:[%s5698_s5 + $0x18] sm:$0xff]  ;;  %v196_v11 = vsel %vm191_vm0, %v161_v7, 0  ;;  %v199_v12 = vsel %vm191_vm0, %v162_v8, 0  ;;  %v164_v14 = vld [vmem:[%s5698_s5 + $0x20] sm:$0xff]  ;;  %v165_v22 = vld [vmem:[%s5698_s5 + $0x28] sm:$0xff]  ;;  %v516_v28 = vsub.f32 %v514_v15, %v515_v23  ;;  %p5539_p8 = scmp.ne.s32.totalorder %s8607_s16, %s5538_s23 }
  0x2c   : > { %v5709_v10 = vand.u32 4294901760, %v193_v6  ;;  %v202_v13 = vsel %vm191_vm0, %v163_v9, 0  ;;  %v5720_v17 = vand.u32 4294901760, %v196_v11  ;;  %v5722_v18 = vand.u32 4294901760, %v199_v12  ;;  %v166_v40 = vld [vmem:[%s5698_s5 + $0x30] sm:$0xff]  ;;  %v167_v47 = vld [vmem:[%s5698_s5 + $0x38] sm:$0xff] }
  0x2d   : > { %v5728_v20 = vand.u32 4294901760, %v202_v13  ;;  %v205_v21 = vsel %vm191_vm0, %v164_v14, 0  ;;  %v522_v29 = vsub.f32 %v5718_v16, %v521_v24  ;;  %v208_v31 = vsel %vm191_vm0, %v165_v22, 0  ;;  %v168_v54 = vld [vmem:[%s5698_s5 + $0x40] sm:$0xff]  ;;  %v169_v61 = vld [vmem:[%s5698_s5 + $0x48] sm:$0xff]  ;;  %v171_v14 = vld [vmem:[%s5698_s5 + $0x58] sm:$0xff]  ;;  %p5540_p9 = pnand %p5539_p8, %p5664_p5 }
  0x2e   : > { %v5726_v19 = vsub.f32 %v193_v6, %v5709_v10  ;;  %v5734_v25 = vsub.f32 %v196_v11, %v5720_v17  ;;  %v5737_v26 = vsub.f32 %v199_v12, %v5722_v18  ;;  %v5752_v35 = vand.u32 4294901760, %v205_v21  ;;  %s5608_s24 = smov [#allocation5]  }
  0x2f   : > { %v5750_v34 = vsub.f32 %v202_v13, %v5728_v20  ;;  %v517_v36 = vand.u32 4294901760, %v516_v28  ;;  %v523_v37 = vand.u32 4294901760, %v522_v29  ;;  %v5758_v41 = vand.u32 4294901760, %v208_v31  ;;  %p5541_p10 = pneg %p5540_p9  ;;  %s5542_s25 = sshll.u32 %s5608_s24, 4  ;;  %s5543_s25 = int_to_ptr.vmem [resolvable:$false] %s5542_s25 }
  0x30   : > { %v309_v27 = vand.u32 4294901760, %v5726_v19  ;;  %v320_v30 = vand.u32 4294901760, %v5734_v25  ;;  %v331_v33 = vand.u32 4294901760, %v5737_v26  ;;  %v5765_v45 = vsub.f32 %v205_v21, %v5752_v35  ;;  %s5544_s26 = scalar_lea.vmem %s5543_s25, 4096  ;;  %p5545_p11 = scmp.lt.s32.totalorder %s8607_s16, %s5543_s25 }
  0x31   : > { %518 = vmatprep.subr.mxu1 %v517_v36  ;;  %v342_v44 = vand.u32 4294901760, %v5750_v34  ;;  %v211_v46 = vsel %vm191_vm0, %v166_v40, 0  ;;  %v5776_v48 = vsub.f32 %v208_v31, %v5758_v41  ;;  %v214_v53 = vsel %vm191_vm0, %v167_v47, 0  ;;  %v172_v31 = vld [vmem:[%s5698_s5 + $0x60] sm:$0xff]  ;;  %p5546_p12 = scmp.lt.s32.totalorder %s5544_s26, %s5538_s23 }
  0x32   : > { %v310_v32 = vsub.f32 %v5726_v19, %v309_v27  ;;  %v321_v38 = vsub.f32 %v5734_v25, %v320_v30  ;;  %524 = vmatpush1.msra.mxu1 %v523_v37  ;;  %v332_v43 = vsub.f32 %v5737_v26, %v331_v33  ;;  %v353_v51 = vand.u32 4294901760, %v5765_v45 }
  0x33   : > { %559 = vmatmul.mubr.f32.vlgmr.msra.gmra.mxu1 %v5709_v10  ;;  %898 = vmatprep.subr.mxu1 %v5701_v4  ;;  %v343_v50 = vsub.f32 %v5750_v34, %v342_v44  ;;  %v5782_v52 = vand.u32 4294901760, %v211_v46  ;;  %v364_v55 = vand.u32 4294901760, %v5776_v48  ;;  %v5797_v59 = vand.u32 4294901760, %v214_v53  ;;  %p5547_p13 = por %p5546_p12, %p5545_p11 }
  0x34   : > { %v311_v39 = vand.u32 4294901760, %v310_v32  ;;  %v322_v42 = vand.u32 4294901760, %v321_v38  ;;  %900 = vmatpush1.msra.mxu1 %v5703_v5  ;;  %564 = vmatprep.mubr.f32.mxu1 %v8657_v0  ;;  %v333_v49 = vand.u32 4294901760, %v332_v43  ;;  %v354_v57 = vsub.f32 %v5765_v45, %v353_v51 }
  0x35   : > { %1292 = vmatprep.subr.mxu1 %v5701_v4  ;;  %v344_v56 = vand.u32 4294901760, %v343_v50  ;;  %v5795_v58 = vsub.f32 %v211_v46, %v5782_v52  ;;  %v217_v60 = vsel %vm191_vm0, %v168_v54, 0  ;;  %v365_v62 = vsub.f32 %v5776_v48, %v364_v55  ;;  %v170_v4 = vld [vmem:[%s5698_s5 + $0x50] sm:$0xff]  ;;  %p5548_p0 = pnand %p5547_p13, %p5541_p10 }
  0x36   : > { %312 = vmatmul.mubr.f32.vlgmr.msra.gmra.mxu0 %v311_v39  ;;  %v355_v63 = vand.u32 4294901760, %v354_v57  ;;  %v5809_v2 = vsub.f32 %v214_v53, %v5797_v59  ;;  %v5811_v3 = vand.u32 4294901760, %v217_v60  ;;  %v220_v6 = vsel %vm191_vm0, %v169_v61, 0  ;;  %v174_v54 = vld [vmem:[%s5698_s5 + $0x70] sm:$0xff] }
  0x37   : > { %705 = vmatpush1.msra.mxu0 %v5718_v16  ;;  %317 = vmatprep.mubr.f32.mxu0 %v8657_v0  ;;  %v375_v1 = vand.u32 4294901760, %v5795_v58  ;;  %v366_v7 = vand.u32 4294901760, %v365_v62  ;;  %v223_v8 = vsel %vm191_vm0, %v170_v4, 0  ;;  %v5826_v13 = vand.u32 4294901760, %v220_v6  ;;  %v175_v4 = vld [vmem:[%s5698_s5 + $0x78] sm:$0xff] }
  0x38   : > { %1111 = vmatprep.subr.mxu0 %v515_v23  ;;  %566 = vmatmul.mubr.f32.gmra.mxu1 %v5720_v17  ;;  %v386_v11 = vand.u32 4294901760, %v5809_v2  ;;  %v5824_v12 = vsub.f32 %v217_v60, %v5811_v3  ;;  %v5832_v15 = vand.u32 4294901760, %v223_v8  ;;  %v226_v21 = vsel %vm191_vm0, %v171_v14, 0 }
  0x39   : > { %571 = vmatprep.mubr.f32.mxu1 %v8657_v0  ;;  %v376_v9 = vsub.f32 %v5795_v58, %v375_v1  ;;  %v5840_v29 = vsub.f32 %v220_v6, %v5826_v13  ;;  %v5846_v32 = vand.u32 4294901760, %v226_v21  ;;  %v229_v36 = vsel %vm191_vm0, %v172_v31, 0 }
  0x3a   : > { %323 = vmatmul.mubr.f32.gmra.mxu0 %v322_v42  ;;  %v387_v23 = vsub.f32 %v5809_v2, %v386_v11  ;;  %v397_v28 = vand.u32 4294901760, %v5824_v12  ;;  %v5854_v40 = vsub.f32 %v223_v8, %v5832_v15  ;;  %v173_v42 = vld [vmem:[%s5698_s5 + $0x68] sm:$0xff]  ;;  %v5860_v43 = vand.u32 4294901760, %v229_v36 }
  0x3b   : > { %328 = vmatprep.mubr.f32.mxu0 %v8657_v0  ;;  %v377_v22 = vand.u32 4294901760, %v376_v9  ;;  %v408_v39 = vand.u32 4294901760, %v5840_v29  ;;  %v5867_v50 = vsub.f32 %v226_v21, %v5846_v32  ;;  %v232_v53 = vsel %vm191_vm0, %v173_v42, 0 }
  0x3c   : > { %573 = vmatmul.mubr.f32.gmra.mxu1 %v5722_v18  ;;  %v388_v37 = vand.u32 4294901760, %v387_v23  ;;  %v398_v38 = vsub.f32 %v5824_v12, %v397_v28  ;;  %v5881_v62 = vand.u32 4294901760, %v232_v53  ;;  %v238_v21 = vsel %vm191_vm0, %v175_v4, 0 }
  0x3d   : > { %578 = vmatprep.mubr.f32.mxu1 %v8657_v0  ;;  %v409_v47 = vsub.f32 %v5840_v29, %v408_v39  ;;  %v430_v61 = vand.u32 4294901760, %v5867_v50 }
  0x3e   : > { %334 = vmatmul.mubr.f32.gmra.mxu0 %v333_v49  ;;  %v399_v46 = vand.u32 4294901760, %v398_v38  ;;  %v419_v49 = vand.u32 4294901760, %v5854_v40  ;;  %v5893_v9 = vsub.f32 %v232_v53, %v5881_v62 }
  0x3f   : > { %339 = vmatprep.mubr.f32.mxu0 %v8657_v0  ;;  %v410_v57 = vand.u32 4294901760, %v409_v47  ;;  %v431_v8 = vsub.f32 %v5867_v50, %v430_v61 }
  0x40   : > { %580 = vmatmul.mubr.f32.gmra.mxu1 %v5728_v20  ;;  %v420_v60 = vsub.f32 %v5854_v40, %v419_v49  ;;  %v452_v31 = vand.u32 4294901760, %v5893_v9 }
  0x41   : > { %585 = vmatprep.mubr.f32.mxu1 %v8657_v0  ;;  %v432_v23 = vand.u32 4294901760, %v431_v8 }
  0x42   : > { %345 = vmatmul.mubr.f32.gmra.mxu0 %v344_v56  ;;  %v5875_v56 = vsub.f32 %v229_v36, %v5860_v43  ;;  %v453_v42 = vsub.f32 %v5893_v9, %v452_v31 }
  0x43   : > { %350 = vmatprep.mubr.f32.mxu0 %v8657_v0 }
  0x44   : > { %587 = vmatmul.mubr.f32.gmra.mxu1 %v5752_v35  ;;  %v441_v6 = vand.u32 4294901760, %v5875_v56  ;;  %v454_v53 = vand.u32 4294901760, %v453_v42 }
  0x45   : > { %592 = vmatprep.mubr.f32.mxu1 %v8657_v0 }
  0x46   : > { %356 = vmatmul.mubr.f32.gmra.mxu0 %v355_v63  ;;  %v235_v63 = vsel %vm191_vm0, %v174_v54, 0 }
  0x47   : > { %361 = vmatprep.mubr.f32.mxu0 %v8657_v0  ;;  %v5895_v14 = vand.u32 4294901760, %v235_v63 }
  0x48   : > { %594 = vmatmul.mubr.f32.gmra.mxu1 %v5758_v41 }
  0x49   : > { %599 = vmatprep.mubr.f32.mxu1 %v8657_v0  ;;  %v5906_v36 = vsub.f32 %v235_v63, %v5895_v14 }
  0x4a   : > { %367 = vmatmul.mubr.f32.gmra.mxu0 %v366_v7  ;;  %v421_v7 = vand.u32 4294901760, %v420_v60 }
  0x4b   : > { %372 = vmatprep.mubr.f32.mxu0 %v8657_v0 }
  0x4c   : > { %601 = vmatmul.mubr.f32.gmra.mxu1 %v5782_v52 }
  0x4d   : > { %606 = vmatprep.mubr.f32.mxu1 %v8657_v0 }
  0x4e   : > { %378 = vmatmul.mubr.f32.gmra.mxu0 %v377_v22  ;;  %v442_v22 = vsub.f32 %v5875_v56, %v441_v6 }
  0x4f   : > { %383 = vmatprep.mubr.f32.mxu0 %v8657_v0 }
  0x50   : > { %608 = vmatmul.mubr.f32.gmra.mxu1 %v5797_v59  ;;  %v443_v38 = vand.u32 4294901760, %v442_v22  ;;  %v5946_v22 = vld [vmem:[#allocation2 + $0x210] ss:$8 sm:$0x3] }
  0x51   : > { %613 = vmatprep.mubr.f32.mxu1 %v8657_v0 }
  0x52   : > { %389 = vmatmul.mubr.f32.gmra.mxu0 %v388_v37  ;;  %v5908_v37 = vand.u32 4294901760, %v238_v21 }
  0x53   : > { %394 = vmatprep.mubr.f32.mxu0 %v8657_v0 }
  0x54   : > { %615 = vmatmul.mubr.f32.gmra.mxu1 %v5811_v3  ;;  %v5918_v47 = vsub.f32 %v238_v21, %v5908_v37 }
  0x55   : > { %620 = vmatprep.mubr.f32.mxu1 %v8657_v0 }
  0x56   : > { %400 = vmatmul.mubr.f32.gmra.mxu0 %v399_v46  ;;  %v463_v46 = vand.u32 4294901760, %v5906_v36 }
  0x57   : > { %405 = vmatprep.mubr.f32.mxu0 %v8657_v0 }
  0x58   : > { %622 = vmatmul.mubr.f32.gmra.mxu1 %v5826_v13  ;;  %v464_v54 = vsub.f32 %v5906_v36, %v463_v46 }
  0x59   : > { %627 = vmatprep.mubr.f32.mxu1 %v8657_v0 }
  0x5a   : > { %411 = vmatmul.mubr.f32.gmra.mxu0 %v410_v57  ;;  %v474_v57 = vand.u32 4294901760, %v5918_v47  ;;  %v465_v60 = vand.u32 4294901760, %v464_v54 }
  0x5b   : > { %416 = vmatprep.mubr.f32.mxu0 %v8657_v0 }
  0x5c   : > { %629 = vmatmul.mubr.f32.gmra.mxu1 %v5832_v15  ;;  %v475_v63 = vsub.f32 %v5918_v47, %v474_v57 }
  0x5d   : > { %634 = vmatprep.mubr.f32.mxu1 %v8657_v0 }
  0x5e   : > { %422 = vmatmul.mubr.f32.gmra.mxu0 %v421_v7  ;;  %v476_v4 = vand.u32 4294901760, %v475_v63  ;;  %v181_v7 = vlaneseq  ;;  %v1575_v63 = vld [vmem:[#allocation2 + $0x80] sm:$0xff] }
  0x5f   : > { %427 = vmatprep.mubr.f32.mxu0 %v8657_v0 }
  0x60   : > { %636 = vmatmul.mubr.f32.gmra.mxu1 %v5846_v32  ;;  %v5941_v8 = vshrl.u32 %v181_v7, 7 }
  0x61   : > { %641 = vmatprep.mubr.f32.mxu1 %v8657_v0 }
  0x62   : > { %433 = vmatmul.mubr.f32.gmra.mxu0 %v432_v23  ;;  %8951 = vst [vmem:[#allocation8_spill] sm:$0xff] %v5941_v8  ;;  %v8655_v21 = vsub.s32 1, %v5941_v8 }
  0x63   : > { %438 = vmatprep.mubr.f32.mxu0 %v8657_v0 }
  0x64   : > { %643 = vmatmul.mubr.f32.gmra.mxu1 %v5860_v43  ;;  %v5955_v23 = vrot.slane %v5946_v22, %v8655_v21 }
  0x65   : > { %648 = vmatprep.mubr.f32.mxu1 %v8657_v0 }
  0x66   : > { %444 = vmatmul.mubr.f32.gmra.mxu0 %v443_v38  ;;  %8952 = vst [vmem:[#allocation9_spill] sm:$0xff] %v5955_v23 }
  0x67   : > { %449 = vmatprep.mubr.f32.mxu0 %v8657_v0 }
  0x68   : > { %650 = vmatmul.mubr.f32.gmra.mxu1 %v5881_v62 }
  0x69   : > { %655 = vmatprep.mubr.f32.mxu1 %v8657_v0 }
  0x6a   : > { %455 = vmatmul.mubr.f32.gmra.mxu0 %v454_v53 }
  0x6b   : > { %460 = vmatprep.mubr.f32.mxu0 %v8657_v0 }
  0x6c   : > { %657 = vmatmul.mubr.f32.gmra.mxu1 %v5895_v14 }
  0x6d   : > { %662 = vmatprep.mubr.f32.mxu1 %v8657_v0 }
  0x6e   : > { %466 = vmatmul.mubr.f32.gmra.mxu0 %v465_v60 }
  0x6f   : > { %471 = vmatprep.mubr.f32.mxu0 %v8657_v0 }
  0x70   : > { %664 = vmatmul.mubr.f32.gmra.mxu1 %v5908_v37 }
  0x71   : > { %933 = vmatprep.mubr.f32.mxu1 %v8657_v0 }
  0x72   : > { %477 = vmatmul.mubr.f32.gmra.mxu0 %v476_v4 }
  0x73   : > { %738 = vmatprep.mubr.f32.mxu0 %v8657_v0 }
  0x74   : > { %937 = vmatmul.mubr.f32.vlgmr.msra.gmra.mxu1 %v309_v27 }
  0x75   : > { %1294 = vmatpush1.msra.mxu1 %v5703_v5  ;;  %942 = vmatprep.mubr.f32.mxu1 %v8657_v0  ;;  %v8656_v5 = vsub.s32 0, %v5941_v8 }
  0x76   : > { %741 = vmatmul.mubr.f32.vlgmr.msra.gmra.mxu0 %v5726_v19 }
  0x77   : > { %1115 = vmatpush1.msra.mxu0 %v521_v24  ;;  %746 = vmatprep.mubr.f32.mxu0 %v8657_v0 }
  0x78   : > { %946 = vmatmul.mubr.f32.gmra.mxu1 %v320_v30 }
  0x79   : > { %951 = vmatprep.mubr.f32.mxu1 %v8657_v0 }
  0x7a   : > { %749 = vmatmul.mubr.f32.gmra.mxu0 %v5734_v25 }
  0x7b   : > { %754 = vmatprep.mubr.f32.mxu0 %v8657_v0 }
  0x7c   : > { %955 = vmatmul.mubr.f32.gmra.mxu1 %v331_v33 }
  0x7d   : > { %960 = vmatprep.mubr.f32.mxu1 %v8657_v0 }
  0x7e   : > { %757 = vmatmul.mubr.f32.gmra.mxu0 %v5737_v26  ;;  %v1581_v26 = vld [vmem:[#allocation2 + $0xe0] sm:$0xff] }
  0x7f   : > { %762 = vmatprep.mubr.f32.mxu0 %v8657_v0  ;;  %v6119_v27 = vand.u32 4294901760, %v1581_v26 }
  0x80   : > { %964 = vmatmul.mubr.f32.gmra.mxu1 %v342_v44 }
  0x81   : > { %969 = vmatprep.mubr.f32.mxu1 %v8657_v0 }
  0x82   : > { %765 = vmatmul.mubr.f32.gmra.mxu0 %v5750_v34 }
  0x83   : > { %770 = vmatprep.mubr.f32.mxu0 %v8657_v0 }
  0x84   : > { %973 = vmatmul.mubr.f32.gmra.mxu1 %v353_v51 }
  0x85   : > { %978 = vmatprep.mubr.f32.mxu1 %v8657_v0 }
  0x86   : > { %773 = vmatmul.mubr.f32.gmra.mxu0 %v5765_v45  ;;  %v6129_v45 = vsub.f32 %v1581_v26, %v6119_v27 }
  0x87   : > { %778 = vmatprep.mubr.f32.mxu0 %v8657_v0 }
  0x88   : > { %982 = vmatmul.mubr.f32.gmra.mxu1 %v364_v55  ;;  %8956 = vst [vmem:[#allocation13_spill] sm:$0xff] %v6129_v45 }
  0x89   : > { %987 = vmatprep.mubr.f32.mxu1 %v8657_v0 }
  0x8a   : > { %781 = vmatmul.mubr.f32.gmra.mxu0 %v5776_v48 }
  0x8b   : > { %786 = vmatprep.mubr.f32.mxu0 %v8657_v0 }
  0x8c   : > { %991 = vmatmul.mubr.f32.gmra.mxu1 %v375_v1 }
  0x8d   : > { %996 = vmatprep.mubr.f32.mxu1 %v8657_v0 }
  0x8e   : > { %789 = vmatmul.mubr.f32.gmra.mxu0 %v5795_v58  ;;  %v1579_v58 = vld [vmem:[#allocation2 + $0xc0] sm:$0xff] }
  0x8f   : > { %794 = vmatprep.mubr.f32.mxu0 %v8657_v0 }
  0x90   : > { %1000 = vmatmul.mubr.f32.gmra.mxu1 %v386_v11 }
  0x91   : > { %1005 = vmatprep.mubr.f32.mxu1 %v8657_v0 }
  0x92   : > { %797 = vmatmul.mubr.f32.gmra.mxu0 %v5809_v2  ;;  %v6144_v2 = vand.u32 4294901760, %v6129_v45 }
  0x93   : > { %802 = vmatprep.mubr.f32.mxu0 %v8657_v0 }
  0x94   : > { %1009 = vmatmul.mubr.f32.gmra.mxu1 %v397_v28  ;;  %8959 = vst [vmem:[#allocation16_spill] sm:$0xff] %v6144_v2 }
  0x95   : > { %1014 = vmatprep.mubr.f32.mxu1 %v8657_v0 }
  0x96   : > { %805 = vmatmul.mubr.f32.gmra.mxu0 %v5824_v12 }
  0x97   : > { %810 = vmatprep.mubr.f32.mxu0 %v8657_v0 }
  0x98   : > { %1018 = vmatmul.mubr.f32.gmra.mxu1 %v408_v39 }
  0x99   : > { %1023 = vmatprep.mubr.f32.mxu1 %v8657_v0 }
  0x9a   : > { %813 = vmatmul.mubr.f32.gmra.mxu0 %v5840_v29 }
  0x9b   : > { %818 = vmatprep.mubr.f32.mxu0 %v8657_v0 }
  0x9c   : > { %1027 = vmatmul.mubr.f32.gmra.mxu1 %v419_v49 }
  0x9d   : > { %1032 = vmatprep.mubr.f32.mxu1 %v8657_v0 }
  0x9e   : > { %821 = vmatmul.mubr.f32.gmra.mxu0 %v5854_v40 }
  0x9f   : > { %826 = vmatprep.mubr.f32.mxu0 %v8657_v0 }
  0xa0   : > { %1036 = vmatmul.mubr.f32.gmra.mxu1 %v430_v61 }
  0xa1   : > { %1041 = vmatprep.mubr.f32.mxu1 %v8657_v0 }
  0xa2   : > { %829 = vmatmul.mubr.f32.gmra.mxu0 %v5867_v50  ;;  %v1577_v50 = vld [vmem:[#allocation2 + $0xa0] sm:$0xff] }
  0xa3   : > { %834 = vmatprep.mubr.f32.mxu0 %v8657_v0 }
  0xa4   : > { %1045 = vmatmul.mubr.f32.gmra.mxu1 %v441_v6 }
  0xa5   : > { %1050 = vmatprep.mubr.f32.mxu1 %v8657_v0 }
  0xa6   : > { %837 = vmatmul.mubr.f32.gmra.mxu0 %v5875_v56 }
  0xa7   : > { %842 = vmatprep.mubr.f32.mxu0 %v8657_v0 }
  0xa8   : > { %1054 = vmatmul.mubr.f32.gmra.mxu1 %v452_v31 }
  0xa9   : > { %1059 = vmatprep.mubr.f32.mxu1 %v8657_v0 }
  0xaa   : > { %845 = vmatmul.mubr.f32.gmra.mxu0 %v5893_v9 }
  0xab   : > { %850 = vmatprep.mubr.f32.mxu0 %v8657_v0 }
  0xac   : > { %1063 = vmatmul.mubr.f32.gmra.mxu1 %v463_v46 }
  0xad   : > { %1068 = vmatprep.mubr.f32.mxu1 %v8657_v0 }
  0xae   : > { %853 = vmatmul.mubr.f32.gmra.mxu0 %v5906_v36  ;;  %v6180_v36 = vand.u32 4294901760, %v1577_v50 }
  0xaf   : > { %858 = vmatprep.mubr.f32.mxu0 %v8657_v0 }
  0xb0   : > { %1072 = vmatmul.mubr.f32.gmra.mxu1 %v474_v57  ;;  %v6195_v60 = vsub.f32 %v1577_v50, %v6180_v36 }
  0xb1   : > { %1327 = vmatprep.mubr.f32.mxu1 %v8657_v0 }
  0xb2   : > { %861 = vmatmul.mubr.f32.gmra.mxu0 %v5918_v47  ;;  %8969 = vst [vmem:[#allocation26_spill] sm:$0xff] %v6195_v60 }
  0xb3   : > { %1148 = vmatprep.mubr.f32.mxu0 %v8657_v0 }
  0xb4   : > { %1329 = vmatmul.mubr.f32.vlgmr.msra.gmra.mxu1 %v5709_v10 }
  0xb5   : > { %1334 = vmatprep.mubr.f32.mxu1 %v8657_v0 }
  0xb6   : > { %1150 = vmatmul.mubr.f32.vlgmr.msra.gmra.mxu0 %v5709_v10  ;;  %v1583_v10 = vld [vmem:[#allocation2 + $0x100] sm:$0xff] }
  0xb7   : > { %1155 = vmatprep.mubr.f32.mxu0 %v8657_v0  ;;  %v6096_v16 = vand.u32 4294901760, %v1583_v10 }
  0xb8   : > { %1336 = vmatmul.mubr.f32.gmra.mxu1 %v5720_v17 }
  0xb9   : > { %1341 = vmatprep.mubr.f32.mxu1 %v8657_v0  ;;  %4993 = vmatprep.subr.mxu0 %v6096_v16 }
  0xba   : > { %1157 = vmatmul.mubr.f32.gmra.mxu0 %v5720_v17  ;;  %v1582_v17 = vld [vmem:[#allocation2 + $0xf0] sm:$0xff] }
  0xbb   : > { %1162 = vmatprep.mubr.f32.mxu0 %v8657_v0  ;;  %v6102_v19 = vand.u32 4294901760, %v1582_v17  ;;  %4994 = vmatpush3.msra.mxu0 %v6096_v16 }
  0xbc   : > { %1343 = vmatmul.mubr.f32.gmra.mxu1 %v5722_v18 }
  0xbd   : > { %1348 = vmatprep.mubr.f32.mxu1 %v8657_v0  ;;  %v6116_v25 = vsub.f32 %v1582_v17, %v6102_v19  ;;  %4995 = vmatprep.subr.mxu0 %v6102_v19 }
  0xbe   : > { %1164 = vmatmul.mubr.f32.gmra.mxu0 %v5722_v18  ;;  %v6100_v18 = vsub.f32 %v1583_v10, %v6096_v16  ;;  %v6205_v10 = vand.u32 4294901760, %v1575_v63 }
  0xbf   : > { %1169 = vmatprep.mubr.f32.mxu0 %v8657_v0  ;;  %8954 = vst [vmem:[#allocation11_spill] sm:$0xff] %v6116_v25  ;;  %4996 = vmatpush3.msra.mxu0 %v6102_v19  ;;  %v6125_v34 = vand.u32 4294901760, %v6116_v25 }
  0xc0   : > { %1350 = vmatmul.mubr.f32.gmra.mxu1 %v5728_v20  ;;  %v6113_v24 = vand.u32 4294901760, %v6100_v18  ;;  %4997 = vmatprep.subr.mxu0 %v6119_v27  ;;  %8972 = vst [vmem:[#allocation29_spill] sm:$0xff] %v6205_v10 }
  0xc1   : > { %1355 = vmatprep.mubr.f32.mxu1 %v8657_v0  ;;  %8955 = vst [vmem:[#allocation12_spill] sm:$0xff] %v6125_v34  ;;  %v1837_v55 = vsub.f32 %v6116_v25, %v6125_v34  ;;  %4998 = vmatpush3.msra.mxu0 %v6119_v27 }
  0xc2   : > { %1171 = vmatmul.mubr.f32.gmra.mxu0 %v5728_v20  ;;  %v6109_v20 = vrot.slane %v5946_v22, %v8656_v5  ;;  %8953 = vst [vmem:[#allocation10_spill] sm:$0xff] %v6113_v24  ;;  %v1830_v33 = vsub.f32 %v6100_v18, %v6113_v24 }
  0xc3   : > { %1176 = vmatprep.mubr.f32.mxu0 %v8657_v0  ;;  %v1838_v12 = vand.u32 4294901760, %v1837_v55  ;;  %v6219_v55 = vsub.f32 %v1575_v63, %v6205_v10 }
  0xc4   : > { %1357 = vmatmul.mubr.f32.gmra.mxu1 %v5752_v35 }
  0xc5   : > { %1362 = vmatprep.mubr.f32.mxu1 %v8657_v0  ;;  %8975 = vst [vmem:[#allocation32_spill] sm:$0xff] %v6219_v55 }
  0xc6   : > { %1178 = vmatmul.mubr.f32.gmra.mxu0 %v5752_v35  ;;  %v1580_v35 = vld [vmem:[#allocation2 + $0xd0] sm:$0xff] }
  0xc7   : > { %1183 = vmatprep.mubr.f32.mxu0 %v8657_v0  ;;  %v6131_v48 = vand.u32 4294901760, %v1580_v35 }
  0xc8   : > { %1364 = vmatmul.mubr.f32.gmra.mxu1 %v5758_v41 }
  0xc9   : > { %1369 = vmatprep.mubr.f32.mxu1 %v8657_v0  ;;  %4999 = vmatprep.subr.mxu0 %v6131_v48 }
  0xca   : > { %1185 = vmatmul.mubr.f32.gmra.mxu0 %v5758_v41 }
  0xcb   : > { %1190 = vmatprep.mubr.f32.mxu0 %v8657_v0  ;;  %5000 = vmatpush3.msra.mxu0 %v6131_v48 }
  0xcc   : > { %1371 = vmatmul.mubr.f32.gmra.mxu1 %v5782_v52 }
  0xcd   : > { %1376 = vmatprep.mubr.f32.mxu1 %v8657_v0 }
  0xce   : > { %1192 = vmatmul.mubr.f32.gmra.mxu0 %v5782_v52  ;;  %v1831_v52 = vand.u32 4294901760, %v1830_v33  ;;  %v6211_v33 = vand.u32 4294901760, %v6195_v60 }
  0xcf   : > { %1197 = vmatprep.mubr.f32.mxu0 %v8657_v0 }
  0xd0   : > { %1378 = vmatmul.mubr.f32.gmra.mxu1 %v5797_v59  ;;  %5049 = vmatprep.subr.mxu1 %v1831_v52  ;;  %8973 = vst [vmem:[#allocation30_spill] sm:$0xff] %v6211_v33 }
  0xd1   : > { %1383 = vmatprep.mubr.f32.mxu1 %v8657_v0  ;;  %5050 = vmatpush3.msra.mxu1 %v1831_v52 }
  0xd2   : > { %1199 = vmatmul.mubr.f32.gmra.mxu0 %v5797_v59  ;;  %5051 = vmatprep.subr.mxu1 %v1838_v12 }
  0xd3   : > { %1204 = vmatprep.mubr.f32.mxu0 %v8657_v0  ;;  %5052 = vmatpush3.msra.mxu1 %v1838_v12  ;;  %v1872_v12 = vsub.f32 %v6195_v60, %v6211_v33 }
  0xd4   : > { %1385 = vmatmul.mubr.f32.gmra.mxu1 %v5811_v3 }
  0xd5   : > { %1390 = vmatprep.mubr.f32.mxu1 %v8657_v0 }
  0xd6   : > { %1206 = vmatmul.mubr.f32.gmra.mxu0 %v5811_v3  ;;  %v6147_v3 = vsub.f32 %v1580_v35, %v6131_v48  ;;  %v1574_v35 = vld [vmem:[#allocation2 + $0x70] sm:$0xff] }
  0xd7   : > { %1211 = vmatprep.mubr.f32.mxu0 %v8657_v0 }
  0xd8   : > { %1392 = vmatmul.mubr.f32.gmra.mxu1 %v5826_v13  ;;  %8960 = vst [vmem:[#allocation17_spill] sm:$0xff] %v6147_v3  ;;  %v6157_v39 = vand.u32 4294901760, %v6147_v3 }
  0xd9   : > { %1397 = vmatprep.mubr.f32.mxu1 %v8657_v0 }
  0xda   : > { %1213 = vmatmul.mubr.f32.gmra.mxu0 %v5826_v13  ;;  %v6150_v13 = vand.u32 4294901760, %v1579_v58  ;;  %8961 = vst [vmem:[#allocation18_spill] sm:$0xff] %v6157_v39  ;;  %v1851_v6 = vsub.f32 %v6147_v3, %v6157_v39 }
  0xdb   : > { %1218 = vmatprep.mubr.f32.mxu0 %v8657_v0 }
  0xdc   : > { %1399 = vmatmul.mubr.f32.gmra.mxu1 %v5832_v15  ;;  %5001 = vmatprep.subr.mxu0 %v6150_v13  ;;  %v1852_v46 = vand.u32 4294901760, %v1851_v6 }
  0xdd   : > { %1404 = vmatprep.mubr.f32.mxu1 %v8657_v0  ;;  %5002 = vmatpush3.msra.mxu0 %v6150_v13 }
  0xde   : > { %1220 = vmatmul.mubr.f32.gmra.mxu0 %v5832_v15  ;;  %v1578_v15 = vld [vmem:[#allocation2 + $0xb0] sm:$0xff] }
  0xdf   : > { %1225 = vmatprep.mubr.f32.mxu0 %v8657_v0  ;;  %v6164_v49 = vand.u32 4294901760, %v1578_v15 }
  0xe0   : > { %1406 = vmatmul.mubr.f32.gmra.mxu1 %v5846_v32 }
  0xe1   : > { %1411 = vmatprep.mubr.f32.mxu1 %v8657_v0  ;;  %v6178_v31 = vsub.f32 %v1578_v15, %v6164_v49  ;;  %5003 = vmatprep.subr.mxu0 %v6164_v49  ;;  %v6226_v15 = vand.u32 4294901760, %v1574_v35 }
  0xe2   : > { %1227 = vmatmul.mubr.f32.gmra.mxu0 %v5846_v32  ;;  %v1844_v32 = vsub.f32 %v6129_v45, %v6144_v2 }
  0xe3   : > { %1232 = vmatprep.mubr.f32.mxu0 %v8657_v0  ;;  %8966 = vst [vmem:[#allocation23_spill] sm:$0xff] %v6178_v31  ;;  %5004 = vmatpush3.msra.mxu0 %v6164_v49  ;;  %v6192_v57 = vand.u32 4294901760, %v6178_v31  ;;  %8977 = vst [vmem:[#allocation34_spill] sm:$0xff] %v6226_v15 }
  0xe4   : > { %1413 = vmatmul.mubr.f32.gmra.mxu1 %v5860_v43  ;;  %5005 = vmatprep.subr.mxu0 %v6180_v36 }
  0xe5   : > { %1418 = vmatprep.mubr.f32.mxu1 %v8657_v0  ;;  %8968 = vst [vmem:[#allocation25_spill] sm:$0xff] %v6192_v57  ;;  %5006 = vmatpush3.msra.mxu0 %v6180_v36 }
  0xe6   : > { %1234 = vmatmul.mubr.f32.gmra.mxu0 %v5860_v43  ;;  %v6162_v43 = vsub.f32 %v1579_v58, %v6150_v13 }
  0xe7   : > { %1239 = vmatprep.mubr.f32.mxu0 %v8657_v0 }
  0xe8   : > { %1420 = vmatmul.mubr.f32.gmra.mxu1 %v5881_v62  ;;  %8963 = vst [vmem:[#allocation20_spill] sm:$0xff] %v6162_v43 }
  0xe9   : > { %1425 = vmatprep.mubr.f32.mxu1 %v8657_v0 }
  0xea   : > { %1241 = vmatmul.mubr.f32.gmra.mxu0 %v5881_v62  ;;  %v1845_v62 = vand.u32 4294901760, %v1844_v32 }
  0xeb   : > { %1246 = vmatprep.mubr.f32.mxu0 %v8657_v0 }
  0xec   : > { %1427 = vmatmul.mubr.f32.gmra.mxu1 %v5895_v14  ;;  %5053 = vmatprep.subr.mxu1 %v1845_v62 }
  0xed   : > { %1432 = vmatprep.mubr.f32.mxu1 %v8657_v0  ;;  %5054 = vmatpush3.msra.mxu1 %v1845_v62  ;;  %v6236_v62 = vand.u32 4294901760, %v6219_v55 }
  0xee   : > { %1248 = vmatmul.mubr.f32.gmra.mxu0 %v5895_v14  ;;  %v6175_v14 = vand.u32 4294901760, %v6162_v43  ;;  %5055 = vmatprep.subr.mxu1 %v1852_v46 }
  0xef   : > { %1253 = vmatprep.mubr.f32.mxu0 %v8657_v0  ;;  %5056 = vmatpush3.msra.mxu1 %v1852_v46  ;;  %8979 = vst [vmem:[#allocation36_spill] sm:$0xff] %v6236_v62 }
  0xf0   : > { %1434 = vmatmul.mubr.f32.gmra.mxu1 %v5908_v37  ;;  %8965 = vst [vmem:[#allocation22_spill] sm:$0xff] %v6175_v14  ;;  %v1858_v54 = vsub.f32 %v6162_v43, %v6175_v14 }
  0xf2   : > { %1255 = vmatmul.mubr.f32.gmra.mxu0 %v5908_v37  ;;  %v1576_v37 = vld [vmem:[#allocation2 + $0x90] sm:$0xff]  ;;  %v1859_v26 = vand.u32 4294901760, %v1858_v54 }
  0xf3   : > { %v560_v44 = vpop.f32.mrf.mxu1  ;;  %v6184_v47 = vand.u32 4294901760, %v1576_v37 }
  0xf4   : > { %5057 = vmatprep.subr.mxu1 %v1859_v26 }
  0xf5   : > { %v6141_v1 = vpop.f32.mrf.mxu1  ;;  %v6203_v22 = vsub.f32 %v1576_v37, %v6184_v47  ;;  %5007 = vmatprep.subr.mxu0 %v6184_v47  ;;  %5058 = vmatpush3.msra.mxu1 %v1859_v26  ;;  %v6240_v37 = vsub.f32 %v1574_v35, %v6226_v15 }
  0xf6   : > { %v313_v30 = vpop.f32.mrf.mxu0  ;;  %8958 = vst [vmem:[#allocation15_spill] sm:$0xff] %v6141_v1  ;;  %5008 = vmatpush3.msra.mxu0 %v6184_v47 }
  0xf7   : > { %v314_v41 = vadd.f32 %v313_v30, %v6109_v20  ;;  %8971 = vst [vmem:[#allocation28_spill] sm:$0xff] %v6203_v22  ;;  %v1865_v30 = vsub.f32 %v6178_v31, %v6192_v57  ;;  %v6216_v52 = vand.u32 4294901760, %v6203_v22  ;;  %5009 = vmatprep.subr.mxu0 %v6205_v10  ;;  %8980 = vst [vmem:[#allocation37_spill] sm:$0xff] %v6240_v37 }
  0xf8   : > { %v6134_v51 = vpop.f32.mrf.mxu0  ;;  %v567_v29 = vpop.f32.mrf.mxu1  ;;  %5010 = vmatpush3.msra.mxu0 %v6205_v10 }
  0xf9   : > { %8957 = vst [vmem:[#allocation14_spill] sm:$0xff] %v6134_v51  ;;  %v6139_v59 = vadd.f32 %v560_v44, %v314_v41  ;;  %8974 = vst [vmem:[#allocation31_spill] sm:$0xff] %v6216_v52  ;;  %v1879_v50 = vsub.f32 %v6203_v22, %v6216_v52  ;;  %5011 = vmatprep.subr.mxu0 %v6226_v15 }
  0xfa   : > { %v324_v11 = vpop.f32.mrf.mxu0  ;;  %v6169_v61 = vpop.f32.mrf.mxu1  ;;  %5012 = vmatpush3.msra.mxu0 %v6226_v15 }
  0xfb   : > { %v325_v28 = vadd.f32 %v324_v11, %v6109_v20  ;;  %8964 = vst [vmem:[#allocation21_spill] sm:$0xff] %v6169_v61  ;;  %v1866_v11 = vand.u32 4294901760, %v1865_v30  ;;  %v1880_v63 = vand.u32 4294901760, %v1879_v50  ;;  %v6252_v30 = vand.u32 4294901760, %v6240_v37 }
  0xfc   : > { %v6159_v40 = vpop.f32.mrf.mxu0  ;;  %v574_v42 = vpop.f32.mrf.mxu1 }
  0xfd   : > { %8962 = vst [vmem:[#allocation19_spill] sm:$0xff] %v6159_v40  ;;  %v6167_v56 = vadd.f32 %v567_v29, %v325_v28  ;;  %v1573_v28 = vld [vmem:[#allocation2 + $0x60] sm:$0xff]  ;;  %5059 = vmatprep.subr.mxu1 %v1866_v11  ;;  %8983 = vst [vmem:[#allocation40_spill] sm:$0xff] %v6252_v30 }
  0xfe   : > { %v335_v9 = vpop.f32.mrf.mxu0  ;;  %v6200_v7 = vpop.f32.mrf.mxu1  ;;  %5060 = vmatpush3.msra.mxu1 %v1866_v11 }
  0xff   : > { %v336_v38 = vadd.f32 %v335_v9, %v6109_v20  ;;  %8970 = vst [vmem:[#allocation27_spill] sm:$0xff] %v6200_v7  ;;  %v1873_v9 = vand.u32 4294901760, %v1872_v12 }
 0x100   : > { %v6187_v53 = vpop.f32.mrf.mxu0  ;;  %v581_v44 = vpop.f32.mrf.mxu1 }
 0x101   : > { %8967 = vst [vmem:[#allocation24_spill] sm:$0xff] %v6187_v53  ;;  %v6198_v4 = vadd.f32 %v574_v42, %v336_v38  ;;  %v6242_v38 = vand.u32 4294901760, %v1573_v28  ;;  %v1572_v42 = vld [vmem:[#allocation2 + $0x50] sm:$0xff]  ;;  %5061 = vmatprep.subr.mxu1 %v1873_v9 }
 0x102   : > { %v346_v17 = vpop.f32.mrf.mxu0  ;;  %v6231_v32 = vpop.f32.mrf.mxu1  ;;  %5062 = vmatpush3.msra.mxu1 %v1873_v9 }
 0x103   : > { %v347_v41 = vadd.f32 %v346_v17, %v6109_v20  ;;  %8978 = vst [vmem:[#allocation35_spill] sm:$0xff] %v6231_v32  ;;  %8981 = vst [vmem:[#allocation38_spill] sm:$0xff] %v6242_v38  ;;  %v1886_v17 = vsub.f32 %v6219_v55, %v6236_v62  ;;  %v6255_v35 = vsub.f32 %v1573_v28, %v6242_v38  ;;  %5013 = vmatprep.subr.mxu0 %v6242_v38 }
 0x104   : > { %v6222_v58 = vpop.f32.mrf.mxu0  ;;  %v588_v54 = vpop.f32.mrf.mxu1  ;;  %5014 = vmatpush3.msra.mxu0 %v6242_v38  ;;  %5063 = vmatprep.subr.mxu1 %v1880_v63  ;;  %v1893_v28 = vsub.f32 %v6240_v37, %v6252_v30 }
 0x105   : > { %8976 = vst [vmem:[#allocation33_spill] sm:$0xff] %v6222_v58  ;;  %v6229_v29 = vadd.f32 %v581_v44, %v347_v41  ;;  %8984 = vst [vmem:[#allocation41_spill] sm:$0xff] %v6255_v35  ;;  %v6257_v41 = vand.u32 4294901760, %v1572_v42  ;;  %v1571_v44 = vld [vmem:[#allocation2 + $0x40] sm:$0xff]  ;;  %v1887_v50 = vand.u32 4294901760, %v1886_v17  ;;  %v6270_v5 = vand.u32 4294901760, %v6255_v35  ;;  %5064 = vmatpush3.msra.mxu1 %v1880_v63 }
 0x106   : > { %v357_v6 = vpop.f32.mrf.mxu0  ;;  %v6262_v12 = vpop.f32.mrf.mxu1  ;;  %v1894_v7 = vand.u32 4294901760, %v1893_v28 }
 0x107   : > { %v358_v46 = vadd.f32 %v357_v6, %v6109_v20  ;;  %8985 = vst [vmem:[#allocation42_spill] sm:$0xff] %v6257_v41  ;;  %8986 = vst [vmem:[#allocation43_spill] sm:$0xff] %v6262_v12  ;;  %v6264_v6 = vand.u32 4294901760, %v1571_v44  ;;  %v6273_v0 = vsub.f32 %v1572_v42, %v6257_v41  ;;  %5015 = vmatprep.subr.mxu0 %v6257_v41  ;;  %5065 = vmatprep.subr.mxu1 %v1887_v50 }
 0x108   : > { %v6249_v26 = vpop.f32.mrf.mxu0  ;;  %8988 = vst [vmem:[#allocation45_spill] sm:$0xff] %v6270_v5  ;;  %5016 = vmatpush3.msra.mxu0 %v6257_v41  ;;  %v1900_v42 = vsub.f32 %v6255_v35, %v6270_v5  ;;  %5066 = vmatpush3.msra.mxu1 %v1887_v50 }
 0x109   : > { %8982 = vst [vmem:[#allocation39_spill] sm:$0xff] %v6249_v26  ;;  %v6260_v11 = vadd.f32 %v588_v54, %v358_v46  ;;  %8987 = vst [vmem:[#allocation44_spill] sm:$0xff] %v6264_v6  ;;  %v1570_v46 = vld [vmem:[#allocation2 + $0x30] sm:$0xff]  ;;  %v595_v54 = vpop.f32.mrf.mxu1  ;;  %v6278_v17 = vsub.f32 %v1571_v44, %v6264_v6  ;;  %v6288_v61 = vand.u32 4294901760, %v6273_v0  ;;  %5017 = vmatprep.subr.mxu0 %v6264_v6  ;;  %5067 = vmatprep.subr.mxu1 %v1894_v7 }
 0x10a   : > { %v368_v21 = vpop.f32.mrf.mxu0  ;;  %8989 = vst [vmem:[#allocation46_spill] sm:$0xff] %v6273_v0  ;;  %v6280_v12 = vand.u32 4294901760, %v1570_v46  ;;  %5018 = vmatpush3.msra.mxu0 %v6264_v6  ;;  %v1901_v58 = vand.u32 4294901760, %v1900_v42  ;;  %5068 = vmatpush3.msra.mxu1 %v1894_v7 }
 0x10b   : > { %v369_v9 = vadd.f32 %v368_v21, %v6109_v20  ;;  %8990 = vst [vmem:[#allocation47_spill] sm:$0xff] %v6278_v17  ;;  %8993 = vst [vmem:[#allocation50_spill] sm:$0xff] %v6288_v61  ;;  %v1569_v21 = vld [vmem:[#allocation2 + $0x20] sm:$0xff]  ;;  %v6293_v44 = vpop.f32.mrf.mxu1  ;;  %v6296_v26 = vand.u32 4294901760, %v6278_v17  ;;  %v1907_v53 = vsub.f32 %v6273_v0, %v6288_v61 }
 0x10c   : > { %8991 = vst [vmem:[#allocation48_spill] sm:$0xff] %v6280_v12  ;;  %v6283_v32 = vpop.f32.mrf.mxu0  ;;  %8994 = vst [vmem:[#allocation51_spill] sm:$0xff] %v6293_v44  ;;  %v6304_v40 = vand.u32 4294901760, %v1569_v21  ;;  %5019 = vmatprep.subr.mxu0 %v6280_v12  ;;  %5069 = vmatprep.subr.mxu1 %v1901_v58 }
 0x10d   : > { %8992 = vst [vmem:[#allocation49_spill] sm:$0xff] %v6283_v32  ;;  %v6291_v63 = vadd.f32 %v595_v54, %v369_v9  ;;  %8995 = vst [vmem:[#allocation52_spill] sm:$0xff] %v6296_v26  ;;  %v6299_v32 = vsub.f32 %v1570_v46, %v6280_v12  ;;  %v1568_v9 = vld [vmem:[#allocation2 + $0x10] sm:$0xff]  ;;  %v602_v54 = vpop.f32.mrf.mxu1  ;;  %v1914_v46 = vsub.f32 %v6278_v17, %v6296_v26  ;;  %5020 = vmatpush3.msra.mxu0 %v6280_v12 }
 0x10e   : > { %v379_v28 = vpop.f32.mrf.mxu0  ;;  %8997 = vst [vmem:[#allocation54_spill] sm:$0xff] %v6304_v40  ;;  %v1908_v1 = vand.u32 4294901760, %v1907_v53  ;;  %v6317_v51 = vsub.f32 %v1569_v21, %v6304_v40  ;;  %v6319_v23 = vand.u32 4294901760, %v1568_v9  ;;  %5021 = vmatprep.subr.mxu0 %v6304_v40  ;;  %5070 = vmatpush3.msra.mxu1 %v1901_v58 }
 0x10f   : > { %8996 = vst [vmem:[#allocation53_spill] sm:$0xff] %v6299_v32  ;;  %v380_v50 = vadd.f32 %v379_v28, %v6109_v20  ;;  %v6311_v44 = vand.u32 4294901760, %v6299_v32  ;;  %v6324_v28 = vpop.f32.mrf.mxu1  ;;  %v1915_v8 = vand.u32 4294901760, %v1914_v46  ;;  %5022 = vmatpush3.msra.mxu0 %v6304_v40 }
 0x110   : > { %v6314_v42 = vpop.f32.mrf.mxu0  ;;  %9000 = vst [vmem:[#allocation57_spill] sm:$0xff] %v6317_v51  ;;  %9001 = vst [vmem:[#allocation58_spill] sm:$0xff] %v6319_v23  ;;  %5071 = vmatprep.subr.mxu1 %v1908_v1  ;;  %v6330_v53 = vand.u32 4294901760, %v6317_v51  ;;  %v6333_v21 = vsub.f32 %v1568_v9, %v6319_v23  ;;  %5023 = vmatprep.subr.mxu0 %v6319_v23 }
 0x111   : > { %8998 = vst [vmem:[#allocation55_spill] sm:$0xff] %v6311_v44  ;;  %8999 = vst [vmem:[#allocation56_spill] sm:$0xff] %v6314_v42  ;;  %v6322_v7 = vadd.f32 %v602_v54, %v380_v50  ;;  %v1921_v26 = vsub.f32 %v6299_v32, %v6311_v44  ;;  %v609_v54 = vpop.f32.mrf.mxu1  ;;  %5072 = vmatpush3.msra.mxu1 %v1908_v1  ;;  %5024 = vmatpush3.msra.mxu0 %v6319_v23 }
 0x112   : > { %9002 = vst [vmem:[#allocation59_spill] sm:$0xff] %v6324_v28  ;;  %v390_v42 = vpop.f32.mrf.mxu0  ;;  %9003 = vst [vmem:[#allocation60_spill] sm:$0xff] %v6330_v53  ;;  %5073 = vmatprep.subr.mxu1 %v1915_v8  ;;  %v1928_v28 = vsub.f32 %v6317_v51, %v6330_v53  ;;  %v6343_v44 = vand.u32 4294901760, %v6333_v21  ;;  %5105 = vmatprep.subr.mxu0 %v6100_v18 }
 0x113   : > { %9004 = vst [vmem:[#allocation61_spill] sm:$0xff] %v6333_v21  ;;  %v391_v50 = vadd.f32 %v390_v42, %v6109_v20  ;;  %v1922_v58 = vand.u32 4294901760, %v1921_v26  ;;  %v6348_v61 = vpop.f32.mrf.mxu1  ;;  %5074 = vmatpush3.msra.mxu1 %v1915_v8 }
 0x114   : > { %v6338_v46 = vpop.f32.mrf.mxu0  ;;  %9006 = vst [vmem:[#allocation63_spill] sm:$0xff] %v6343_v44  ;;  %9007 = vst [vmem:[#allocation64_spill] sm:$0xff] %v6348_v61  ;;  %v1929_v26 = vand.u32 4294901760, %v1928_v28  ;;  %v1935_v42 = vsub.f32 %v6333_v21, %v6343_v44 }
 0x115   : > { %9005 = vst [vmem:[#allocation62_spill] sm:$0xff] %v6338_v46  ;;  %v6346_v9 = vadd.f32 %v609_v54, %v391_v50  ;;  %5075 = vmatprep.subr.mxu1 %v1922_v58  ;;  %v616_v5 = vpop.f32.mrf.mxu1 }
 0x116   : > { %v401_v1 = vpop.f32.mrf.mxu0  ;;  %5076 = vmatpush3.msra.mxu1 %v1922_v58  ;;  %v1936_v30 = vand.u32 4294901760, %v1935_v42 }
 0x117   : > { %v402_v46 = vadd.f32 %v401_v1, %v6109_v20  ;;  %5077 = vmatprep.subr.mxu1 %v1929_v26  ;;  %v6357_v50 = vpop.f32.mrf.mxu1 }
 0x118   : > { %v6353_v53 = vpop.f32.mrf.mxu0  ;;  %9009 = vst [vmem:[#allocation66_spill] sm:$0xff] %v6357_v50  ;;  %5078 = vmatpush3.msra.mxu1 %v1929_v26 }
 0x119   : > { %9008 = vst [vmem:[#allocation65_spill] sm:$0xff] %v6353_v53  ;;  %v6355_v62 = vadd.f32 %v616_v5, %v402_v46  ;;  %5079 = vmatprep.subr.mxu1 %v1936_v30  ;;  %v623_v54 = vpop.f32.mrf.mxu1 }
 0x11a   : > { %v412_v8 = vpop.f32.mrf.mxu0  ;;  %5080 = vmatpush3.msra.mxu1 %v1936_v30 }
 0x11b   : > { %v413_v28 = vadd.f32 %v412_v8, %v6109_v20  ;;  %5161 = vmatprep.subr.mxu1 %v6096_v16  ;;  %v6365_v1 = vpop.f32.mrf.mxu1 }
 0x11c   : > { %v6360_v61 = vpop.f32.mrf.mxu0  ;;  %9011 = vst [vmem:[#allocation68_spill] sm:$0xff] %v6365_v1 }
 0x11d   : > { %9010 = vst [vmem:[#allocation67_spill] sm:$0xff] %v6360_v61  ;;  %v6363_v58 = vadd.f32 %v623_v54, %v413_v28  ;;  %v630_v46 = vpop.f32.mrf.mxu1 }
 0x11e   : > { %v423_v42 = vpop.f32.mrf.mxu0 }
 0x11f   : > { %v424_v5 = vadd.f32 %v423_v42, %v6109_v20  ;;  %v6372_v53 = vpop.f32.mrf.mxu1 }
 0x120   : > { %v6368_v50 = vpop.f32.mrf.mxu0  ;;  %9013 = vst [vmem:[#allocation70_spill] sm:$0xff] %v6372_v53 }
 0x121   : > { %9012 = vst [vmem:[#allocation69_spill] sm:$0xff] %v6368_v50  ;;  %v6370_v26 = vadd.f32 %v630_v46, %v424_v5  ;;  %v637_v61 = vpop.f32.mrf.mxu1 }
 0x122   : > { %v434_v8 = vpop.f32.mrf.mxu0 }
 0x123   : > { %v435_v30 = vadd.f32 %v434_v8, %v6109_v20  ;;  %v6379_v54 = vpop.f32.mrf.mxu1 }
 0x124   : > { %v6375_v44 = vpop.f32.mrf.mxu0  ;;  %9015 = vst [vmem:[#allocation72_spill] sm:$0xff] %v6379_v54 }
 0x125   : > { %9014 = vst [vmem:[#allocation71_spill] sm:$0xff] %v6375_v44  ;;  %v6377_v28 = vadd.f32 %v637_v61, %v435_v30  ;;  %v644_v52 = vpop.f32.mrf.mxu1 }
 0x126   : > { %v445_v1 = vpop.f32.mrf.mxu0 }
 0x127   : > { %v446_v42 = vadd.f32 %v445_v1, %v6109_v20  ;;  %v6386_v46 = vpop.f32.mrf.mxu1 }
 0x128   : > { %v6382_v33 = vpop.f32.mrf.mxu0  ;;  %9017 = vst [vmem:[#allocation74_spill] sm:$0xff] %v6386_v46 }
 0x129   : > { %9016 = vst [vmem:[#allocation73_spill] sm:$0xff] %v6382_v33  ;;  %v6384_v5 = vadd.f32 %v644_v52, %v446_v42  ;;  %v651_v50 = vpop.f32.mrf.mxu1 }
 0x12a   : > { %v456_v53 = vpop.f32.mrf.mxu0 }
 0x12b   : > { %v457_v8 = vadd.f32 %v456_v53, %v6109_v20  ;;  %v6393_v30 = vpop.f32.mrf.mxu1 }
 0x12c   : > { %v6389_v57 = vpop.f32.mrf.mxu0  ;;  %9019 = vst [vmem:[#allocation76_spill] sm:$0xff] %v6393_v30 }
 0x12d   : > { %9018 = vst [vmem:[#allocation75_spill] sm:$0xff] %v6389_v57  ;;  %v6391_v61 = vadd.f32 %v651_v50, %v457_v8  ;;  %v658_v44 = vpop.f32.mrf.mxu1 }
 0x12e   : > { %v467_v54 = vpop.f32.mrf.mxu0 }
 0x12f   : > { %v468_v1 = vadd.f32 %v467_v54, %v6109_v20  ;;  %v6400_v42 = vpop.f32.mrf.mxu1 }
 0x130   : > { %v6396_v14 = vpop.f32.mrf.mxu0  ;;  %9021 = vst [vmem:[#allocation78_spill] sm:$0xff] %v6400_v42 }
 0x131   : > { %9020 = vst [vmem:[#allocation77_spill] sm:$0xff] %v6396_v14  ;;  %v6398_v52 = vadd.f32 %v658_v44, %v468_v1  ;;  %v665_v33 = vpop.f32.mrf.mxu1 }
 0x132   : > { %v478_v46 = vpop.f32.mrf.mxu0 }
 0x133   : > { %v479_v53 = vadd.f32 %v478_v46, %v6109_v20  ;;  %v6407_v8 = vpop.f32.mrf.mxu1 }
 0x134   : > { %v6403_v39 = vpop.f32.mrf.mxu0  ;;  %9024 = vst [vmem:[#allocation81_spill] sm:$0xff] %v6407_v8 }
 0x135   : > { %9022 = vst [vmem:[#allocation79_spill] sm:$0xff] %v6403_v39  ;;  %v6405_v50 = vadd.f32 %v665_v33, %v479_v53  ;;  %v6409_v57 = vpop.f32.mrf.mxu1 }
 0x136   : > { %v742_v30 = vpop.f32.mrf.mxu0 }
 0x137   : > { %9023 = vst [vmem:[#allocation80_spill] sm:$0xff] %v6405_v50  ;;  %v6413_v14 = vpop.f32.mrf.mxu1  ;;  %v743_v3 = vadd.f32 %v742_v30, %v6139_v59 }
 0x138   : > { %v6411_v54 = vpop.f32.mrf.mxu0  ;;  %9026 = vst [vmem:[#allocation83_spill] sm:$0xff] %v6413_v14 }
 0x139   : > { %9025 = vst [vmem:[#allocation82_spill] sm:$0xff] %v6411_v54  ;;  %v6415_v1 = vpop.f32.mrf.mxu1 }
 0x13a   : > { %v750_v44 = vpop.f32.mrf.mxu0 }
 0x13b   : > { %v6419_v20 = vpop.f32.mrf.mxu1 }
 0x13c   : > { %v6417_v42 = vpop.f32.mrf.mxu0  ;;  %9028 = vst [vmem:[#allocation85_spill] sm:$0xff] %v6419_v20 }
 0x13d   : > { %9027 = vst [vmem:[#allocation84_spill] sm:$0xff] %v6417_v42  ;;  %v6423_v33 = vpop.f32.mrf.mxu1 }
 0x13e   : > { %v6421_v46 = vpop.f32.mrf.mxu0 }
 0x13f   : > { %v6427_v8 = vpop.f32.mrf.mxu1 }
 0x140   : > { %v6425_v53 = vpop.f32.mrf.mxu0  ;;  %9030 = vst [vmem:[#allocation87_spill] sm:$0xff] %v6427_v8 }
 0x141   : > { %9029 = vst [vmem:[#allocation86_spill] sm:$0xff] %v6425_v53  ;;  %v6431_v54 = vpop.f32.mrf.mxu1 }
 0x142   : > { %v6429_v39 = vpop.f32.mrf.mxu0 }
 0x143   : > { %v6435_v2 = vpop.f32.mrf.mxu1 }
 0x144   : > { %v6433_v14 = vpop.f32.mrf.mxu0  ;;  %9032 = vst [vmem:[#allocation89_spill] sm:$0xff] %v6435_v2 }
 0x145   : > { %9031 = vst [vmem:[#allocation88_spill] sm:$0xff] %v6433_v14  ;;  %v6439_v42 = vpop.f32.mrf.mxu1 }
 0x146   : > { %v6437_v34 = vpop.f32.mrf.mxu0 }
 0x147   : > { %v6443_v24 = vpop.f32.mrf.mxu1 }
 0x148   : > { %v6441_v20 = vpop.f32.mrf.mxu0  ;;  %9034 = vst [vmem:[#allocation91_spill] sm:$0xff] %v6443_v24 }
 0x149   : > { %9033 = vst [vmem:[#allocation90_spill] sm:$0xff] %v6441_v20  ;;  %v6447_v53 = vpop.f32.mrf.mxu1 }
 0x14a   : > { %v6445_v21 = vpop.f32.mrf.mxu0 }
 0x14b   : > { %v6451_v51 = vpop.f32.mrf.mxu1 }
 0x14c   : > { %v6449_v8 = vpop.f32.mrf.mxu0  ;;  %9036 = vst [vmem:[#allocation93_spill] sm:$0xff] %v6451_v51 }
 0x14d   : > { %9035 = vst [vmem:[#allocation92_spill] sm:$0xff] %v6449_v8  ;;  %v6455_v14 = vpop.f32.mrf.mxu1 }
 0x14e   : > { %v6453_v32 = vpop.f32.mrf.mxu0 }
 0x14f   : > { %v6459_v17 = vpop.f32.mrf.mxu1 }
 0x150   : > { %v6457_v2 = vpop.f32.mrf.mxu0  ;;  %9038 = vst [vmem:[#allocation95_spill] sm:$0xff] %v6459_v17 }
 0x151   : > { %9037 = vst [vmem:[#allocation94_spill] sm:$0xff] %v6457_v2  ;;  %v6463_v20 = vpop.f32.mrf.mxu1 }
 0x152   : > { %v6461_v0 = vpop.f32.mrf.mxu0 }
 0x153   : > { %v6467_v23 = vpop.f32.mrf.mxu1 }
 0x154   : > { %v6465_v24 = vpop.f32.mrf.mxu0  ;;  %9040 = vst [vmem:[#allocation97_spill] sm:$0xff] %v6467_v23 }
 0x155   : > { %9039 = vst [vmem:[#allocation96_spill] sm:$0xff] %v6465_v24  ;;  %v6471_v8 = vpop.f32.mrf.mxu1 }
 0x156   : > { %v6469_v35 = vpop.f32.mrf.mxu0 }
 0x157   : > { %v6475_v40 = vpop.f32.mrf.mxu1 }
 0x158   : > { %v6473_v51 = vpop.f32.mrf.mxu0  ;;  %9042 = vst [vmem:[#allocation99_spill] sm:$0xff] %v6475_v40 }
 0x159   : > { %9041 = vst [vmem:[#allocation98_spill] sm:$0xff] %v6473_v51  ;;  %v6479_v2 = vpop.f32.mrf.mxu1 }
 0x15a   : > { %v6477_v37 = vpop.f32.mrf.mxu0 }
 0x15b   : > { %v6483_v12 = vpop.f32.mrf.mxu1 }
 0x15c   : > { %v6481_v17 = vpop.f32.mrf.mxu0  ;;  %9044 = vst [vmem:[#allocation101_spill] sm:$0xff] %v6483_v12 }
 0x15d   : > { %9043 = vst [vmem:[#allocation100_spill] sm:$0xff] %v6481_v17  ;;  %v6487_v24 = vpop.f32.mrf.mxu1 }
 0x15e   : > { %v6485_v55 = vpop.f32.mrf.mxu0 }
 0x15f   : > { %v6491_v6 = vpop.f32.mrf.mxu1 }
 0x160   : > { %v6489_v23 = vpop.f32.mrf.mxu0  ;;  %9046 = vst [vmem:[#allocation103_spill] sm:$0xff] %v6491_v6 }
 0x161   : > { %9045 = vst [vmem:[#allocation102_spill] sm:$0xff] %v6489_v23  ;;  %v6495_v51 = vpop.f32.mrf.mxu1 }
 0x162   : > { %v6493_v22 = vpop.f32.mrf.mxu0 }
 0x163   : > { %v6499_v41 = vpop.f32.mrf.mxu1 }
 0x164   : > { %v6497_v40 = vpop.f32.mrf.mxu0  ;;  %9048 = vst [vmem:[#allocation105_spill] sm:$0xff] %v6499_v41 }
 0x165   : > { %9047 = vst [vmem:[#allocation104_spill] sm:$0xff] %v6497_v40  ;;  %v6503_v17 = vpop.f32.mrf.mxu1 }
 0x166   : > { %v6501_v60 = vpop.f32.mrf.mxu0 }
 0x167   : > { %v6507_v38 = vpop.f32.mrf.mxu1 }
 0x168   : > { %v6505_v12 = vpop.f32.mrf.mxu0  ;;  %9050 = vst [vmem:[#allocation107_spill] sm:$0xff] %v6507_v38 }
 0x169   : > { %9049 = vst [vmem:[#allocation106_spill] sm:$0xff] %v6505_v12  ;;  %v6511_v23 = vpop.f32.mrf.mxu1 }
 0x16a   : > { %v6509_v31 = vpop.f32.mrf.mxu0  ;;  %9051 = vst [vmem:[#allocation108_spill] sm:$0xff] %v6511_v23 }
 0x16b   : > { %v6515_v43 = vpop.f32.mrf.mxu1 }
 0x16c   : > { %v6513_v6 = vpop.f32.mrf.mxu0  ;;  %9053 = vst [vmem:[#allocation110_spill] sm:$0xff] %v6515_v43  ;;  %v751_v43 = vadd.f32 %v750_v44, %v6167_v56 }
 0x16d   : > { %9052 = vst [vmem:[#allocation109_spill] sm:$0xff] %v6513_v6  ;;  %v6519_v40 = vpop.f32.mrf.mxu1  ;;  %v939_v6 = vadd.f32 %v6409_v57, %v743_v3 }
 0x16e   : > { %v6517_v15 = vpop.f32.mrf.mxu0  ;;  %9054 = vst [vmem:[#allocation111_spill] sm:$0xff] %v6519_v40  ;;  %v948_v59 = vadd.f32 %v6415_v1, %v751_v43 }
 0x16f   : > { %v6524_v50 = vpop.f32.mrf.mxu1 }
 0x170   : > { %v6521_v41 = vpop.f32.mrf.mxu0  ;;  %9056 = vst [vmem:[#allocation113_spill] sm:$0xff] %v6524_v50 }
 0x171   : > { %9055 = vst [vmem:[#allocation112_spill] sm:$0xff] %v6521_v41  ;;  %v6528_v38 = vpop.f32.mrf.mxu1 }
 0x172   : > { %v6526_v12 = vpop.f32.mrf.mxu0  ;;  %9057 = vst [vmem:[#allocation114_spill] sm:$0xff] %v6528_v38 }
 0x173   : > { %v6534_v10 = vpop.f32.mrf.mxu1 }
 0x174   : > { %v6530_v45 = vpop.f32.mrf.mxu0  ;;  %9059 = vst [vmem:[#allocation116_spill] sm:$0xff] %v6534_v10 }
 0x175   : > { %9058 = vst [vmem:[#allocation115_spill] sm:$0xff] %v6530_v45  ;;  %v1330_v23 = vpop.f32.mrf.mxu1  ;;  %v759_v45 = vadd.f32 %v6421_v46, %v6198_v4 }
 0x176   : > { %v1151_v25 = vpop.f32.mrf.mxu0 }
 0x177   : > { %v1152_v40 = vadd.f32 %v1151_v25, %v939_v6  ;;  %v6541_v50 = vpop.f32.mrf.mxu1  ;;  %v767_v25 = vadd.f32 %v6429_v39, %v6229_v29  ;;  %v775_v39 = vadd.f32 %v6437_v34, %v6260_v11  ;;  %v783_v34 = vadd.f32 %v6445_v21, %v6291_v63 }
 0x178   : > { %v6536_v41 = vpop.f32.mrf.mxu0  ;;  %9061 = vst [vmem:[#allocation118_spill] sm:$0xff] %v6541_v50  ;;  %v2892_v50 = vld [vmem:[#allocation2 + $0x138] sm:$0xff] }
 0x179   : > { %9060 = vst [vmem:[#allocation117_spill] sm:$0xff] %v6536_v41  ;;  %v6539_v30 = vadd.f32 %v1330_v23, %v1152_v40  ;;  %v1337_v57 = vpop.f32.mrf.mxu1  ;;  %v957_v40 = vadd.f32 %v6423_v33, %v759_v45 }
 0x17a   : > { %v1158_v38 = vpop.f32.mrf.mxu0 }
 0x17b   : > { %v1440_v3 = vmin.f32 %v6539_v30, 0.0  ;;  %v1159_v56 = vadd.f32 %v1158_v38, %v948_v59  ;;  %v6552_v23 = vpop.f32.mrf.mxu1  ;;  %v966_v59 = vadd.f32 %v6431_v54, %v767_v25  ;;  %vm1520_vm1 = vcmp.gt.f32.partialorder %v6539_v30, 0.0 }
 0x17c   : > { %v6546_v44 = vpop.f32.mrf.mxu0  ;;  %9063 = vst [vmem:[#allocation120_spill] sm:$0xff] %v6552_v23 }
 0x17d   : > { %9062 = vst [vmem:[#allocation119_spill] sm:$0xff] %v6546_v44  ;;  %v1456_v6 = vmul.f32 1.442695, %v1440_v3  ;;  %v6550_v10 = vadd.f32 %v1337_v57, %v1159_v56  ;;  %v1344_v1 = vpop.f32.mrf.mxu1 }
 0x17e   : > { %v1165_v43 = vpop.f32.mrf.mxu0 }
 0x17f   : > { %5384 = vpow2.f32 %v1456_v6  ;;  %v1441_v4 = vmin.f32 %v6550_v10, 0.0  ;;  %v1166_v46 = vadd.f32 %v1165_v43, %v957_v40  ;;  %v6561_v3 = vpop.f32.mrf.mxu1  ;;  %v975_v40 = vadd.f32 %v6439_v42, %v775_v39 }
 0x180   : > { %v6556_v38 = vpop.f32.mrf.mxu0  ;;  %9065 = vst [vmem:[#allocation122_spill] sm:$0xff] %v6561_v3  ;;  %vm1521_vm2 = vcmp.gt.f32.partialorder %v6550_v10, 0.0 }
 0x181   : > { %9064 = vst [vmem:[#allocation121_spill] sm:$0xff] %v6556_v38  ;;  %v1458_v29 = vmul.f32 1.442695, %v1441_v4  ;;  %v6563_v56 = vadd.f32 %v1344_v1, %v1166_v46  ;;  %v1351_v33 = vpop.f32.mrf.mxu1 }
 0x182   : > { %v1172_v57 = vpop.f32.mrf.mxu0 }
 0x183   : > { %5386 = vpow2.f32 %v1458_v29  ;;  %v1173_v45 = vadd.f32 %v1172_v57, %v966_v59  ;;  %v1442_v6 = vmin.f32 %v6563_v56, 0.0  ;;  %v6571_v54 = vpop.f32.mrf.mxu1  ;;  %v791_v29 = vadd.f32 %v6453_v32, %v6322_v7 }
 0x184   : > { %v6566_v23 = vpop.f32.mrf.mxu0  ;;  %9067 = vst [vmem:[#allocation124_spill] sm:$0xff] %v6571_v54  ;;  %vm1522_vm3 = vcmp.gt.f32.partialorder %v6563_v56, 0.0 }
 0x185   : > { %9066 = vst [vmem:[#allocation123_spill] sm:$0xff] %v6566_v23  ;;  %v6569_v43 = vadd.f32 %v1351_v33, %v1173_v45  ;;  %v1460_v11 = vmul.f32 1.442695, %v1442_v6  ;;  %v1358_v46 = vpop.f32.mrf.mxu1  ;;  %v984_v45 = vadd.f32 %v6447_v53, %v783_v34 }
 0x186   : > { %v1179_v25 = vpop.f32.mrf.mxu0 }
 0x187   : > { %v1443_v4 = vmin.f32 %v6569_v43, 0.0  ;;  %v1180_v1 = vadd.f32 %v1179_v25, %v975_v40  ;;  %5388 = vpow2.f32 %v1460_v11  ;;  %v6582_v57 = vpop.f32.mrf.mxu1  ;;  %v993_v25 = vadd.f32 %v6455_v14, %v791_v29 }
 0x188   : > { %v6576_v59 = vpop.f32.mrf.mxu0  ;;  %9069 = vst [vmem:[#allocation126_spill] sm:$0xff] %v6582_v57  ;;  %v807_v29 = vadd.f32 %v6469_v35, %v6355_v62  ;;  %vm1523_vm4 = vcmp.gt.f32.partialorder %v6569_v43, 0.0 }
 0x189   : > { %9068 = vst [vmem:[#allocation125_spill] sm:$0xff] %v6576_v59  ;;  %v1462_v42 = vmul.f32 1.442695, %v1443_v4  ;;  %v6580_v39 = vadd.f32 %v1358_v46, %v1180_v1  ;;  %v1365_v33 = vpop.f32.mrf.mxu1  ;;  %v799_v4 = vadd.f32 %v6461_v0, %v6346_v9 }
 0x18a   : > { %v1186_v63 = vpop.f32.mrf.mxu0 }
 0x18b   : > { %5390 = vpow2.f32 %v1462_v42  ;;  %v1444_v21 = vmin.f32 %v6580_v39, 0.0  ;;  %v1187_v40 = vadd.f32 %v1186_v63, %v984_v45  ;;  %v6589_v7 = vpop.f32.mrf.mxu1  ;;  %vm1524_vm5 = vcmp.gt.f32.partialorder %v6580_v39, 0.0 }
 0x18c   : > { %v5385_v6 = vpop.eup %5384  ;;  %v6586_v11 = vpop.f32.mrf.mxu0  ;;  %9071 = vst [vmem:[#allocation128_spill] sm:$0xff] %v6589_v7  ;;  %v9112_v7 = vld [vmem:[#allocation41_spill] sm:$0xff] }
 0x18d   : > { %9070 = vst [vmem:[#allocation127_spill] sm:$0xff] %v6586_v11  ;;  %v4763_v59 = vadd.f32 -1.0, %v5385_v6  ;;  %v1464_v32 = vmul.f32 1.442695, %v1444_v21  ;;  %v6593_v1 = vadd.f32 %v1365_v33, %v1187_v40  ;;  %v1372_v42 = vpop.f32.mrf.mxu1  ;;  %v9115_v11 = vld [vmem:[#allocation47_spill] sm:$0xff] }
 0x18e   : > { %v1193_v53 = vpop.f32.mrf.mxu0 }
 0x18f   : > { %v1504_v34 = vmul.f32 1.6732632, %v4763_v59  ;;  %5392 = vpow2.f32 %v1464_v32  ;;  %v1194_v46 = vadd.f32 %v1193_v53, %v993_v25  ;;  %v1445_v45 = vmin.f32 %v6593_v1, 0.0  ;;  %v6604_v21 = vpop.f32.mrf.mxu1 }
 0x190   : > { %v5387_v57 = vpop.eup %5386  ;;  %v6597_v14 = vpop.f32.mrf.mxu0  ;;  %9073 = vst [vmem:[#allocation130_spill] sm:$0xff] %v6604_v21  ;;  %v1002_v59 = vadd.f32 %v6463_v20, %v799_v4  ;;  %v815_v25 = vadd.f32 %v6477_v37, %v6363_v58  ;;  %v1011_v20 = vadd.f32 %v6471_v8, %v807_v29  ;;  %v823_v4 = vadd.f32 %v6485_v55, %v6370_v26 }
 0x191   : > { %9072 = vst [vmem:[#allocation129_spill] sm:$0xff] %v6597_v14  ;;  %v1536_v63 = vsel %vm1520_vm1, %v6539_v30, %v1504_v34  ;;  %v4764_v0 = vadd.f32 -1.0, %v5387_v57  ;;  %v6602_v9 = vadd.f32 %v1372_v42, %v1194_v46  ;;  %v1466_v6 = vmul.f32 1.442695, %v1445_v45  ;;  %v1379_v14 = vpop.f32.mrf.mxu1 }
 0x192   : > { %v1552_v33 = vmul.f32 1.050701, %v1536_v63  ;;  %v1200_v40 = vpop.f32.mrf.mxu0  ;;  %vm1525_vm6 = vcmp.gt.f32.partialorder %v6593_v1, 0.0 }
 0x193   : > { %v1505_v32 = vmul.f32 1.6732632, %v4764_v0  ;;  %v1446_v53 = vmin.f32 %v6602_v9, 0.0  ;;  %5394 = vpow2.f32 %v1466_v6  ;;  %v1201_v35 = vadd.f32 %v1200_v40, %v1002_v59  ;;  %v6619_v34 = vpop.f32.mrf.mxu1 }
 0x194   : > { %v6610_v62 = vand.u32 4294901760, %v1552_v33  ;;  %v6613_v30 = vpop.f32.mrf.mxu0  ;;  %v5389_v57 = vpop.eup %5388  ;;  %9075 = vst [vmem:[#allocation132_spill] sm:$0xff] %v6619_v34  ;;  %v1020_v0 = vadd.f32 %v6479_v2, %v815_v25  ;;  %vm1526_vm7 = vcmp.gt.f32.partialorder %v6602_v9, 0.0 }
 0x195   : > { %9074 = vst [vmem:[#allocation131_spill] sm:$0xff] %v6613_v30  ;;  %v1537_v37 = vsel %vm1521_vm2, %v6550_v10, %v1505_v32  ;;  %v1468_v58 = vmul.f32 1.442695, %v1446_v53  ;;  %v4765_v42 = vadd.f32 -1.0, %v5389_v57  ;;  %v6621_v45 = vadd.f32 %v1379_v14, %v1201_v35  ;;  %v1386_v8 = vpop.f32.mrf.mxu1  ;;  %v9111_v30 = vld [vmem:[#allocation54_spill] sm:$0xff] }
 0x196   : > { %v1553_v46 = vmul.f32 1.050701, %v1537_v37  ;;  %v1207_v63 = vpop.f32.mrf.mxu0  ;;  %5081 = vmatprep.mubr.f32.mxu1 %v6610_v62  ;;  %v6626_v55 = vsub.f32 %v1552_v33, %v6610_v62  ;;  %v1029_v14 = vadd.f32 %v6487_v24, %v823_v4  ;;  %v831_v33 = vadd.f32 %v6493_v22, %v6377_v28 }
 0x197   : > { %5396 = vpow2.f32 %v1468_v58  ;;  %v1208_v59 = vadd.f32 %v1207_v63, %v1011_v20  ;;  %v1506_v26 = vmul.f32 1.6732632, %v4765_v42  ;;  %v1447_v6 = vmin.f32 %v6621_v45, 0.0  ;;  %v6637_v25 = vpop.f32.mrf.mxu1 }
 0x198   : > { %v5391_v29 = vpop.eup %5390  ;;  %v6628_v10 = vand.u32 4294901760, %v1553_v46  ;;  %v6631_v40 = vpop.f32.mrf.mxu0  ;;  %9077 = vst [vmem:[#allocation134_spill] sm:$0xff] %v6637_v25  ;;  %vm1527_vm8 = vcmp.gt.f32.partialorder %v6621_v45, 0.0  ;;  %v9104_v25 = vld [vmem:[#allocation42_spill] sm:$0xff] }
 0x199   : > { %9076 = vst [vmem:[#allocation133_spill] sm:$0xff] %v6631_v40  ;;  %v4766_v32 = vadd.f32 -1.0, %v5391_v29  ;;  %v6635_v2 = vadd.f32 %v1386_v8, %v1208_v59  ;;  %v1538_v35 = vsel %vm1522_vm3, %v6563_v56, %v1506_v26  ;;  %v1470_v57 = vmul.f32 1.442695, %v1447_v6  ;;  %v1393_v58 = vpop.f32.mrf.mxu1 }
 0x19a   : > { %v6642_v53 = vsub.f32 %v1553_v46, %v6628_v10  ;;  %v1214_v20 = vpop.f32.mrf.mxu0  ;;  %5082 = vmatmul.mubr.f32.vlgmr.msra.gmra.mxu1 %v6628_v10  ;;  %v1554_v24 = vmul.f32 1.050701, %v1538_v35  ;;  %v8741_v56 = vand.u32 4294901760, %v6626_v55  ;;  %v1038_v35 = vadd.f32 %v6495_v51, %v831_v33 }
 0x19b   : > { %v1507_v4 = vmul.f32 1.6732632, %v4766_v32  ;;  %v1448_v37 = vmin.f32 %v6635_v2, 0.0  ;;  %5162 = vmatpush3.msra.mxu1 %v6096_v16  ;;  %5398 = vpow2.f32 %v1470_v57  ;;  %v1215_v28 = vadd.f32 %v1214_v20, %v1020_v0  ;;  %v6657_v26 = vpop.f32.mrf.mxu1 }
 0x19c   : > { %v5393_v42 = vpop.eup %5392  ;;  %v8740_v22 = vand.u32 4294901760, %v6642_v53  ;;  %v6650_v46 = vpop.f32.mrf.mxu0  ;;  %5163 = vmatprep.subr.mxu1 %v6102_v19  ;;  %v6654_v63 = vand.u32 4294901760, %v1554_v24  ;;  %9079 = vst [vmem:[#allocation136_spill] sm:$0xff] %v6657_v26  ;;  %vm1528_vm9 = vcmp.gt.f32.partialorder %v6635_v2, 0.0 }
 0x19d   : > { %9078 = vst [vmem:[#allocation135_spill] sm:$0xff] %v6650_v46  ;;  %v1539_v59 = vsel %vm1523_vm4, %v6569_v43, %v1507_v4  ;;  %v4767_v8 = vadd.f32 -1.0, %v5393_v42  ;;  %v1472_v29 = vmul.f32 1.442695, %v1448_v37  ;;  %5164 = vmatpush3.msra.mxu1 %v6102_v19  ;;  %v6660_v32 = vadd.f32 %v1393_v58, %v1215_v28  ;;  %v1400_v43 = vpop.f32.mrf.mxu1  ;;  %v9100_v46 = vld [vmem:[#allocation23_spill] sm:$0xff] }
 0x19e   : > { %v1555_v6 = vmul.f32 1.050701, %v1539_v59  ;;  %v1221_v0 = vpop.f32.mrf.mxu0  ;;  %5165 = vmatprep.subr.mxu1 %v6119_v27  ;;  %5084 = vmatprep.mubr.f32.mxu1 %v6654_v63  ;;  %v839_v4 = vadd.f32 %v6501_v60, %v6384_v5  ;;  %v1669_v60 = vsub.f32 %v6626_v55, %v8741_v56  ;;  %v6688_v59 = vsub.f32 %v1554_v24, %v6654_v63 }
 0x19f   : > { %v1508_v57 = vmul.f32 1.6732632, %v4767_v8  ;;  %5400 = vpow2.f32 %v1472_v29  ;;  %v1222_v20 = vadd.f32 %v1221_v0, %v1029_v14  ;;  %5166 = vmatpush3.msra.mxu1 %v6119_v27  ;;  %v1449_v58 = vmin.f32 %v6660_v32, 0.0  ;;  %v6684_v28 = vpop.f32.mrf.mxu1 }
 0x1a0   : > { %v6668_v37 = vand.u32 4294901760, %v1555_v6  ;;  %v6672_v42 = vpop.f32.mrf.mxu0  ;;  %5167 = vmatprep.subr.mxu1 %v6131_v48  ;;  %v5395_v51 = vpop.eup %5394  ;;  %v1679_v14 = vsub.f32 %v6642_v53, %v8740_v22  ;;  %9081 = vst [vmem:[#allocation138_spill] sm:$0xff] %v6684_v28  ;;  %v1047_v26 = vadd.f32 %v6503_v17, %v839_v4  ;;  %vm1529_vm10 = vcmp.gt.f32.partialorder %v6660_v32, 0.0 }
 0x1a1   : > { %9080 = vst [vmem:[#allocation137_spill] sm:$0xff] %v6672_v42  ;;  %v1540_v33 = vsel %vm1524_vm5, %v6580_v39, %v1508_v57  ;;  %v6682_v5 = vadd.f32 %v1400_v43, %v1222_v20  ;;  %5168 = vmatpush3.msra.mxu1 %v6131_v48  ;;  %v4768_v29 = vadd.f32 -1.0, %v5395_v51  ;;  %v1474_v0 = vmul.f32 1.442695, %v1449_v58  ;;  %v1407_v43 = vpop.f32.mrf.mxu1 }
 0x1a2   : > { %v6690_v8 = vmul.f32 1.050701, %v1540_v33  ;;  %v1228_v22 = vpop.f32.mrf.mxu0  ;;  %5085 = vmatmul.mubr.f32.gmra.mxu1 %v6668_v37  ;;  %5169 = vmatprep.subr.mxu1 %v6150_v13  ;;  %v847_v39 = vadd.f32 %v6509_v31, %v6391_v61  ;;  %v1670_v57 = vand.u32 4294901760, %v1669_v60  ;;  %v6706_v31 = vsub.f32 %v1555_v6, %v6668_v37 }
 0x1a3   : > { %v1450_v20 = vmin.f32 %v6682_v5, 0.0  ;;  %5170 = vmatpush3.msra.mxu1 %v6150_v13  ;;  %v1509_v58 = vmul.f32 1.6732632, %v4768_v29  ;;  %5402 = vpow2.f32 %v1474_v0  ;;  %v1229_v33 = vadd.f32 %v1228_v22, %v1038_v35  ;;  %v6708_v42 = vpop.f32.mrf.mxu1 }
 0x1a4   : > { %v5397_v24 = vpop.eup %5396  ;;  %v6700_v51 = vand.u32 4294901760, %v6690_v8  ;;  %v6702_v56 = vpop.f32.mrf.mxu0  ;;  %5171 = vmatprep.subr.mxu1 %v6164_v49  ;;  %5025 = vmatprep.mubr.f32.mxu0 %v1670_v57  ;;  %v1680_v28 = vand.u32 4294901760, %v1679_v14  ;;  %9083 = vst [vmem:[#allocation140_spill] sm:$0xff] %v6708_v42  ;;  %v8742_v6 = vand.u32 4294901760, %v6688_v59  ;;  %v855_v14 = vadd.f32 %v6517_v15, %v6398_v52  ;;  %v9085_v52 = vld [vmem:[#allocation108_spill] sm:$0xff] }
 0x1a5   : > { %9082 = vst [vmem:[#allocation139_spill] sm:$0xff] %v6702_v56  ;;  %v4769_v61 = vadd.f32 -1.0, %v5397_v24  ;;  %v1476_v60 = vmul.f32 1.442695, %v1450_v20  ;;  %5172 = vmatpush3.msra.mxu1 %v6164_v49  ;;  %v1541_v22 = vsel %vm1525_vm6, %v6593_v1, %v1509_v58  ;;  %v6715_v35 = vadd.f32 %v1407_v43, %v1229_v33  ;;  %v1414_v17 = vpop.f32.mrf.mxu1 }
 0x1a6   : > { %v1235_v29 = vpop.f32.mrf.mxu0  ;;  %5087 = vmatprep.mubr.f32.mxu1 %v6700_v51  ;;  %5173 = vmatprep.subr.mxu1 %v6180_v36  ;;  %v1557_v0 = vmul.f32 1.050701, %v1541_v22  ;;  %v1689_v20 = vsub.f32 %v6688_v59, %v8742_v6  ;;  %vm1530_vm11 = vcmp.gt.f32.partialorder %v6682_v5, 0.0 }
 0x1a7   : > { %v1510_v57 = vmul.f32 1.6732632, %v4769_v61  ;;  %5404 = vpow2.f32 %v1476_v60  ;;  %5026 = vmatmul.mubr.f32.vlgmr.msra.gmra.mxu0 %v1680_v28  ;;  %5174 = vmatpush3.msra.mxu1 %v6180_v36  ;;  %v1451_v1 = vmin.f32 %v6715_v35, 0.0  ;;  %v1236_v4 = vadd.f32 %v1235_v29, %v1047_v26  ;;  %v6736_v33 = vpop.f32.mrf.mxu1  ;;  %v9087_v61 = vld [vmem:[#allocation11_spill] sm:$0xff] }
 0x1a8   : > { %v6728_v43 = vpop.f32.mrf.mxu0  ;;  %5106 = vmatpush3.msra.mxu0 %v6100_v18  ;;  %5175 = vmatprep.subr.mxu1 %v6184_v47  ;;  %v5399_v15 = vpop.eup %5398  ;;  %v1056_v28 = vadd.f32 %v9085_v52, %v847_v39  ;;  %v6733_v24 = vand.u32 4294901760, %v1557_v0  ;;  %9086 = vst [vmem:[#allocation108_spill] sm:$0xff] %v6736_v33  ;;  %v1690_v29 = vand.u32 4294901760, %v1689_v20  ;;  %v9088_v39 = vld [vmem:[#allocation29_spill] sm:$0xff]  ;;  %v9089_v52 = vld [vmem:[#allocation111_spill] sm:$0xff]  ;;  %vm1531_vm12 = vcmp.gt.f32.partialorder %v6715_v35, 0.0 }
 0x1a9   : > { %9084 = vst [vmem:[#allocation141_spill] sm:$0xff] %v6728_v43  ;;  %v1542_v58 = vsel %vm1526_vm7, %v6602_v9, %v1510_v57  ;;  %5107 = vmatprep.subr.mxu0 %v9087_v61  ;;  %5176 = vmatpush3.msra.mxu1 %v6184_v47  ;;  %v4770_v18 = vadd.f32 -1.0, %v5399_v15  ;;  %v1478_v22 = vmul.f32 1.442695, %v1451_v1  ;;  %v1065_v9 = vadd.f32 %v9089_v52, %v855_v14 }
 0x1aa   : > { %v6741_v60 = vmul.f32 1.050701, %v1542_v58  ;;  %v1242_v6 = vpop.f32.mrf.mxu0  ;;  %5108 = vmatpush3.msra.mxu0 %v9087_v61  ;;  %5177 = vmatprep.subr.mxu1 %v9088_v39  ;;  %v6748_v57 = vsub.f32 %v6690_v8, %v6700_v51  ;;  %v6750_v26 = vadd.f32 %v1414_v17, %v1236_v4  ;;  %v1421_v58 = vpop.f32.mrf.mxu1  ;;  %v9090_v61 = vand.u32 4294901760, %v6706_v31  ;;  %v9092_v8 = vld [vmem:[#allocation13_spill] sm:$0xff] }
 0x1ab   : > { %v1243_v33 = vadd.f32 %v1242_v6, %v1056_v28  ;;  %5088 = vmatmul.mubr.f32.gmra.mxu1 %v6733_v24  ;;  %v1511_v20 = vmul.f32 1.6732632, %v4770_v18  ;;  %5406 = vpow2.f32 %v1478_v22  ;;  %5028 = vmatprep.mubr.f32.mxu0 %v1690_v29  ;;  %v9094_v18 = vld [vmem:[#allocation80_spill] sm:$0xff]  ;;  %v6778_v56 = vsub.f32 %v1557_v0, %v6733_v24 }
 0x1ac   : > { %v5401_v15 = vpop.eup %5400  ;;  %v6754_v1 = vand.u32 4294901760, %v6741_v60  ;;  %v1699_v14 = vsub.f32 %v6706_v31, %v9090_v61  ;;  %v6759_v52 = vpop.f32.mrf.mxu0  ;;  %5109 = vmatprep.subr.mxu0 %v9092_v8  ;;  %v1452_v17 = vmin.f32 %v6750_v26, 0.0  ;;  %5178 = vmatpush3.msra.mxu1 %v9088_v39  ;;  %v863_v22 = vadd.f32 %v6526_v12, %v9094_v18 }
 0x1ad   : > { %9091 = vst [vmem:[#allocation11_spill] sm:$0xff] %v6759_v52  ;;  %v4771_v6 = vadd.f32 -1.0, %v5401_v15  ;;  %v6764_v4 = vadd.f32 %v1421_v58, %v1243_v33  ;;  %v6766_v28 = vpop.f32.mrf.mxu1  ;;  %5110 = vmatpush3.msra.mxu0 %v9092_v8  ;;  %v1543_v29 = vsel %vm1527_vm8, %v6621_v45, %v1511_v20  ;;  %v9095_v15 = vld [vmem:[#allocation17_spill] sm:$0xff]  ;;  %v9096_v8 = vld [vmem:[#allocation34_spill] sm:$0xff]  ;;  %v8743_v45 = vand.u32 4294901760, %v6748_v57 }
 0x1ae   : > { %9093 = vst [vmem:[#allocation29_spill] sm:$0xff] %v6766_v28  ;;  %v1700_v61 = vand.u32 4294901760, %v1699_v14  ;;  %v1249_v52 = vpop.f32.mrf.mxu0  ;;  %5090 = vmatprep.mubr.f32.mxu1 %v6754_v1  ;;  %5111 = vmatprep.subr.mxu0 %v9095_v15  ;;  %v1559_v43 = vmul.f32 1.050701, %v1543_v29  ;;  %v1480_v58 = vmul.f32 1.442695, %v1452_v17 }
 0x1af   : > { %v1512_v33 = vmul.f32 1.6732632, %v4771_v6  ;;  %v1250_v42 = vadd.f32 %v1249_v52, %v1065_v9  ;;  %v1428_v28 = vpop.f32.mrf.mxu1  ;;  %5112 = vmatpush3.msra.mxu0 %v9095_v15  ;;  %5179 = vmatprep.subr.mxu1 %v9096_v8  ;;  %v1453_v12 = vmin.f32 %v6764_v4, 0.0  ;;  %v9098_v14 = vld [vmem:[#allocation20_spill] sm:$0xff]  ;;  %v1709_v15 = vsub.f32 %v6748_v57, %v8743_v45 }
 0x1b0   : > { %5029 = vmatmul.mubr.f32.gmra.mxu0 %v1700_v61  ;;  %v6783_v20 = vpop.f32.mrf.mxu0  ;;  %5113 = vmatprep.subr.mxu0 %v9098_v14  ;;  %v5403_v9 = vpop.eup %5402  ;;  %v6786_v52 = vand.u32 4294901760, %v1559_v43  ;;  %5408 = vpow2.f32 %v1480_v58  ;;  %vm1532_vm13 = vcmp.gt.f32.partialorder %v6750_v26, 0.0  ;;  %vm1533_vm14 = vcmp.gt.f32.partialorder %v6764_v4, 0.0 }
 0x1b1   : > { %9097 = vst [vmem:[#allocation111_spill] sm:$0xff] %v6783_v20  ;;  %v1544_v6 = vsel %vm1528_vm9, %v6635_v2, %v1512_v33  ;;  %v6789_v17 = vadd.f32 %v1428_v28, %v1250_v42  ;;  %v6791_v0 = vpop.f32.mrf.mxu1  ;;  %5114 = vmatpush3.msra.mxu0 %v9098_v14  ;;  %5180 = vmatpush3.msra.mxu1 %v9096_v8  ;;  %v4772_v29 = vadd.f32 -1.0, %v5403_v9  ;;  %v1482_v61 = vmul.f32 1.442695, %v1453_v12  ;;  %v9101_v2 = vld [vmem:[#allocation38_spill] sm:$0xff] }
 0x1b2   : > { %9099 = vst [vmem:[#allocation13_spill] sm:$0xff] %v6791_v0  ;;  %v1560_v18 = vmul.f32 1.050701, %v1544_v6  ;;  %v1256_v20 = vpop.f32.mrf.mxu0  ;;  %5115 = vmatprep.subr.mxu0 %v9100_v46  ;;  %5181 = vmatprep.subr.mxu1 %v9101_v2  ;;  %v9102_v42 = vld [vmem:[#allocation114_spill] sm:$0xff]  ;;  %v6803_v33 = vsub.f32 %v6741_v60, %v6754_v1  ;;  %v6806_v58 = vsub.f32 %v1559_v43, %v6786_v52  ;;  %v1710_v45 = vand.u32 4294901760, %v1709_v15 }
 0x1b3   : > { %v1074_v28 = vadd.f32 %v9102_v42, %v863_v22  ;;  %v1454_v12 = vmin.f32 %v6789_v17, 0.0  ;;  %5091 = vmatmul.mubr.f32.gmra.mxu1 %v6786_v52  ;;  %5116 = vmatpush3.msra.mxu0 %v9100_v46  ;;  %v1513_v6 = vmul.f32 1.6732632, %v4772_v29  ;;  %5410 = vpow2.f32 %v1482_v61  ;;  %v1435_v22 = vpop.f32.mrf.mxu1  ;;  %v9103_v42 = vld [vmem:[#allocation26_spill] sm:$0xff] }
 0x1b4   : > { %v5405_v14 = vpop.eup %5404  ;;  %v6811_v9 = vand.u32 4294901760, %v1560_v18  ;;  %5117 = vmatprep.subr.mxu0 %v9103_v42  ;;  %5182 = vmatpush3.msra.mxu1 %v9101_v2  ;;  %v8744_v61 = vand.u32 4294901760, %v6778_v56  ;;  %vm1534_vm15 = vcmp.gt.f32.partialorder %v6789_v17, 0.0 }
 0x1b5   : > { %v4773_v43 = vadd.f32 -1.0, %v5405_v14  ;;  %v1484_v60 = vmul.f32 1.442695, %v1454_v12  ;;  %v1257_v0 = vadd.f32 %v1256_v20, %v1074_v28  ;;  %5118 = vmatpush3.msra.mxu0 %v9103_v42  ;;  %5183 = vmatprep.subr.mxu1 %v9104_v25  ;;  %v1545_v29 = vsel %vm1529_vm10, %v6660_v32, %v1513_v6  ;;  %v9105_v20 = vld [vmem:[#allocation28_spill] sm:$0xff] }
 0x1b6   : > { %v6819_v46 = vsub.f32 %v1560_v18, %v6811_v9  ;;  %5031 = vmatprep.mubr.f32.mxu0 %v1710_v45  ;;  %5093 = vmatprep.mubr.f32.mxu1 %v6811_v9  ;;  %v1561_v15 = vmul.f32 1.050701, %v1545_v29  ;;  %v1719_v32 = vsub.f32 %v6778_v56, %v8744_v61  ;;  %v8745_v45 = vand.u32 4294901760, %v6803_v33  ;;  %v9106_v28 = vld [vmem:[#allocation44_spill] sm:$0xff] }
 0x1b7   : > { %v1514_v34 = vmul.f32 1.6732632, %v4773_v43  ;;  %5412 = vpow2.f32 %v1484_v60  ;;  %v6824_v14 = vadd.f32 %v1435_v22, %v1257_v0  ;;  %5119 = vmatprep.subr.mxu0 %v9105_v20  ;;  %5184 = vmatpush3.msra.mxu1 %v9104_v25  ;;  %v9107_v42 = vld [vmem:[#allocation32_spill] sm:$0xff] }
 0x1b8   : > { %5120 = vmatpush3.msra.mxu0 %v9105_v20  ;;  %5185 = vmatprep.subr.mxu1 %v9106_v28  ;;  %v5407_v0 = vpop.eup %5406  ;;  %v6836_v12 = vand.u32 4294901760, %v1561_v15  ;;  %v1720_v29 = vand.u32 4294901760, %v1719_v32  ;;  %v1729_v20 = vsub.f32 %v6803_v33, %v8745_v45  ;;  %v9108_v61 = vld [vmem:[#allocation48_spill] sm:$0xff]  ;;  %v8746_v32 = vand.u32 4294901760, %v6819_v46 }
 0x1b9   : > { %v1546_v6 = vsel %vm1530_vm11, %v6682_v5, %v1514_v34  ;;  %v1455_v22 = vmin.f32 %v6824_v14, 0.0  ;;  %5121 = vmatprep.subr.mxu0 %v9107_v42  ;;  %5186 = vmatpush3.msra.mxu1 %v9106_v28  ;;  %v4774_v60 = vadd.f32 -1.0, %v5407_v0  ;;  %v9109_v5 = vand.u32 4294901760, %v6806_v58  ;;  %v9110_v0 = vld [vmem:[#allocation37_spill] sm:$0xff] }
 0x1ba   : > { %v1562_v43 = vmul.f32 1.050701, %v1546_v6  ;;  %5122 = vmatpush3.msra.mxu0 %v9107_v42  ;;  %5187 = vmatprep.subr.mxu1 %v9108_v61  ;;  %v6848_v18 = vsub.f32 %v1561_v15, %v6836_v12  ;;  %v1730_v42 = vand.u32 4294901760, %v1729_v20  ;;  %vm1535_vm0 = vcmp.gt.f32.partialorder %v6824_v14, 0.0 }
 0x1bb   : > { %v1486_v34 = vmul.f32 1.442695, %v1455_v22  ;;  %v1739_v40 = vsub.f32 %v6806_v58, %v9109_v5  ;;  %5094 = vmatmul.mubr.f32.gmra.mxu1 %v6836_v12  ;;  %5123 = vmatprep.subr.mxu0 %v9110_v0  ;;  %v1515_v45 = vmul.f32 1.6732632, %v4774_v60  ;;  %v1749_v22 = vsub.f32 %v6819_v46, %v8746_v32 }
 0x1bc   : > { %v6856_v6 = vand.u32 4294901760, %v1562_v43  ;;  %5032 = vmatmul.mubr.f32.gmra.mxu0 %v1720_v29  ;;  %5188 = vmatpush3.msra.mxu1 %v9108_v61  ;;  %v8747_v5 = vand.u32 4294901760, %v6848_v18 }
 0x1bd   : > { %5414 = vpow2.f32 %v1486_v34  ;;  %v1740_v15 = vand.u32 4294901760, %v1739_v40  ;;  %5124 = vmatpush3.msra.mxu0 %v9110_v0  ;;  %5189 = vmatprep.subr.mxu1 %v9111_v30  ;;  %v5409_v21 = vpop.eup %5408  ;;  %v1547_v29 = vsel %vm1531_vm12, %v6715_v35, %v1515_v45  ;;  %v1750_v34 = vand.u32 4294901760, %v1749_v22  ;;  %v9113_v0 = vld [vmem:[#allocation58_spill] sm:$0xff] }
 0x1be   : > { %v6867_v60 = vsub.f32 %v1562_v43, %v6856_v6  ;;  %5034 = vmatprep.mubr.f32.mxu0 %v1730_v42  ;;  %5096 = vmatprep.mubr.f32.mxu1 %v6856_v6  ;;  %v1563_v40 = vmul.f32 1.050701, %v1547_v29  ;;  %v4775_v20 = vadd.f32 -1.0, %v5409_v21  ;;  %v1759_v32 = vsub.f32 %v6848_v18, %v8747_v5 }
 0x1bf   : > { %5125 = vmatprep.subr.mxu0 %v9112_v7  ;;  %5190 = vmatpush3.msra.mxu1 %v9111_v30 }
 0x1c0   : > { %5035 = vmatmul.mubr.f32.gmra.mxu0 %v1740_v15  ;;  %v8748_v43 = vand.u32 4294901760, %v6867_v60  ;;  %5191 = vmatprep.subr.mxu1 %v9113_v0  ;;  %v5411_v35 = vpop.eup %5410  ;;  %v6878_v45 = vand.u32 4294901760, %v1563_v40  ;;  %v1516_v42 = vmul.f32 1.6732632, %v4775_v20  ;;  %v1760_v21 = vand.u32 4294901760, %v1759_v32  ;;  %v9114_v15 = vld [vmem:[#allocation46_spill] sm:$0xff] }
 0x1c1   : > { %5037 = vmatprep.mubr.f32.mxu0 %v1750_v34  ;;  %5126 = vmatpush3.msra.mxu0 %v9112_v7  ;;  %v4776_v22 = vadd.f32 -1.0, %v5411_v35 }
 0x1c2   : > { %v1769_v29 = vsub.f32 %v6867_v60, %v8748_v43  ;;  %5127 = vmatprep.subr.mxu0 %v9114_v15  ;;  %5192 = vmatpush3.msra.mxu1 %v9113_v0  ;;  %v6888_v5 = vsub.f32 %v1563_v40, %v6878_v45  ;;  %v1548_v20 = vsel %vm1532_vm13, %v6750_v26, %v1516_v42  ;;  %v9116_v42 = vld [vmem:[#allocation53_spill] sm:$0xff] }
 0x1c3   : > { %5097 = vmatmul.mubr.f32.gmra.mxu1 %v6878_v45  ;;  %5128 = vmatpush3.msra.mxu0 %v9114_v15  ;;  %v1564_v32 = vmul.f32 1.050701, %v1548_v20  ;;  %v1517_v34 = vmul.f32 1.6732632, %v4776_v22 }
 0x1c4   : > { %v5413_v7 = vpop.eup %5412  ;;  %5038 = vmatmul.mubr.f32.gmra.mxu0 %v1760_v21  ;;  %v1770_v35 = vand.u32 4294901760, %v1769_v29  ;;  %5129 = vmatprep.subr.mxu0 %v9115_v11  ;;  %v8749_v54 = vand.u32 4294901760, %v6888_v5 }
 0x1c5   : > { %v4777_v43 = vadd.f32 -1.0, %v5413_v7  ;;  %5130 = vmatpush3.msra.mxu0 %v9115_v11  ;;  %5273 = vmatprep.subr.mxu1 %v6096_v16  ;;  %v6898_v26 = vand.u32 4294901760, %v1564_v32  ;;  %v1549_v40 = vsel %vm1533_vm14, %v6764_v4, %v1517_v34  ;;  %v9117_v11 = vld [vmem:[#allocation57_spill] sm:$0xff] }
 0x1c6   : > { %5040 = vmatprep.mubr.f32.mxu0 %v1770_v35  ;;  %5131 = vmatprep.subr.mxu0 %v9116_v42  ;;  %v1565_v21 = vmul.f32 1.050701, %v1549_v40  ;;  %v1779_v29 = vsub.f32 %v6888_v5, %v8749_v54  ;;  %v9118_v40 = vld [vmem:[#allocation61_spill] sm:$0xff] }
 0x1c7   : > { %v1518_v22 = vmul.f32 1.6732632, %v4777_v43  ;;  %5132 = vmatpush3.msra.mxu0 %v9116_v42  ;;  %v6907_v15 = vsub.f32 %v1564_v32, %v6898_v26  ;;  %5099 = vmatprep.mubr.f32.mxu1 %v6898_v26 }
 0x1c8   : > { %5133 = vmatprep.subr.mxu0 %v9117_v11  ;;  %v6912_v4 = vand.u32 4294901760, %v1565_v21  ;;  %v1780_v43 = vand.u32 4294901760, %v1779_v29 }
 0x1c9   : > { %v1550_v20 = vsel %vm1534_vm15, %v6789_v17, %v1518_v22  ;;  %5134 = vmatpush3.msra.mxu0 %v9117_v11  ;;  %v8750_v35 = vand.u32 4294901760, %v6907_v15  ;;  %v9119_v11 = vld [vmem:[#allocation10_spill] sm:$0xff] }
 0x1ca   : > { %v5415_v7 = vpop.eup %5414  ;;  %v1566_v34 = vmul.f32 1.050701, %v1550_v20  ;;  %5135 = vmatprep.subr.mxu0 %v9118_v40  ;;  %v6919_v32 = vsub.f32 %v1565_v21, %v6912_v4  ;;  %5041 = vmatmul.mubr.f32.gmra.mxu0 %v1780_v43 }
 0x1cb   : > { %v4778_v42 = vadd.f32 -1.0, %v5415_v7  ;;  %5100 = vmatmul.mubr.f32.gmra.mxu1 %v6912_v4  ;;  %v1789_v17 = vsub.f32 %v6907_v15, %v8750_v35  ;;  %5136 = vmatpush3.msra.mxu0 %v9118_v40 }
 0x1cc   : > { %v6922_v54 = vand.u32 4294901760, %v1566_v34  ;;  %v1798_v29 = vand.u32 4294901760, %v6919_v32  ;;  %5217 = vmatprep.subr.mxu0 %v9119_v11 }
 0x1cd   : > { %v1519_v22 = vmul.f32 1.6732632, %v4778_v42  ;;  %v1790_v20 = vand.u32 4294901760, %v1789_v17 }
 0x1ce   : > { %v6931_v21 = vsub.f32 %v1566_v34, %v6922_v54  ;;  %5102 = vmatprep.mubr.f32.mxu1 %v6922_v54  ;;  %v1799_v7 = vsub.f32 %v6919_v32, %v1798_v29 }
 0x1cf   : > { %v1551_v43 = vsel %vm1535_vm0, %v6824_v14, %v1519_v22  ;;  %5043 = vmatprep.mubr.f32.mxu0 %v1790_v20  ;;  %v9120_v22 = vand.u32 4294901760, %v6626_v55 }
 0x1d0   : > { %v1567_v40 = vmul.f32 1.050701, %v1551_v43  ;;  %v1808_v42 = vand.u32 4294901760, %v6931_v21  ;;  %v1800_v35 = vand.u32 4294901760, %v1799_v7  ;;  %v9121_v43 = vand.u32 4294901760, %v6642_v53 }
 0x1d2   : > { %v6940_v23 = vand.u32 4294901760, %v1567_v40  ;;  %v1809_v34 = vsub.f32 %v6931_v21, %v1808_v42  ;;  %5044 = vmatmul.mubr.f32.gmra.mxu0 %v1800_v35  ;;  %v9122_v35 = vand.u32 4294901760, %v6688_v59 }
 0x1d4   : > { %v6946_v17 = vsub.f32 %v1567_v40, %v6940_v23  ;;  %5103 = vmatmul.mubr.f32.gmra.mxu1 %v6940_v23  ;;  %v1810_v14 = vand.u32 4294901760, %v1809_v34  ;;  %v9123_v34 = vand.u32 4294901760, %v6706_v31 }
 0x1d5   : > { %5193 = vmatprep.mubr.f32.mxu1 %v9120_v22 }
 0x1d6   : > { %5046 = vmatprep.mubr.f32.mxu0 %v1810_v14  ;;  %v1818_v20 = vand.u32 4294901760, %v6946_v17  ;;  %v9124_v14 = vand.u32 4294901760, %v6748_v57 }
 0x1d8   : > { %5194 = vmatmul.mubr.f32.vlgmr.msra.gmra.mxu1 %v9121_v43  ;;  %v1819_v7 = vsub.f32 %v6946_v17, %v1818_v20 }
 0x1d9   : > { %5196 = vmatprep.mubr.f32.mxu1 %v9122_v35  ;;  %5274 = vmatpush3.msra.mxu1 %v6096_v16  ;;  %v9125_v16 = vand.u32 4294901760, %v6778_v56 }
 0x1da   : > { %5275 = vmatprep.subr.mxu1 %v6102_v19  ;;  %v1820_v40 = vand.u32 4294901760, %v1819_v7 }
 0x1db   : > { %5276 = vmatpush3.msra.mxu1 %v6102_v19  ;;  %v9126_v19 = vand.u32 4294901760, %v6803_v33 }
 0x1dc   : > { %5047 = vmatmul.mubr.f32.gmra.mxu0 %v1820_v40  ;;  %5197 = vmatmul.mubr.f32.gmra.mxu1 %v9123_v34  ;;  %v2909_v34 = vld [vmem:[#allocation2 + $0x1c0] sm:$0xff] }
 0x1dd   : > { %5277 = vmatprep.subr.mxu1 %v6119_v27  ;;  %5137 = vmatprep.mubr.f32.mxu0 %v6626_v55  ;;  %v9127_v55 = vld [vmem:[#allocation12_spill] sm:$0xff] }
 0x1de   : > { %5199 = vmatprep.mubr.f32.mxu1 %v9124_v14  ;;  %5278 = vmatpush3.msra.mxu1 %v6119_v27  ;;  %v9128_v27 = vld [vmem:[#allocation16_spill] sm:$0xff] }
 0x1df   : > { %5279 = vmatprep.subr.mxu1 %v6131_v48 }
 0x1e0   : > { %5280 = vmatpush3.msra.mxu1 %v6131_v48  ;;  %5138 = vmatmul.mubr.f32.vlgmr.msra.gmra.mxu0 %v6642_v53  ;;  %v9129_v48 = vand.u32 4294901760, %v6806_v58  ;;  %v9131_v53 = vld [vmem:[#allocation18_spill] sm:$0xff] }
 0x1e1   : > { %5200 = vmatmul.mubr.f32.gmra.mxu1 %v9125_v16  ;;  %5218 = vmatpush3.msra.mxu0 %v9119_v11  ;;  %v2911_v11 = vld [vmem:[#allocation2 + $0x1d0] sm:$0xff] }
 0x1e2   : > { %5281 = vmatprep.subr.mxu1 %v6150_v13  ;;  %5140 = vmatprep.mubr.f32.mxu0 %v6688_v59  ;;  %v9133_v59 = vand.u32 4294901760, %v6848_v18  ;;  %v7144_v22 = vand.u32 4294901760, %v2911_v11 }
 0x1e3   : > { %5202 = vmatprep.mubr.f32.mxu1 %v9126_v19  ;;  %5219 = vmatprep.subr.mxu0 %v9127_v55 }
 0x1e4   : > { %5282 = vmatpush3.msra.mxu1 %v6150_v13  ;;  %5220 = vmatpush3.msra.mxu0 %v9127_v55  ;;  %v9130_v13 = vand.u32 4294901760, %v6819_v46  ;;  %9158 = vst [vmem:[#allocation28_spill] sm:$0xff] %v7144_v22  ;;  %v7160_v55 = vsub.f32 %v2911_v11, %v7144_v22 }
 0x1e5   : > { %5283 = vmatprep.subr.mxu1 %v6164_v49  ;;  %5221 = vmatprep.subr.mxu0 %v9128_v27 }
 0x1e6   : > { %5284 = vmatpush3.msra.mxu1 %v6164_v49  ;;  %5141 = vmatmul.mubr.f32.gmra.mxu0 %v6706_v31  ;;  %v9132_v49 = vld [vmem:[#allocation22_spill] sm:$0xff]  ;;  %v9135_v31 = vld [vmem:[#allocation25_spill] sm:$0xff]  ;;  %9160 = vst [vmem:[#allocation32_spill] sm:$0xff] %v7160_v55 }
 0x1e7   : > { %5203 = vmatmul.mubr.f32.gmra.mxu1 %v9129_v48  ;;  %5222 = vmatpush3.msra.mxu0 %v9128_v27  ;;  %v2908_v27 = vld [vmem:[#allocation2 + $0x1b8] sm:$0xff] }
 0x1e8   : > { %5285 = vmatprep.subr.mxu1 %v6180_v36  ;;  %5143 = vmatprep.mubr.f32.mxu0 %v6748_v57  ;;  %v9139_v57 = vld [vmem:[#allocation31_spill] sm:$0xff] }
 0x1e9   : > { %5205 = vmatprep.mubr.f32.mxu1 %v9130_v13  ;;  %5223 = vmatprep.subr.mxu0 %v9131_v53 }
 0x1ea   : > { %5286 = vmatpush3.msra.mxu1 %v6180_v36  ;;  %5224 = vmatpush3.msra.mxu0 %v9131_v53  ;;  %v9134_v36 = vand.u32 4294901760, %v6867_v60 }
 0x1eb   : > { %5287 = vmatprep.subr.mxu1 %v6184_v47  ;;  %5225 = vmatprep.subr.mxu0 %v9132_v49 }
 0x1ec   : > { %5288 = vmatpush3.msra.mxu1 %v6184_v47  ;;  %5144 = vmatmul.mubr.f32.gmra.mxu0 %v6778_v56  ;;  %v9136_v47 = vld [vmem:[#allocation30_spill] sm:$0xff]  ;;  %v9137_v56 = vand.u32 4294901760, %v6888_v5 }
 0x1ed   : > { %5206 = vmatmul.mubr.f32.gmra.mxu1 %v9133_v59  ;;  %5226 = vmatpush3.msra.mxu0 %v9132_v49  ;;  %v2907_v59 = vld [vmem:[#allocation2 + $0x1b0] sm:$0xff] }
 0x1ee   : > { %5289 = vmatprep.subr.mxu1 %v9088_v39  ;;  %5146 = vmatprep.mubr.f32.mxu0 %v6803_v33  ;;  %v9143_v33 = vld [vmem:[#allocation50_spill] sm:$0xff] }
 0x1ef   : > { %5208 = vmatprep.mubr.f32.mxu1 %v9134_v36  ;;  %5227 = vmatprep.subr.mxu0 %v9135_v31 }
 0x1f0   : > { %5290 = vmatpush3.msra.mxu1 %v9088_v39  ;;  %5228 = vmatpush3.msra.mxu0 %v9135_v31  ;;  %v9138_v39 = vand.u32 4294901760, %v6907_v15 }
 0x1f1   : > { %5291 = vmatprep.subr.mxu1 %v9096_v8  ;;  %5229 = vmatprep.subr.mxu0 %v9136_v47 }
 0x1f2   : > { %5292 = vmatpush3.msra.mxu1 %v9096_v8  ;;  %5147 = vmatmul.mubr.f32.gmra.mxu0 %v6806_v58  ;;  %v9140_v8 = vld [vmem:[#allocation36_spill] sm:$0xff] }
 0x1f3   : > { %5209 = vmatmul.mubr.f32.gmra.mxu1 %v9137_v56  ;;  %5230 = vmatpush3.msra.mxu0 %v9136_v47  ;;  %v9144_v58 = vld [vmem:[#allocation52_spill] sm:$0xff]  ;;  %v8756_v47 = vand.u32 4294901760, %v7160_v55  ;;  %v7173_v56 = vand.u32 4294901760, %v2909_v34 }
 0x1f4   : > { %5293 = vmatprep.subr.mxu1 %v9101_v2  ;;  %5149 = vmatprep.mubr.f32.mxu0 %v6819_v46  ;;  %v9145_v46 = vld [vmem:[#allocation55_spill] sm:$0xff] }
 0x1f5   : > { %5211 = vmatprep.mubr.f32.mxu1 %v9138_v39  ;;  %5231 = vmatprep.subr.mxu0 %v9139_v57  ;;  %9162 = vst [vmem:[#allocation37_spill] sm:$0xff] %v7173_v56  ;;  %v2906_v39 = vld [vmem:[#allocation2 + $0x1a8] sm:$0xff] }
 0x1f6   : > { %5294 = vmatpush3.msra.mxu1 %v9101_v2  ;;  %5232 = vmatpush3.msra.mxu0 %v9139_v57  ;;  %v9141_v2 = vld [vmem:[#allocation40_spill] sm:$0xff] }
 0x1f7   : > { %5295 = vmatprep.subr.mxu1 %v9104_v25  ;;  %5233 = vmatprep.subr.mxu0 %v9140_v8 }
 0x1f8   : > { %5296 = vmatpush3.msra.mxu1 %v9104_v25  ;;  %5150 = vmatmul.mubr.f32.gmra.mxu0 %v6848_v18  ;;  %v9142_v25 = vld [vmem:[#allocation45_spill] sm:$0xff] }
 0x1f9   : > { %5212 = vmatmul.mubr.f32.gmra.mxu1 %v1798_v29  ;;  %5234 = vmatpush3.msra.mxu0 %v9140_v8  ;;  %v2914_v18 = vld [vmem:[#allocation2 + $0x1e8] sm:$0xff] }
 0x1fa   : > { %5297 = vmatprep.subr.mxu1 %v9106_v28  ;;  %5152 = vmatprep.mubr.f32.mxu0 %v6867_v60 }
 0x1fb   : > { %5214 = vmatprep.mubr.f32.mxu1 %v1808_v42  ;;  %5235 = vmatprep.subr.mxu0 %v9141_v2 }
 0x1fc   : > { %5298 = vmatpush3.msra.mxu1 %v9106_v28  ;;  %5236 = vmatpush3.msra.mxu0 %v9141_v2 }
 0x1fd   : > { %5299 = vmatprep.subr.mxu1 %v9108_v61  ;;  %5237 = vmatprep.subr.mxu0 %v9142_v25 }
 0x1fe   : > { %5300 = vmatpush3.msra.mxu1 %v9108_v61  ;;  %5153 = vmatmul.mubr.f32.gmra.mxu0 %v6888_v5  ;;  %v9147_v61 = vld [vmem:[#allocation63_spill] sm:$0xff]  ;;  %v2913_v5 = vld [vmem:[#allocation2 + $0x1e0] sm:$0xff] }
 0x1ff   : > { %5215 = vmatmul.mubr.f32.gmra.mxu1 %v1818_v20  ;;  %5238 = vmatpush3.msra.mxu0 %v9142_v25  ;;  %v2910_v20 = vld [vmem:[#allocation2 + $0x1c8] sm:$0xff]  ;;  %v7181_v25 = vand.u32 4294901760, %v2908_v27 }
 0x200   : > { %5301 = vmatprep.subr.mxu1 %v9111_v30  ;;  %5155 = vmatprep.mubr.f32.mxu0 %v6907_v15  ;;  %v7167_v49 = vand.u32 4294901760, %v2910_v20 }
 0x201   : > { %5239 = vmatprep.subr.mxu0 %v9143_v33  ;;  %5302 = vmatpush3.msra.mxu1 %v9111_v30  ;;  %v9146_v30 = vld [vmem:[#allocation60_spill] sm:$0xff]  ;;  %9164 = vst [vmem:[#allocation41_spill] sm:$0xff] %v7181_v25 }
 0x202   : > { %5305 = vmatprep.mubr.f32.mxu1 %v6610_v62  ;;  %5240 = vmatpush3.msra.mxu0 %v9143_v33  ;;  %9161 = vst [vmem:[#allocation48_spill] sm:$0xff] %v7167_v49  ;;  %v7179_v2 = vsub.f32 %v2910_v20, %v7167_v49  ;;  %v2905_v33 = vld [vmem:[#allocation2 + $0x1a0] sm:$0xff] }
 0x203   : > { %5303 = vmatprep.subr.mxu1 %v9113_v0  ;;  %5241 = vmatprep.subr.mxu0 %v9144_v58 }
 0x204   : > { %5304 = vmatpush3.msra.mxu1 %v9113_v0  ;;  %5156 = vmatmul.mubr.f32.gmra.mxu0 %v6919_v32  ;;  %9163 = vst [vmem:[#allocation54_spill] sm:$0xff] %v7179_v2 }
 0x205   : > { %5242 = vmatpush3.msra.mxu0 %v9144_v58  ;;  %5306 = vmatmul.mubr.f32.vlgmr.msra.gmra.mxu1 %v6628_v10 }
 0x206   : > { %5158 = vmatprep.mubr.f32.mxu0 %v6931_v21  ;;  %5243 = vmatprep.subr.mxu0 %v9145_v46 }
 0x207   : > { %5308 = vmatprep.mubr.f32.mxu1 %v6654_v63  ;;  %5244 = vmatpush3.msra.mxu0 %v9145_v46  ;;  %v3250_v46 = vsub.f32 %v7160_v55, %v8756_v47 }
 0x208   : > { %5245 = vmatprep.subr.mxu0 %v9146_v30  ;;  %5159 = vmatmul.mubr.f32.gmra.mxu0 %v6946_v17 }
 0x209   : > { %5246 = vmatpush3.msra.mxu0 %v9146_v30  ;;  %5309 = vmatmul.mubr.f32.gmra.mxu1 %v6668_v37  ;;  %v7188_v30 = vsub.f32 %v2909_v34, %v7173_v56 }
 0x20a   : > { %5247 = vmatprep.subr.mxu0 %v9147_v61  ;;  %5249 = vmatprep.mubr.f32.mxu0 %v6610_v62  ;;  %v9148_v62 = vmov 0.0  }
 0x20b   : > { %5311 = vmatprep.mubr.f32.mxu1 %v6700_v51  ;;  %5248 = vmatpush3.msra.mxu0 %v9147_v61  ;;  %9165 = vst [vmem:[#allocation58_spill] sm:$0xff] %v7188_v30  ;;  %v7190_v61 = vand.u32 4294901760, %v2907_v59 }
 0x20c   : > { %5250 = vmatmul.mubr.f32.vlgmr.msra.gmra.mxu0 %v6628_v10  ;;  %v2918_v10 = vld [vmem:[#allocation2 + $0x208] sm:$0xff] }
 0x20d   : > { %5312 = vmatmul.mubr.f32.gmra.mxu1 %v6733_v24  ;;  %5252 = vmatprep.mubr.f32.mxu0 %v6654_v63  ;;  %v7097_v63 = vand.u32 4294901760, %v2918_v10  ;;  %9166 = vst [vmem:[#allocation46_spill] sm:$0xff] %v7190_v61  ;;  %v7202_v11 = vsub.f32 %v2907_v59, %v7190_v61 }
 0x20e   : > { %5314 = vmatprep.mubr.f32.mxu1 %v6754_v1 }
 0x20f   : > { %9149 = vst [vmem:[#allocation80_spill] sm:$0xff] %v7097_v63  ;;  %2933 = vmatprep.subr.mxu0 %v7097_v63  ;;  %9169 = vst [vmem:[#allocation57_spill] sm:$0xff] %v7202_v11 }
 0x210   : > { %5253 = vmatmul.mubr.f32.gmra.mxu0 %v6668_v37  ;;  %v2917_v37 = vld [vmem:[#allocation2 + $0x200] sm:$0xff] }
 0x211   : > { %5315 = vmatmul.mubr.f32.gmra.mxu1 %v6786_v52  ;;  %5255 = vmatprep.mubr.f32.mxu0 %v6700_v51  ;;  %v7099_v51 = vand.u32 4294901760, %v2917_v37 }
 0x212   : > { %5317 = vmatprep.mubr.f32.mxu1 %v6811_v9 }
 0x213   : > { %2935 = vmatpush1.msra.mxu0 %v7099_v51 }
 0x214   : > { %5256 = vmatmul.mubr.f32.gmra.mxu0 %v6733_v24  ;;  %v2916_v24 = vld [vmem:[#allocation2 + $0x1f8] sm:$0xff] }
 0x215   : > { %5318 = vmatmul.mubr.f32.gmra.mxu1 %v6836_v12  ;;  %5258 = vmatprep.mubr.f32.mxu0 %v6754_v1  ;;  %v7102_v1 = vsub.f32 %v2918_v10, %v7097_v63  ;;  %v2904_v10 = vld [vmem:[#allocation2 + $0x198] sm:$0xff] }
 0x216   : > { %5320 = vmatprep.mubr.f32.mxu1 %v6856_v6  ;;  %v7214_v34 = vand.u32 4294901760, %v2904_v10 }
 0x217   : > { %9150 = vst [vmem:[#allocation17_spill] sm:$0xff] %v7102_v1  ;;  %v8767_v28 = vand.u32 4294901760, %v7102_v1 }
 0x218   : > { %5259 = vmatmul.mubr.f32.gmra.mxu0 %v6786_v52  ;;  %v7104_v52 = vand.u32 4294901760, %v2916_v24  ;;  %9172 = vst [vmem:[#allocation12_spill] sm:$0xff] %v7214_v34 }
 0x219   : > { %5321 = vmatmul.mubr.f32.gmra.mxu1 %v6878_v45  ;;  %5261 = vmatprep.mubr.f32.mxu0 %v6811_v9  ;;  %v2915_v9 = vld [vmem:[#allocation2 + $0x1f0] sm:$0xff]  ;;  %v3208_v15 = vsub.f32 %v7102_v1, %v8767_v28 }
 0x21a   : > { %5323 = vmatprep.mubr.f32.mxu1 %v6898_v26  ;;  %2937 = vmatprep.subr.mxu0 %v7104_v52 }
 0x21b   : > { %v3209_v43 = vand.u32 4294901760, %v3208_v15  ;;  %v8753_v15 = vand.u32 4294901760, %v7188_v30 }
 0x21c   : > { %5262 = vmatmul.mubr.f32.gmra.mxu0 %v6836_v12  ;;  %v7115_v12 = vsub.f32 %v2916_v24, %v7104_v52  ;;  %v8754_v24 = vand.u32 4294901760, %v7179_v2 }
 0x21d   : > { %5324 = vmatmul.mubr.f32.gmra.mxu1 %v6912_v4  ;;  %5264 = vmatprep.mubr.f32.mxu0 %v6856_v6  ;;  %v7117_v6 = vand.u32 4294901760, %v2914_v18 }
 0x21e   : > { %5326 = vmatprep.mubr.f32.mxu1 %v6922_v54  ;;  %9152 = vst [vmem:[#allocation20_spill] sm:$0xff] %v7115_v12  ;;  %3210 = vmatprep.subr.mxu1 %v3209_v43  ;;  %v3256_v20 = vsub.f32 %v7179_v2, %v8754_v24 }
 0x21f   : > { %v7132_v32 = vsub.f32 %v2914_v18, %v7117_v6  ;;  %v7197_v18 = vand.u32 4294901760, %v2906_v39 }
 0x220   : > { %5265 = vmatmul.mubr.f32.gmra.mxu0 %v6878_v45  ;;  %v7124_v45 = vand.u32 4294901760, %v2913_v5  ;;  %v3257_v59 = vand.u32 4294901760, %v3256_v20 }
 0x221   : > { %5327 = vmatmul.mubr.f32.gmra.mxu1 %v6940_v23  ;;  %5267 = vmatprep.mubr.f32.mxu0 %v6898_v26  ;;  %v2912_v26 = vld [vmem:[#allocation2 + $0x1d8] sm:$0xff]  ;;  %9155 = vst [vmem:[#allocation114_spill] sm:$0xff] %v7132_v32  ;;  %v8761_v35 = vand.u32 4294901760, %v7132_v32  ;;  %9168 = vst [vmem:[#allocation53_spill] sm:$0xff] %v7197_v18 }
 0x222   : > { %3429 = vmatprep.mubr.f32.mxu1 %v9148_v62  ;;  %9154 = vst [vmem:[#allocation38_spill] sm:$0xff] %v7124_v45  ;;  %v7134_v29 = vand.u32 4294901760, %v2912_v26  ;;  %v7142_v17 = vsub.f32 %v2913_v5, %v7124_v45  ;;  %v2903_v5 = vld [vmem:[#allocation2 + $0x190] sm:$0xff] }
 0x223   : > { %v3232_v13 = vsub.f32 %v7132_v32, %v8761_v35 }
 0x224   : > { %5268 = vmatmul.mubr.f32.gmra.mxu0 %v6912_v4  ;;  %v8764_v4 = vand.u32 4294901760, %v7115_v12  ;;  %9156 = vst [vmem:[#allocation26_spill] sm:$0xff] %v7134_v29  ;;  %9157 = vst [vmem:[#allocation42_spill] sm:$0xff] %v7142_v17  ;;  %v7152_v40 = vsub.f32 %v2912_v26, %v7134_v29  ;;  %v8760_v19 = vand.u32 4294901760, %v7142_v17  ;;  %v3251_v26 = vand.u32 4294901760, %v3250_v46 }
 0x225   : > { %5270 = vmatprep.mubr.f32.mxu0 %v6922_v54  ;;  %v7108_v54 = vsub.f32 %v2917_v37, %v7099_v51  ;;  %v3233_v57 = vand.u32 4294901760, %v3232_v13  ;;  %v2902_v13 = vld [vmem:[#allocation2 + $0x188] sm:$0xff] }
 0x226   : > { %v3220_v7 = vsub.f32 %v7115_v12, %v8764_v4  ;;  %9159 = vst [vmem:[#allocation44_spill] sm:$0xff] %v7152_v40  ;;  %v8758_v53 = vand.u32 4294901760, %v7152_v40  ;;  %v3238_v31 = vsub.f32 %v7142_v17, %v8760_v19 }
 0x227   : > { %9151 = vst [vmem:[#allocation34_spill] sm:$0xff] %v7108_v54  ;;  %v8766_v60 = vand.u32 4294901760, %v7108_v54 }
 0x228   : > { %5271 = vmatmul.mubr.f32.gmra.mxu0 %v6940_v23  ;;  %v7110_v23 = vand.u32 4294901760, %v2915_v9  ;;  %v3221_v48 = vand.u32 4294901760, %v3220_v7  ;;  %v3244_v8 = vsub.f32 %v7152_v40, %v8758_v53  ;;  %v3239_v58 = vand.u32 4294901760, %v3238_v31 }
 0x229   : > { %3028 = vmatprep.mubr.f32.mxu0 %v9148_v62  ;;  %v3214_v21 = vsub.f32 %v7108_v54, %v8766_v60  ;;  %v7212_v7 = vsub.f32 %v2906_v39, %v7197_v18  ;;  %v7232_v39 = vsub.f32 %v2904_v10, %v7214_v34  ;;  %v2894_v60 = vld [vmem:[#allocation2 + $0x148] sm:$0xff] }
 0x22a   : > { %v7122_v0 = vsub.f32 %v2915_v9, %v7110_v23  ;;  %2939 = vmatpush1.msra.mxu0 %v7110_v23  ;;  %v3245_v37 = vand.u32 4294901760, %v3244_v8  ;;  %v7195_v9 = vsub.f32 %v2908_v27, %v7181_v25  ;;  %v7327_v41 = vand.u32 4294901760, %v2894_v60 }
 0x22b   : > { %2941 = vmatprep.subr.mxu0 %v7117_v6  ;;  %v3215_v14 = vand.u32 4294901760, %v3214_v21  ;;  %v7204_v21 = vand.u32 4294901760, %v2905_v33  ;;  %9171 = vst [vmem:[#allocation10_spill] sm:$0xff] %v7212_v7  ;;  %v8755_v31 = vand.u32 4294901760, %v7212_v7  ;;  %9175 = vst [vmem:[#allocation22_spill] sm:$0xff] %v7232_v39  ;;  %v8759_v20 = vand.u32 4294901760, %v7232_v39 }
 0x22c   : > { %9153 = vst [vmem:[#allocation23_spill] sm:$0xff] %v7122_v0  ;;  %v8763_v42 = vand.u32 4294901760, %v7122_v0  ;;  %2943 = vmatpush1.msra.mxu0 %v7124_v45  ;;  %9167 = vst [vmem:[#allocation47_spill] sm:$0xff] %v7195_v9  ;;  %v8751_v43 = vand.u32 4294901760, %v7195_v9 }
 0x22d   : > { %2945 = vmatprep.subr.mxu0 %v7134_v29  ;;  %3216 = vmatpush1.msra.mxu1 %v3215_v14  ;;  %9170 = vst [vmem:[#allocation61_spill] sm:$0xff] %v7204_v21  ;;  %v3262_v14 = vsub.f32 %v7188_v30, %v8753_v15  ;;  %v7222_v27 = vsub.f32 %v2905_v33, %v7204_v21  ;;  %9193 = vst [vmem:[#allocation148_spill] sm:$0xff] %v7327_v41 }
 0x22e   : > { %v3226_v16 = vsub.f32 %v7122_v0, %v8763_v42  ;;  %2947 = vmatpush1.msra.mxu0 %v7144_v22  ;;  %3222 = vmatprep.subr.mxu1 %v3221_v48  ;;  %v7224_v48 = vand.u32 4294901760, %v2903_v5  ;;  %v3280_v10 = vsub.f32 %v7212_v7, %v8755_v31  ;;  %v3292_v31 = vsub.f32 %v7232_v39, %v8759_v20  ;;  %v2896_v20 = vld [vmem:[#allocation2 + $0x158] sm:$0xff] }
 0x22f   : > { %2949 = vmatprep.subr.mxu0 %v7167_v49  ;;  %9173 = vst [vmem:[#allocation16_spill] sm:$0xff] %v7222_v27  ;;  %v3263_v8 = vand.u32 4294901760, %v3262_v14  ;;  %v7247_v14 = vand.u32 4294901760, %v2902_v13 }
 0x230   : > { %v3227_v36 = vand.u32 4294901760, %v3226_v16  ;;  %2951 = vmatpush1.msra.mxu0 %v7173_v56  ;;  %v8752_v16 = vand.u32 4294901760, %v7202_v11  ;;  %9174 = vst [vmem:[#allocation18_spill] sm:$0xff] %v7224_v48  ;;  %v7240_v46 = vsub.f32 %v2903_v5, %v7224_v48 }
 0x231   : > { %2953 = vmatprep.subr.mxu0 %v7181_v25  ;;  %9177 = vst [vmem:[#allocation30_spill] sm:$0xff] %v7247_v14  ;;  %v7259_v47 = vsub.f32 %v2902_v13, %v7247_v14  ;;  %v3293_v13 = vand.u32 4294901760, %v3292_v31 }
 0x232   : > { %3228 = vmatpush1.msra.mxu1 %v3227_v36  ;;  %2955 = vmatpush1.msra.mxu0 %v7190_v61  ;;  %v3268_v36 = vsub.f32 %v7195_v9, %v8751_v43  ;;  %v3274_v33 = vsub.f32 %v7202_v11, %v8752_v16  ;;  %9176 = vst [vmem:[#allocation25_spill] sm:$0xff] %v7240_v46  ;;  %v2899_v43 = vld [vmem:[#allocation2 + $0x170] sm:$0xff]  ;;  %v8762_v15 = vand.u32 4294901760, %v7240_v46 }
 0x233   : > { %3234 = vmatprep.subr.mxu1 %v3233_v57  ;;  %2957 = vmatprep.subr.mxu0 %v7197_v18  ;;  %v2901_v57 = vld [vmem:[#allocation2 + $0x180] sm:$0xff]  ;;  %9179 = vst [vmem:[#allocation36_spill] sm:$0xff] %v7259_v47  ;;  %v8765_v19 = vand.u32 4294901760, %v7259_v47 }
 0x234   : > { %3240 = vmatpush1.msra.mxu1 %v3239_v58  ;;  %2959 = vmatpush1.msra.mxu0 %v7204_v21  ;;  %v8757_v58 = vand.u32 4294901760, %v7222_v27  ;;  %v3275_v16 = vand.u32 4294901760, %v3274_v33  ;;  %v7253_v24 = vand.u32 4294901760, %v2901_v57  ;;  %v2897_v33 = vld [vmem:[#allocation2 + $0x160] sm:$0xff]  ;;  %v3298_v53 = vsub.f32 %v7240_v46, %v8762_v15 }
 0x235   : > { %3246 = vmatprep.subr.mxu1 %v3245_v37  ;;  %2961 = vmatprep.subr.mxu0 %v7214_v34  ;;  %v2900_v37 = vld [vmem:[#allocation2 + $0x178] sm:$0xff]  ;;  %v7284_v4 = vand.u32 4294901760, %v2897_v33  ;;  %v3304_v31 = vsub.f32 %v7259_v47, %v8765_v19 }
 0x236   : > { %3252 = vmatpush1.msra.mxu1 %v3251_v26  ;;  %2963 = vmatpush1.msra.mxu0 %v7224_v48  ;;  %v3269_v26 = vand.u32 4294901760, %v3268_v36  ;;  %v3286_v5 = vsub.f32 %v7222_v27, %v8757_v58  ;;  %9178 = vst [vmem:[#allocation31_spill] sm:$0xff] %v7253_v24  ;;  %v3281_v36 = vand.u32 4294901760, %v3280_v10  ;;  %v7270_v10 = vand.u32 4294901760, %v2899_v43 }
 0x237   : > { %3258 = vmatprep.subr.mxu1 %v3257_v59  ;;  %v2898_v59 = vld [vmem:[#allocation2 + $0x168] sm:$0xff]  ;;  %2965 = vmatprep.subr.mxu0 %v7247_v14  ;;  %9186 = vst [vmem:[#allocation63_spill] sm:$0xff] %v7284_v4 }
 0x238   : > { %3264 = vmatpush1.msra.mxu1 %v3263_v8  ;;  %v7261_v8 = vand.u32 4294901760, %v2900_v37  ;;  %v3287_v58 = vand.u32 4294901760, %v3286_v5  ;;  %9182 = vst [vmem:[#allocation50_spill] sm:$0xff] %v7270_v10  ;;  %2967 = vmatpush1.msra.mxu0 %v7253_v24  ;;  %v2895_v5 = vld [vmem:[#allocation2 + $0x150] sm:$0xff]  ;;  %v7282_v42 = vsub.f32 %v2899_v43, %v7270_v10 }
 0x239   : > { %3270 = vmatprep.subr.mxu1 %v3269_v26  ;;  %v7268_v26 = vsub.f32 %v2901_v57, %v7253_v24  ;;  %v3299_v57 = vand.u32 4294901760, %v3298_v53  ;;  %v7294_v53 = vand.u32 4294901760, %v2896_v20  ;;  %v7304_v19 = vand.u32 4294901760, %v2895_v5 }
 0x23a   : > { %9180 = vst [vmem:[#allocation40_spill] sm:$0xff] %v7261_v8  ;;  %3276 = vmatpush1.msra.mxu1 %v3275_v16  ;;  %v7275_v35 = vsub.f32 %v2900_v37, %v7261_v8  ;;  %v7277_v16 = vand.u32 4294901760, %v2898_v59  ;;  %2969 = vmatprep.subr.mxu0 %v7261_v8  ;;  %9185 = vst [vmem:[#allocation60_spill] sm:$0xff] %v7282_v42 }
 0x23b   : > { %9181 = vst [vmem:[#allocation45_spill] sm:$0xff] %v7268_v26  ;;  %3282 = vmatprep.subr.mxu1 %v3281_v36  ;;  %v8768_v15 = vand.u32 4294901760, %v7268_v26  ;;  %2971 = vmatpush1.msra.mxu0 %v7270_v10  ;;  %9188 = vst [vmem:[#allocation143_spill] sm:$0xff] %v7294_v53  ;;  %v7312_v3 = vsub.f32 %v2896_v20, %v7294_v53 }
 0x23c   : > { %9183 = vst [vmem:[#allocation52_spill] sm:$0xff] %v7275_v35  ;;  %9184 = vst [vmem:[#allocation55_spill] sm:$0xff] %v7277_v16  ;;  %3288 = vmatpush1.msra.mxu1 %v3287_v58  ;;  %v8769_v37 = vand.u32 4294901760, %v7275_v35  ;;  %v7292_v36 = vsub.f32 %v2898_v59, %v7277_v16  ;;  %2973 = vmatprep.subr.mxu0 %v7277_v16  ;;  %v8772_v58 = vand.u32 4294901760, %v7282_v42  ;;  %v3305_v59 = vand.u32 4294901760, %v3304_v31 }
 0x23d   : > { %3294 = vmatprep.subr.mxu1 %v3293_v13  ;;  %v3310_v43 = vsub.f32 %v7268_v26, %v8768_v15  ;;  %v7302_v13 = vsub.f32 %v2897_v33, %v7284_v4  ;;  %9190 = vst [vmem:[#allocation145_spill] sm:$0xff] %v7304_v19  ;;  %2975 = vmatpush1.msra.mxu0 %v7284_v4  ;;  %9191 = vst [vmem:[#allocation146_spill] sm:$0xff] %v7312_v3  ;;  %v2893_v15 = vld [vmem:[#allocation2 + $0x140] sm:$0xff] }
 0x23e   : > { %9187 = vst [vmem:[#allocation142_spill] sm:$0xff] %v7292_v36  ;;  %3300 = vmatpush1.msra.mxu1 %v3299_v57  ;;  %v3316_v28 = vsub.f32 %v7275_v35, %v8769_v37  ;;  %v8777_v57 = vand.u32 4294901760, %v7292_v36  ;;  %2977 = vmatprep.subr.mxu0 %v7294_v53  ;;  %v3322_v38 = vsub.f32 %v7282_v42, %v8772_v58  ;;  %v2891_v35 = vld [vmem:[#allocation2 + $0x130] sm:$0xff] }
 0x23f   : > { %9189 = vst [vmem:[#allocation144_spill] sm:$0xff] %v7302_v13  ;;  %v3311_v33 = vand.u32 4294901760, %v3310_v43  ;;  %v8780_v44 = vand.u32 4294901760, %v7302_v13  ;;  %v7320_v31 = vsub.f32 %v2895_v5, %v7304_v19  ;;  %2979 = vmatpush1.msra.mxu0 %v7304_v19  ;;  %3306 = vmatprep.subr.mxu1 %v3305_v59  ;;  %v8783_v43 = vand.u32 4294901760, %v7312_v3 }
 0x240   : > { %v3317_v37 = vand.u32 4294901760, %v3316_v28  ;;  %v3328_v20 = vsub.f32 %v7292_v36, %v8777_v57  ;;  %v3323_v58 = vand.u32 4294901760, %v3322_v38  ;;  %v7333_v19 = vand.u32 4294901760, %v2893_v15  ;;  %v2890_v28 = vld [vmem:[#allocation2 + $0x128] sm:$0xff]  ;;  %v2889_v38 = vld [vmem:[#allocation2 + $0x120] sm:$0xff]  ;;  %2981 = vmatprep.subr.mxu0 %v7327_v41 }
 0x241   : > { %9192 = vst [vmem:[#allocation147_spill] sm:$0xff] %v7320_v31  ;;  %3312 = vmatpush1.msra.mxu1 %v3311_v33  ;;  %v3334_v5 = vsub.f32 %v7302_v13, %v8780_v44  ;;  %v8788_v42 = vand.u32 4294901760, %v7320_v31  ;;  %v3340_v57 = vsub.f32 %v7312_v3, %v8783_v43  ;;  %v7339_v36 = vsub.f32 %v2894_v60, %v7327_v41  ;;  %v2888_v43 = vld [vmem:[#allocation2 + $0x118] sm:$0xff] }
 0x242   : > { %9194 = vst [vmem:[#allocation149_spill] sm:$0xff] %v7333_v19  ;;  %3318 = vmatprep.subr.mxu1 %v3317_v37  ;;  %v3329_v59 = vand.u32 4294901760, %v3328_v20  ;;  %v7341_v33 = vand.u32 4294901760, %v2892_v50  ;;  %v7348_v37 = vsub.f32 %v2893_v15, %v7333_v19  ;;  %v7350_v20 = vand.u32 4294901760, %v2891_v35  ;;  %2983 = vmatpush1.msra.mxu0 %v7333_v19 }
 0x243   : > { %9195 = vst [vmem:[#allocation150_spill] sm:$0xff] %v7339_v36  ;;  %3324 = vmatpush1.msra.mxu1 %v3323_v58  ;;  %v3335_v44 = vand.u32 4294901760, %v3334_v5  ;;  %v3346_v13 = vsub.f32 %v7320_v31, %v8788_v42  ;;  %v3341_v60 = vand.u32 4294901760, %v3340_v57  ;;  %v8793_v3 = vand.u32 4294901760, %v7339_v36  ;;  %v2887_v5 = vld [vmem:[#allocation2 + $0x110] sm:$0xff] }
 0x244   : > { %9196 = vst [vmem:[#allocation151_spill] sm:$0xff] %v7341_v33  ;;  %9197 = vst [vmem:[#allocation152_spill] sm:$0xff] %v7348_v37  ;;  %3330 = vmatprep.subr.mxu1 %v3329_v59  ;;  %v7355_v41 = vsub.f32 %v2892_v50, %v7341_v33  ;;  %v7357_v58 = vand.u32 4294901760, %v2890_v28  ;;  %2985 = vmatprep.subr.mxu0 %v7341_v33  ;;  %v8798_v42 = vand.u32 4294901760, %v7348_v37  ;;  %v7364_v19 = vand.u32 4294901760, %v2889_v38 }
 0x245   : > { %9198 = vst [vmem:[#allocation153_spill] sm:$0xff] %v7350_v20  ;;  %3336 = vmatpush1.msra.mxu1 %v3335_v44  ;;  %v3347_v15 = vand.u32 4294901760, %v3346_v13  ;;  %v7362_v31 = vsub.f32 %v2891_v35, %v7350_v20  ;;  %2987 = vmatpush1.msra.mxu0 %v7350_v20  ;;  %v3352_v50 = vsub.f32 %v7339_v36, %v8793_v3  ;;  %v7374_v44 = vand.u32 4294901760, %v2888_v43 }
 0x246   : > { %9199 = vst [vmem:[#allocation154_spill] sm:$0xff] %v7355_v41  ;;  %9200 = vst [vmem:[#allocation155_spill] sm:$0xff] %v7357_v58  ;;  %3342 = vmatprep.subr.mxu1 %v3341_v60  ;;  %v8801_v57 = vand.u32 4294901760, %v7355_v41  ;;  %v7372_v59 = vsub.f32 %v2890_v28, %v7357_v58  ;;  %2989 = vmatprep.subr.mxu0 %v7357_v58  ;;  %v3358_v35 = vsub.f32 %v7348_v37, %v8798_v42 }
 0x247   : > { %9201 = vst [vmem:[#allocation156_spill] sm:$0xff] %v7362_v31  ;;  %9202 = vst [vmem:[#allocation157_spill] sm:$0xff] %v7364_v19  ;;  %3348 = vmatpush1.msra.mxu1 %v3347_v15  ;;  %v8804_v13 = vand.u32 4294901760, %v7362_v31  ;;  %v7382_v60 = vsub.f32 %v2889_v38, %v7364_v19  ;;  %v7384_v3 = vand.u32 4294901760, %v2887_v5  ;;  %2991 = vmatpush1.msra.mxu0 %v7364_v19  ;;  %v3353_v28 = vand.u32 4294901760, %v3352_v50 }
 0x248   : > { %9203 = vst [vmem:[#allocation158_spill] sm:$0xff] %v7372_v59  ;;  %9204 = vst [vmem:[#allocation159_spill] sm:$0xff] %v7374_v44  ;;  %v3364_v36 = vsub.f32 %v7355_v41, %v8801_v57  ;;  %v8807_v15 = vand.u32 4294901760, %v7372_v59  ;;  %v7392_v58 = vsub.f32 %v2888_v43, %v7374_v44  ;;  %2993 = vmatprep.subr.mxu0 %v7374_v44  ;;  %v3359_v42 = vand.u32 4294901760, %v3358_v35 }
 0x249   : > { %9205 = vst [vmem:[#allocation160_spill] sm:$0xff] %v7382_v60  ;;  %9206 = vst [vmem:[#allocation161_spill] sm:$0xff] %v7384_v3  ;;  %v3370_v38 = vsub.f32 %v7362_v31, %v8804_v13  ;;  %v8809_v37 = vand.u32 4294901760, %v7382_v60  ;;  %v7400_v50 = vsub.f32 %v2887_v5, %v7384_v3  ;;  %2995 = vmatpush1.msra.mxu0 %v7384_v3  ;;  %3354 = vmatprep.subr.mxu1 %v3353_v28 }
 0x24a   : > { %9207 = vst [vmem:[#allocation162_spill] sm:$0xff] %v7392_v58  ;;  %v3365_v57 = vand.u32 4294901760, %v3364_v36  ;;  %v3376_v43 = vsub.f32 %v7372_v59, %v8807_v15  ;;  %v8811_v41 = vand.u32 4294901760, %v7392_v58  ;;  %3544 = vmatprep.subr.mxu0 %v7102_v1  ;;  %3360 = vmatpush1.msra.mxu1 %v3359_v42  ;;  %v7420_v1 = vpop.f32.mrf.mxu1 }
 0x24b   : > { %9208 = vst [vmem:[#allocation163_spill] sm:$0xff] %v7400_v50  ;;  %v3371_v35 = vand.u32 4294901760, %v3370_v38  ;;  %v3382_v13 = vsub.f32 %v7382_v60, %v8809_v37  ;;  %v8810_v5 = vand.u32 4294901760, %v7400_v50  ;;  %v7418_v38 = vpop.f32.mrf.mxu0  ;;  %9210 = vst [vmem:[#allocation165_spill] sm:$0xff] %v7420_v1 }
 0x24c   : > { %3366 = vmatprep.subr.mxu1 %v3365_v57  ;;  %v3377_v31 = vand.u32 4294901760, %v3376_v43  ;;  %v3388_v36 = vsub.f32 %v7392_v58, %v8811_v41  ;;  %9209 = vst [vmem:[#allocation164_spill] sm:$0xff] %v7418_v38 }
 0x24d   : > { %3372 = vmatpush1.msra.mxu1 %v3371_v35  ;;  %v3383_v28 = vand.u32 4294901760, %v3382_v13  ;;  %v3394_v15 = vsub.f32 %v7400_v50, %v8810_v5 }
 0x24e   : > { %3378 = vmatprep.subr.mxu1 %v3377_v31  ;;  %v3389_v42 = vand.u32 4294901760, %v3388_v36  ;;  %v7431_v31 = vld [vmem:[#allocation2 + $0x220] ss:$0 sm:$0xff] }
 0x24f   : > { %3384 = vmatpush1.msra.mxu1 %v3383_v28  ;;  %v3395_v37 = vand.u32 4294901760, %v3394_v15 }
 0x250   : > { %3390 = vmatprep.subr.mxu1 %v3389_v42 }
 0x251   : > { %3396 = vmatpush1.msra.mxu1 %v3395_v37 }
 0x252   : > { %3800 = vmatprep.subr.mxu1 %v7097_v63 }
 0x25a   : > { %v7422_v57 = vpop.f32.mrf.mxu1 }
 0x25c   : > { %v7427_v13 = vpop.f32.mrf.mxu1 }
 0x262   : > { %v5086_v36 = vpop.f32.mrf.mxu1 }
 0x264   : > { %v7436_v15 = vpop.f32.mrf.mxu1 }
 0x267   : > { %v7424_v43 = vpop.f32.mrf.mxu0 }
 0x269   : > { %v7429_v35 = vpop.f32.mrf.mxu0 }
 0x26a   : > { %v1673_v0 = vadd.f32 %v7429_v35, %v7431_v31 }
 0x26b   : > { %v5089_v42 = vpop.f32.mrf.mxu1 }
 0x26d   : > { %v7440_v37 = vpop.f32.mrf.mxu1 }
 0x270   : > { %v5030_v5 = vpop.f32.mrf.mxu0 }
 0x271   : > { %v1703_v41 = vadd.f32 %v5030_v5, %v7431_v31 }
 0x272   : > { %v7438_v1 = vpop.f32.mrf.mxu0 }
 0x273   : > { %v7434_v28 = vadd.f32 %v5086_v36, %v1703_v41  ;;  %v5092_v50 = vpop.f32.mrf.mxu1 }
 0x275   : > { %v7447_v63 = vpop.f32.mrf.mxu1 }
 0x27b   : > { %v5095_v36 = vpop.f32.mrf.mxu1 }
 0x27c   : > { %v5033_v38 = vpop.f32.mrf.mxu0 }
 0x27d   : > { %v1723_v58 = vadd.f32 %v5033_v38, %v7431_v31  ;;  %v7455_v33 = vpop.f32.mrf.mxu1 }
 0x27e   : > { %v7443_v60 = vpop.f32.mrf.mxu0 }
 0x27f   : > { %v7445_v59 = vadd.f32 %v5089_v42, %v1723_v58  ;;  %v1713_v35 = vadd.f32 %v7443_v60, %v7431_v31 }
 0x280   : > { %v5036_v5 = vpop.f32.mrf.mxu0 }
 0x281   : > { %v1743_v41 = vadd.f32 %v5036_v5, %v7431_v31 }
 0x282   : > { %v7450_v3 = vpop.f32.mrf.mxu0 }
 0x283   : > { %v7452_v44 = vadd.f32 %v5092_v50, %v1743_v41  ;;  %v5098_v53 = vpop.f32.mrf.mxu1 }
 0x284   : > { %v5039_v19 = vpop.f32.mrf.mxu0 }
 0x285   : > { %v1763_v20 = vadd.f32 %v5039_v19, %v7431_v31  ;;  %v7461_v26 = vpop.f32.mrf.mxu1 }
 0x286   : > { %v7459_v58 = vpop.f32.mrf.mxu0 }
 0x287   : > { %v7457_v38 = vadd.f32 %v5095_v36, %v1763_v20 }
 0x28a   : > { %v5042_v42 = vpop.f32.mrf.mxu0 }
 0x28b   : > { %v1783_v5 = vadd.f32 %v5042_v42, %v7431_v31  ;;  %v5101_v4 = vpop.f32.mrf.mxu1 }
 0x28c   : > { %v7466_v50 = vpop.f32.mrf.mxu0 }
 0x28d   : > { %v7464_v47 = vadd.f32 %v5098_v53, %v1783_v5  ;;  %v7468_v41 = vpop.f32.mrf.mxu1 }
 0x292   : > { %v5045_v19 = vpop.f32.mrf.mxu0 }
 0x293   : > { %v1803_v16 = vadd.f32 %v5045_v19, %v7431_v31 }
 0x294   : > { %v5104_v20 = vpop.f32.mrf.mxu1  ;;  %v7475_v39 = vpop.f32.mrf.mxu0 }
 0x295   : > { %v7473_v46 = vadd.f32 %v5101_v4, %v1803_v16 }
 0x296   : > { %v7471_v36 = vpop.f32.mrf.mxu1 }
 0x297   : > { %9211 = vst [vmem:[#allocation166_spill] sm:$0xff] %v7471_v36  ;;  %9212 = vst [vmem:[#allocation167_spill] sm:$0xff] %v7473_v46  ;;  %v1683_v36 = vadd.f32 %v7424_v43, %v7431_v31 }
 0x298   : > { %v5195_v10 = vpop.f32.mrf.mxu1 }
 0x29a   : > { %v2361_v8 = vpop.f32.mrf.mxu1 }
 0x29c   : > { %v5048_v42 = vpop.f32.mrf.mxu0  ;;  %v5198_v27 = vpop.f32.mrf.mxu1 }
 0x29d   : > { %v1823_v53 = vadd.f32 %v5048_v42, %v7431_v31 }
 0x29e   : > { %v7478_v5 = vpop.f32.mrf.mxu0  ;;  %v2377_v24 = vpop.f32.mrf.mxu1 }
 0x29f   : > { %9213 = vst [vmem:[#allocation168_spill] sm:$0xff] %v7478_v5  ;;  %v7480_v7 = vadd.f32 %v5104_v20, %v1823_v53  ;;  %v1974_v5 = vadd.f32 %v7427_v13, %v1673_v0  ;;  %v1733_v13 = vadd.f32 %v7450_v3, %v7431_v31 }
 0x2a0   : > { %v5139_v14 = vpop.f32.mrf.mxu0 }
 0x2a1   : > { %9214 = vst [vmem:[#allocation169_spill] sm:$0xff] %v7480_v7  ;;  %v7482_v19 = vpop.f32.mrf.mxu1 }
 0x2a2   : > { %v2167_v11 = vpop.f32.mrf.mxu0 }
 0x2a3   : > { %v7484_v48 = vpop.f32.mrf.mxu1 }
 0x2a6   : > { %v5142_v4 = vpop.f32.mrf.mxu0 }
 0x2a7   : > { %v7486_v16 = vpop.f32.mrf.mxu1 }
 0x2a8   : > { %v2181_v9 = vpop.f32.mrf.mxu0 }
 0x2a9   : > { %v7488_v34 = vpop.f32.mrf.mxu1 }
 0x2ac   : > { %v5145_v30 = vpop.f32.mrf.mxu0 }
 0x2ad   : > { %v7490_v21 = vpop.f32.mrf.mxu1  ;;  %v2203_v60 = vadd.f32 %v5145_v30, %v7445_v59 }
 0x2ae   : > { %v2195_v42 = vpop.f32.mrf.mxu0 }
 0x2af   : > { %v7492_v2 = vpop.f32.mrf.mxu1 }
 0x2b2   : > { %v7494_v20 = vpop.f32.mrf.mxu0 }
 0x2b3   : > { %v7496_v53 = vpop.f32.mrf.mxu1 }
 0x2b4   : > { %9215 = vst [vmem:[#allocation170_spill] sm:$0xff] %v7496_v53  ;;  %v2209_v18 = vpop.f32.mrf.mxu0 }
 0x2b5   : > { %v7498_v55 = vpop.f32.mrf.mxu1 }
 0x2b8   : > { %v7500_v7 = vpop.f32.mrf.mxu0 }
 0x2b9   : > { %v7502_v61 = vpop.f32.mrf.mxu1 }
 0x2ba   : > { %9216 = vst [vmem:[#allocation171_spill] sm:$0xff] %v7502_v61  ;;  %v7504_v40 = vpop.f32.mrf.mxu0  ;;  %v1980_v61 = vadd.f32 %v7422_v57, %v1683_v36  ;;  %v2189_v57 = vadd.f32 %v5142_v4, %v7434_v28 }
 0x2bb   : > { %v7506_v25 = vpop.f32.mrf.mxu1 }
 0x2bc   : > { %9217 = vst [vmem:[#allocation172_spill] sm:$0xff] %v7506_v25  ;;  %v2175_v54 = vadd.f32 %v5139_v14, %v1980_v61  ;;  %v2386_v28 = vadd.f32 %v5198_v27, %v2189_v57 }
 0x2be   : > { %v7508_v17 = vpop.f32.mrf.mxu0  ;;  %v2370_v29 = vadd.f32 %v5195_v10, %v2175_v54 }
 0x2bf   : > { %v7510_v56 = vpop.f32.mrf.mxu1 }
 0x2c0   : > { %9218 = vst [vmem:[#allocation173_spill] sm:$0xff] %v7510_v56  ;;  %v7512_v32 = vpop.f32.mrf.mxu0  ;;  %v1693_v56 = vadd.f32 %v7438_v1, %v7431_v31 }
 0x2c1   : > { %v7516_v49 = vpop.f32.mrf.mxu1 }
 0x2c2   : > { %9219 = vst [vmem:[#allocation174_spill] sm:$0xff] %v7516_v49  ;;  %v2168_v49 = vadd.f32 %v2167_v11, %v1974_v5  ;;  %v1986_v36 = vadd.f32 %v7436_v15, %v1693_v56  ;;  %v1998_v11 = vadd.f32 %v7440_v37, %v1713_v35  ;;  %v2402_v37 = vadd.f32 %v7482_v19, %v2203_v60 }
 0x2c4   : > { %v7520_v46 = vpop.f32.mrf.mxu0  ;;  %v2182_v61 = vadd.f32 %v2181_v9, %v1986_v36  ;;  %v2362_v0 = vadd.f32 %v2361_v8, %v2168_v49  ;;  %v2196_v4 = vadd.f32 %v2195_v42, %v1998_v11 }
 0x2c5   : > { %9220 = vst [vmem:[#allocation175_spill] sm:$0xff] %v7520_v46  ;;  %v5307_v12 = vpop.f32.mrf.mxu1 }
 0x2c6   : > { %v7523_v25 = vpop.f32.mrf.mxu0  ;;  %v2378_v9 = vadd.f32 %v2377_v24, %v2182_v61  ;;  %v2394_v27 = vadd.f32 %v7484_v48, %v2196_v4 }
 0x2c7   : > { %9221 = vst [vmem:[#allocation176_spill] sm:$0xff] %v7523_v25  ;;  %v2777_v22 = vpop.f32.mrf.mxu1 }
 0x2c8   : > { %v7528_v43 = vpop.f32.mrf.mxu0 }
 0x2c9   : > { %9222 = vst [vmem:[#allocation177_spill] sm:$0xff] %v7528_v43  ;;  %v5310_v53 = vpop.f32.mrf.mxu1 }
 0x2ca   : > { %v7532_v46 = vpop.f32.mrf.mxu0 }
 0x2cb   : > { %9223 = vst [vmem:[#allocation178_spill] sm:$0xff] %v7532_v46  ;;  %v2789_v25 = vpop.f32.mrf.mxu1 }
 0x2cc   : > { %v5251_v1 = vpop.f32.mrf.mxu0 }
 0x2cd   : > { %v2607_v14 = vadd.f32 %v5251_v1, %v2370_v29  ;;  %v5313_v46 = vpop.f32.mrf.mxu1  ;;  %v2010_v29 = vadd.f32 %v7447_v63, %v1733_v13  ;;  %v2217_v63 = vadd.f32 %v7494_v20, %v7452_v44  ;;  %v1773_v44 = vadd.f32 %v7466_v50, %v7431_v31 }
 0x2ce   : > { %v2600_v5 = vpop.f32.mrf.mxu0 }
 0x2cf   : > { %v2784_v43 = vadd.f32 %v5307_v12, %v2607_v14  ;;  %v2601_v45 = vadd.f32 %v2600_v5, %v2362_v0  ;;  %v2801_v3 = vpop.f32.mrf.mxu1  ;;  %v1753_v12 = vadd.f32 %v7459_v58, %v7431_v31  ;;  %v2210_v59 = vadd.f32 %v2209_v18, %v2010_v29 }
 0x2d0   : > { %v5254_v56 = vpop.f32.mrf.mxu0  ;;  %v2418_v48 = vadd.f32 %v7486_v16, %v2217_v63  ;;  %v2034_v11 = vadd.f32 %v7461_v26, %v1773_v44 }
 0x2d1   : > { %5416 = vtanh.f32 %v2784_v43  ;;  %v2778_v54 = vadd.f32 %v2777_v22, %v2601_v45  ;;  %v2619_v10 = vadd.f32 %v5254_v56, %v2386_v28  ;;  %v5316_v42 = vpop.f32.mrf.mxu1  ;;  %v2022_v19 = vadd.f32 %v7455_v33, %v1753_v12 }
 0x2d2   : > { %v2612_v49 = vpop.f32.mrf.mxu0  ;;  %v2410_v58 = vadd.f32 %v7488_v34, %v2210_v59  ;;  %v2231_v33 = vadd.f32 %v7500_v7, %v7457_v38  ;;  %v2238_v4 = vadd.f32 %v7512_v32, %v2034_v11  ;;  %v9239_v11 = vld [vmem:[#allocation175_spill] sm:$0xff] }
 0x2d3   : > { %5418 = vtanh.f32 %v2778_v54  ;;  %v2796_v8 = vadd.f32 %v5310_v53, %v2619_v10  ;;  %v2613_v15 = vadd.f32 %v2612_v49, %v2378_v9  ;;  %v2813_v36 = vpop.f32.mrf.mxu1 }
 0x2d4   : > { %v5257_v30 = vpop.f32.mrf.mxu0  ;;  %v2434_v50 = vadd.f32 %v7490_v21, %v2231_v33 }
 0x2d5   : > { %5420 = vtanh.f32 %v2796_v8  ;;  %v2790_v45 = vadd.f32 %v2789_v25, %v2613_v15  ;;  %v2631_v22 = vadd.f32 %v5257_v30, %v2402_v37  ;;  %v2224_v25 = vadd.f32 %v7504_v40, %v2022_v19  ;;  %v5319_v0 = vpop.f32.mrf.mxu1  ;;  %v9231_v19 = vld [vmem:[#allocation170_spill] sm:$0xff] }
 0x2d6   : > { %v2624_v24 = vpop.f32.mrf.mxu0  ;;  %v2442_v8 = vadd.f32 %v7498_v55, %v2238_v4  ;;  %v9243_v4 = vld [vmem:[#allocation166_spill] sm:$0xff] }
 0x2d7   : > { %5422 = vtanh.f32 %v2790_v45  ;;  %v2625_v53 = vadd.f32 %v2624_v24, %v2394_v27  ;;  %v2808_v35 = vadd.f32 %v5313_v46, %v2631_v22  ;;  %v2426_v16 = vadd.f32 %v7492_v2, %v2224_v25  ;;  %v2825_v26 = vpop.f32.mrf.mxu1  ;;  %v9229_v24 = vld [vmem:[#allocation26_spill] sm:$0xff] }
 0x2d8   : > { %v5260_v43 = vpop.f32.mrf.mxu0  ;;  %v1793_v2 = vadd.f32 %v7475_v39, %v7431_v31 }
 0x2d9   : > { %v2802_v57 = vadd.f32 %v2801_v3, %v2625_v53  ;;  %v2643_v20 = vadd.f32 %v5260_v43, %v2418_v48  ;;  %v2245_v3 = vadd.f32 %v7508_v17, %v7464_v47  ;;  %v5322_v12 = vpop.f32.mrf.mxu1  ;;  %v9228_v47 = vld [vmem:[#allocation38_spill] sm:$0xff]  ;;  %v9230_v53 = vld [vmem:[#allocation176_spill] sm:$0xff] }
 0x2da   : > { %v2636_v18 = vpop.f32.mrf.mxu0  ;;  %v2046_v37 = vadd.f32 %v7468_v41, %v1793_v2  ;;  %v9233_v48 = vld [vmem:[#allocation28_spill] sm:$0xff] }
 0x2db   : > { %5424 = vtanh.f32 %v2802_v57  ;;  %v2637_v1 = vadd.f32 %v2636_v18, %v2410_v58  ;;  %v2820_v5 = vadd.f32 %v5316_v42, %v2643_v20  ;;  %v9234_v18 = vld [vmem:[#allocation168_spill] sm:$0xff]  ;;  %v9235_v20 = vld [vmem:[#allocation34_spill] sm:$0xff] }
 0x2dc   : > { %v5263_v61 = vpop.f32.mrf.mxu0  ;;  %5426 = vtanh.f32 %v2808_v35  ;;  %v2252_v43 = vadd.f32 %v9230_v53, %v2046_v37  ;;  %v2450_v35 = vadd.f32 %v9231_v19, %v2245_v3  ;;  %v1813_v25 = vadd.f32 %v9234_v18, %v7431_v31  ;;  %v9250_v19 = vld [vmem:[#allocation41_spill] sm:$0xff] }
 0x2dd   : > { %v2814_v46 = vadd.f32 %v2813_v36, %v2637_v1  ;;  %v2655_v10 = vadd.f32 %v5263_v61, %v2434_v50  ;;  %v2837_v36 = vpop.f32.mrf.mxu1  ;;  %v9240_v50 = vld [vmem:[#allocation172_spill] sm:$0xff] }
 0x2de   : > { %v5417_v14 = vpop.eup %5416  ;;  %v2648_v34 = vpop.f32.mrf.mxu0  ;;  %v2058_v2 = vadd.f32 %v9243_v4, %v1813_v25 }
 0x2df   : > { %v7556_v13 = vand.u32 4294901760, %v5417_v14  ;;  %5428 = vtanh.f32 %v2814_v46  ;;  %v2649_v28 = vadd.f32 %v2648_v34, %v2426_v16  ;;  %v2832_v30 = vadd.f32 %v5319_v0, %v2655_v10  ;;  %v9236_v46 = vld [vmem:[#allocation20_spill] sm:$0xff] }
 0x2e0   : > { %v5419_v40 = vpop.eup %5418  ;;  %v5266_v7 = vpop.f32.mrf.mxu0  ;;  %5430 = vtanh.f32 %v2820_v5 }
 0x2e1   : > { %9224 = vst [vmem:[#allocation179_spill] sm:$0xff] %v7556_v13  ;;  %v7559_v60 = vand.u32 4294901760, %v5419_v40  ;;  %v7564_v56 = vsub.f32 %v5417_v14, %v7556_v13  ;;  %v2826_v21 = vadd.f32 %v2825_v26, %v2649_v28  ;;  %v2667_v1 = vadd.f32 %v5266_v7, %v2450_v35  ;;  %v9241_v7 = vld [vmem:[#allocation23_spill] sm:$0xff]  ;;  %v5325_v26 = vpop.f32.mrf.mxu1 }
 0x2e2   : > { %v5421_v38 = vpop.eup %5420  ;;  %v2660_v29 = vpop.f32.mrf.mxu0  ;;  %v2458_v28 = vadd.f32 %v9240_v50, %v2252_v43  ;;  %v9249_v43 = vld [vmem:[#allocation42_spill] sm:$0xff] }
 0x2e3   : > { %9225 = vst [vmem:[#allocation180_spill] sm:$0xff] %v7559_v60  ;;  %v7569_v54 = vsub.f32 %v5419_v40, %v7559_v60  ;;  %3431 = vmatmul.mubr.f32.vlgmr.msra.gmra.mxu1 %v7559_v60  ;;  %v7574_v32 = vand.u32 4294901760, %v5421_v38  ;;  %v8907_v39 = vand.u32 4294901760, %v7564_v56  ;;  %v2661_v17 = vadd.f32 %v2660_v29, %v2442_v8  ;;  %v9238_v40 = vld [vmem:[#allocation167_spill] sm:$0xff]  ;;  %v9244_v8 = vld [vmem:[#allocation114_spill] sm:$0xff]  ;;  %v2849_v35 = vpop.f32.mrf.mxu1 }
 0x2e4   : > { %v5423_v9 = vpop.eup %5422  ;;  %3436 = vmatprep.mubr.f32.mxu1 %v9148_v62  ;;  %3802 = vmatpush1.msra.mxu1 %v7099_v51  ;;  %5432 = vtanh.f32 %v2826_v21  ;;  %v5269_v45 = vpop.f32.mrf.mxu0  ;;  %v2259_v5 = vadd.f32 %v9239_v11, %v9238_v40  ;;  %v2844_v10 = vadd.f32 %v5322_v12, %v2667_v1  ;;  %v9246_v12 = vld [vmem:[#allocation37_spill] sm:$0xff]  ;;  %v9252_v1 = vld [vmem:[#allocation44_spill] sm:$0xff] }
 0x2e5   : > { %9226 = vst [vmem:[#allocation181_spill] sm:$0xff] %v7574_v32  ;;  %v8908_v49 = vand.u32 4294901760, %v7569_v54  ;;  %3804 = vmatprep.subr.mxu1 %v7104_v52  ;;  %v7582_v15 = vand.u32 4294901760, %v5423_v9  ;;  %v7597_v41 = vsub.f32 %v5421_v38, %v7574_v32  ;;  %v3043_v63 = vsub.f32 %v7564_v56, %v8907_v39  ;;  %v9242_v38 = vld [vmem:[#allocation48_spill] sm:$0xff]  ;;  %v9254_v11 = vld [vmem:[#allocation169_spill] sm:$0xff] }
 0x2e6   : > { %3806 = vmatpush1.msra.mxu1 %v7110_v23  ;;  %5434 = vtanh.f32 %v2832_v30  ;;  %v2838_v44 = vadd.f32 %v2837_v36, %v2661_v17  ;;  %v2672_v33 = vpop.f32.mrf.mxu0  ;;  %v9247_v17 = vld [vmem:[#allocation178_spill] sm:$0xff] }
 0x2e7   : > { %9227 = vst [vmem:[#allocation182_spill] sm:$0xff] %v7582_v15  ;;  %3438 = vmatmul.mubr.f32.gmra.mxu1 %v7556_v13  ;;  %v3032_v27 = vsub.f32 %v7569_v54, %v8908_v49  ;;  %3808 = vmatprep.subr.mxu1 %v7117_v6  ;;  %v7593_v55 = vsub.f32 %v5423_v9, %v7582_v15  ;;  %v8904_v61 = vand.u32 4294901760, %v7597_v41  ;;  %v3044_v14 = vand.u32 4294901760, %v3043_v63  ;;  %v9248_v63 = vld [vmem:[#allocation171_spill] sm:$0xff] }
 0x2e8   : > { %v5425_v59 = vpop.eup %5424  ;;  %3443 = vmatprep.mubr.f32.mxu1 %v9148_v62  ;;  %3810 = vmatpush1.msra.mxu1 %v9228_v47  ;;  %5436 = vtanh.f32 %v2838_v44  ;;  %v2673_v9 = vadd.f32 %v2672_v33, %v2458_v28  ;;  %v5272_v3 = vpop.f32.mrf.mxu0  ;;  %v2466_v53 = vadd.f32 %v9248_v63, %v2259_v5  ;;  %v9255_v5 = vld [vmem:[#allocation177_spill] sm:$0xff]  ;;  %v9256_v28 = vld [vmem:[#allocation174_spill] sm:$0xff]  ;;  %v9285_v13 = vld [vmem:[#allocation143_spill] sm:$0xff] }
 0x2e9   : > { %v3033_v22 = vand.u32 4294901760, %v3032_v27  ;;  %3812 = vmatprep.subr.mxu1 %v9229_v24  ;;  %v5427_v42 = vpop.eup %5426  ;;  %v8905_v57 = vand.u32 4294901760, %v7593_v55  ;;  %v7606_v58 = vand.u32 4294901760, %v5425_v59  ;;  %v3065_v21 = vsub.f32 %v7597_v41, %v8904_v61 }
 0x2ea   : > { %3814 = vmatpush1.msra.mxu1 %v9233_v48  ;;  %v7620_v34 = vand.u32 4294901760, %v5427_v42  ;;  %5438 = vtanh.f32 %v2844_v10  ;;  %v2679_v18 = vadd.f32 %v5269_v45, %v2466_v53  ;;  %v2850_v25 = vadd.f32 %v2849_v35, %v2673_v9  ;;  %v2684_v36 = vpop.f32.mrf.mxu0  ;;  %v9258_v10 = vld [vmem:[#allocation53_spill] sm:$0xff]  ;;  %v5328_v9 = vpop.f32.mrf.mxu1 }
 0x2eb   : > { %9232 = vst [vmem:[#allocation38_spill] sm:$0xff] %v7606_v58  ;;  %3034 = vmatmul.mubr.f32.vlgmr.msra.gmra.mxu0 %v3033_v22  ;;  %3445 = vmatmul.mubr.f32.gmra.mxu1 %v7582_v15  ;;  %v3054_v31 = vsub.f32 %v7593_v55, %v8905_v57  ;;  %v7623_v0 = vsub.f32 %v5425_v59, %v7606_v58  ;;  %v3066_v44 = vand.u32 4294901760, %v3065_v21  ;;  %v9283_v15 = vld [vmem:[#allocation63_spill] sm:$0xff] }
 0x2ec   : > { %3547 = vmatpush1.msra.mxu0 %v9235_v20  ;;  %3039 = vmatprep.mubr.f32.mxu0 %v9148_v62  ;;  %9237 = vst [vmem:[#allocation26_spill] sm:$0xff] %v7620_v34  ;;  %v5429_v16 = vpop.eup %5428  ;;  %v7643_v59 = vsub.f32 %v5427_v42, %v7620_v34  ;;  %v2266_v22 = vadd.f32 %v9247_v17, %v2058_v2  ;;  %v9257_v2 = vld [vmem:[#allocation32_spill] sm:$0xff]  ;;  %5440 = vtanh.f32 %v2850_v25  ;;  %v9262_v25 = vld [vmem:[#allocation173_spill] sm:$0xff] }
 0x2ed   : > { %3450 = vmatprep.mubr.f32.mxu1 %v9148_v62  ;;  %3550 = vmatprep.subr.mxu0 %v9236_v46  ;;  %v5431_v29 = vpop.eup %5430  ;;  %v3055_v37 = vand.u32 4294901760, %v3054_v31  ;;  %v8902_v30 = vand.u32 4294901760, %v7623_v0  ;;  %v7639_v27 = vand.u32 4294901760, %v5429_v16  ;;  %v9253_v31 = vld [vmem:[#allocation46_spill] sm:$0xff]  ;;  %v2273_v50 = vadd.f32 %v9255_v5, %v9254_v11  ;;  %v2861_v11 = vpop.f32.mrf.mxu1 }
 0x2ee   : > { %3553 = vmatpush1.msra.mxu0 %v9241_v7  ;;  %3816 = vmatprep.subr.mxu1 %v9242_v38  ;;  %v7652_v42 = vand.u32 4294901760, %v5431_v29  ;;  %v2474_v4 = vadd.f32 %v9256_v28, %v2266_v22  ;;  %v2856_v21 = vadd.f32 %v5325_v26, %v2679_v18  ;;  %v9259_v22 = vld [vmem:[#allocation54_spill] sm:$0xff]  ;;  %v9261_v18 = vld [vmem:[#allocation61_spill] sm:$0xff] }
 0x2ef   : > { %3045 = vmatmul.mubr.f32.gmra.mxu0 %v3044_v14  ;;  %3452 = vmatmul.mubr.f32.gmra.mxu1 %v7574_v32  ;;  %9245 = vst [vmem:[#allocation176_spill] sm:$0xff] %v7639_v27  ;;  %v3076_v33 = vsub.f32 %v7623_v0, %v8902_v30  ;;  %v8901_v14 = vand.u32 4294901760, %v7643_v59  ;;  %v7661_v45 = vsub.f32 %v5429_v16, %v7639_v27  ;;  %v9267_v30 = vld [vmem:[#allocation18_spill] sm:$0xff] }
 0x2f0   : > { %3050 = vmatprep.mubr.f32.mxu0 %v9148_v62  ;;  %3457 = vmatprep.mubr.f32.mxu1 %v9148_v62  ;;  %9251 = vst [vmem:[#allocation170_spill] sm:$0xff] %v7652_v42  ;;  %v7672_v16 = vsub.f32 %v5431_v29, %v7652_v42  ;;  %v9264_v29 = vld [vmem:[#allocation12_spill] sm:$0xff]  ;;  %5442 = vtanh.f32 %v2856_v21  ;;  %v9268_v21 = vld [vmem:[#allocation57_spill] sm:$0xff] }
 0x2f1   : > { %3556 = vmatprep.subr.mxu0 %v9244_v8  ;;  %3818 = vmatpush1.msra.mxu1 %v9246_v12  ;;  %v5433_v40 = vpop.eup %5432  ;;  %v3077_v63 = vand.u32 4294901760, %v3076_v33  ;;  %v3087_v53 = vsub.f32 %v7643_v59, %v8901_v14  ;;  %v8903_v35 = vand.u32 4294901760, %v7661_v45  ;;  %v9266_v14 = vld [vmem:[#allocation47_spill] sm:$0xff] }
 0x2f2   : > { %3559 = vmatpush1.msra.mxu0 %v9249_v43  ;;  %3820 = vmatprep.subr.mxu1 %v9250_v19  ;;  %v7679_v26 = vand.u32 4294901760, %v5433_v40 }
 0x2f3   : > { %3056 = vmatmul.mubr.f32.gmra.mxu0 %v3055_v37  ;;  %3459 = vmatmul.mubr.f32.gmra.mxu1 %v7606_v58  ;;  %v2685_v37 = vadd.f32 %v2684_v36, %v2474_v4  ;;  %v5435_v17 = vpop.eup %5434  ;;  %v2482_v36 = vadd.f32 %v9262_v25, %v2273_v50  ;;  %v3088_v50 = vand.u32 4294901760, %v3087_v53  ;;  %v3098_v25 = vsub.f32 %v7661_v45, %v8903_v35  ;;  %v9270_v35 = vld [vmem:[#allocation10_spill] sm:$0xff]  ;;  %v9287_v58 = vld [vmem:[#allocation52_spill] sm:$0xff] }
 0x2f4   : > { %3061 = vmatprep.mubr.f32.mxu0 %v9148_v62  ;;  %3464 = vmatprep.mubr.f32.mxu1 %v9148_v62  ;;  %9260 = vst [vmem:[#allocation28_spill] sm:$0xff] %v7679_v26  ;;  %v7688_v28 = vand.u32 4294901760, %v5435_v17 }
 0x2f5   : > { %3562 = vmatprep.subr.mxu0 %v9252_v1  ;;  %3822 = vmatpush1.msra.mxu1 %v9253_v31  ;;  %v2691_v33 = vadd.f32 %v5272_v3, %v2482_v36  ;;  %v2862_v5 = vadd.f32 %v2861_v11, %v2685_v37  ;;  %v5437_v4 = vpop.eup %5436  ;;  %v7697_v3 = vsub.f32 %v5433_v40, %v7679_v26  ;;  %v9269_v37 = vld [vmem:[#allocation30_spill] sm:$0xff]  ;;  %v3099_v40 = vand.u32 4294901760, %v3098_v25 }
 0x2f6   : > { %3565 = vmatpush1.msra.mxu0 %v9257_v2  ;;  %3824 = vmatprep.subr.mxu1 %v9258_v10  ;;  %9265 = vst [vmem:[#allocation168_spill] sm:$0xff] %v7688_v28  ;;  %v7705_v53 = vsub.f32 %v5435_v17, %v7688_v28  ;;  %v7712_v57 = vand.u32 4294901760, %v5437_v4 }
 0x2f7   : > { %3067 = vmatmul.mubr.f32.gmra.mxu0 %v3066_v44  ;;  %3466 = vmatmul.mubr.f32.gmra.mxu1 %v7620_v34  ;;  %v9263_v44 = vld [vmem:[#allocation58_spill] sm:$0xff]  ;;  %v2868_v36 = vadd.f32 %v5328_v9, %v2691_v33  ;;  %5444 = vtanh.f32 %v2862_v5  ;;  %v5439_v11 = vpop.eup %5438  ;;  %v9272_v9 = vld [vmem:[#allocation31_spill] sm:$0xff]  ;;  %v9273_v33 = vld [vmem:[#allocation16_spill] sm:$0xff] }
 0x2f8   : > { %3072 = vmatprep.mubr.f32.mxu0 %v9148_v62  ;;  %3471 = vmatprep.mubr.f32.mxu1 %v9148_v62  ;;  %9271 = vst [vmem:[#allocation34_spill] sm:$0xff] %v7712_v57  ;;  %v9274_v5 = vld [vmem:[#allocation40_spill] sm:$0xff]  ;;  %v8928_v17 = vand.u32 4294901760, %v7705_v53 }
 0x2f9   : > { %3568 = vmatprep.subr.mxu0 %v9259_v22  ;;  %3826 = vmatpush1.msra.mxu1 %v9261_v18  ;;  %5446 = vtanh.f32 %v2868_v36  ;;  %v5441_v25 = vpop.eup %5440  ;;  %v7729_v36 = vsub.f32 %v5437_v4, %v7712_v57  ;;  %v9281_v34 = vld [vmem:[#allocation36_spill] sm:$0xff] }
 0x2fa   : > { %3571 = vmatpush1.msra.mxu0 %v9263_v44  ;;  %3828 = vmatprep.subr.mxu1 %v9264_v29  ;;  %v7741_v32 = vand.u32 4294901760, %v5441_v25 }
 0x2fb   : > { %3078 = vmatmul.mubr.f32.gmra.mxu0 %v3077_v63  ;;  %3473 = vmatmul.mubr.f32.gmra.mxu1 %v7639_v27  ;;  %v8906_v63 = vand.u32 4294901760, %v7672_v16  ;;  %9278 = vst [vmem:[#allocation167_spill] sm:$0xff] %v7729_v36  ;;  %v9280_v27 = vld [vmem:[#allocation55_spill] sm:$0xff] }
 0x2fc   : > { %3083 = vmatprep.mubr.f32.mxu0 %v9148_v62  ;;  %3478 = vmatprep.mubr.f32.mxu1 %v9148_v62  ;;  %9282 = vst [vmem:[#allocation175_spill] sm:$0xff] %v7741_v32 }
 0x2fd   : > { %3574 = vmatprep.subr.mxu0 %v9266_v14  ;;  %3830 = vmatpush1.msra.mxu1 %v9267_v30  ;;  %v3109_v61 = vsub.f32 %v7672_v16, %v8906_v63  ;;  %v9275_v63 = vld [vmem:[#allocation22_spill] sm:$0xff] }
 0x2fe   : > { %3577 = vmatpush1.msra.mxu0 %v9268_v21  ;;  %3832 = vmatprep.subr.mxu1 %v9269_v37 }
 0x2ff   : > { %3089 = vmatmul.mubr.f32.gmra.mxu0 %v3088_v50  ;;  %3480 = vmatmul.mubr.f32.gmra.mxu1 %v7652_v42  ;;  %v8915_v50 = vand.u32 4294901760, %v7697_v3  ;;  %v3110_v39 = vand.u32 4294901760, %v3109_v61  ;;  %v7725_v42 = vand.u32 4294901760, %v5439_v11  ;;  %v3131_v61 = vsub.f32 %v7705_v53, %v8928_v17 }
 0x300   : > { %3094 = vmatprep.mubr.f32.mxu0 %v9148_v62  ;;  %3485 = vmatprep.mubr.f32.mxu1 %v9148_v62 }
 0x301   : > { %3580 = vmatprep.subr.mxu0 %v9270_v35  ;;  %3834 = vmatpush1.msra.mxu1 %v9272_v9  ;;  %v3120_v49 = vsub.f32 %v7697_v3, %v8915_v50  ;;  %9276 = vst [vmem:[#allocation20_spill] sm:$0xff] %v7725_v42  ;;  %v5443_v50 = vpop.eup %5442  ;;  %v3132_v60 = vand.u32 4294901760, %v3131_v61 }
 0x302   : > { %3583 = vmatpush1.msra.mxu0 %v9273_v33  ;;  %3836 = vmatprep.subr.mxu1 %v9274_v5 }
 0x303   : > { %3100 = vmatmul.mubr.f32.gmra.mxu0 %v3099_v40  ;;  %3487 = vmatmul.mubr.f32.gmra.mxu1 %v7679_v26  ;;  %v9277_v40 = vld [vmem:[#allocation50_spill] sm:$0xff]  ;;  %v9279_v26 = vld [vmem:[#allocation25_spill] sm:$0xff]  ;;  %v3121_v4 = vand.u32 4294901760, %v3120_v49  ;;  %v7752_v49 = vand.u32 4294901760, %v5443_v50 }
 0x304   : > { %3105 = vmatprep.mubr.f32.mxu0 %v9148_v62  ;;  %3492 = vmatprep.mubr.f32.mxu1 %v9148_v62  ;;  %v5445_v17 = vpop.eup %5444 }
 0x305   : > { %3586 = vmatprep.subr.mxu0 %v9275_v63  ;;  %3838 = vmatpush1.msra.mxu1 %v9277_v40  ;;  %9286 = vst [vmem:[#allocation172_spill] sm:$0xff] %v7752_v49  ;;  %v9291_v40 = vld [vmem:[#allocation148_spill] sm:$0xff]  ;;  %v7769_v61 = vsub.f32 %v5443_v50, %v7752_v49  ;;  %v9298_v50 = vld [vmem:[#allocation146_spill] sm:$0xff] }
 0x306   : > { %3589 = vmatpush1.msra.mxu0 %v9279_v26  ;;  %3840 = vmatprep.subr.mxu1 %v9280_v27  ;;  %v9292_v27 = vld [vmem:[#allocation142_spill] sm:$0xff] }
 0x307   : > { %3111 = vmatmul.mubr.f32.gmra.mxu0 %v3110_v39  ;;  %3494 = vmatmul.mubr.f32.gmra.mxu1 %v7688_v28  ;;  %v7745_v39 = vsub.f32 %v5439_v11, %v7725_v42  ;;  %v9284_v28 = vld [vmem:[#allocation45_spill] sm:$0xff]  ;;  %v9288_v11 = vand.u32 4294901760, %v7729_v36 }
 0x308   : > { %3116 = vmatprep.mubr.f32.mxu0 %v9148_v62  ;;  %3499 = vmatprep.mubr.f32.mxu1 %v9148_v62 }
 0x309   : > { %3592 = vmatprep.subr.mxu0 %v9281_v34  ;;  %3842 = vmatpush1.msra.mxu1 %v9283_v15  ;;  %v3142_v15 = vsub.f32 %v7729_v36, %v9288_v11  ;;  %v5447_v11 = vpop.eup %5446  ;;  %v9297_v36 = vld [vmem:[#allocation151_spill] sm:$0xff] }
 0x30a   : > { %3595 = vmatpush1.msra.mxu0 %v9284_v28  ;;  %3844 = vmatprep.subr.mxu1 %v9285_v13  ;;  %v9289_v13 = vld [vmem:[#allocation145_spill] sm:$0xff] }
 0x30b   : > { %3122 = vmatmul.mubr.f32.gmra.mxu0 %v3121_v4  ;;  %3501 = vmatmul.mubr.f32.gmra.mxu1 %v7712_v57  ;;  %v7761_v4 = vsub.f32 %v5441_v25, %v7741_v32  ;;  %v9290_v57 = vld [vmem:[#allocation60_spill] sm:$0xff]  ;;  %v9293_v25 = vand.u32 4294901760, %v7745_v39 }
 0x30c   : > { %3127 = vmatprep.mubr.f32.mxu0 %v9148_v62  ;;  %3506 = vmatprep.mubr.f32.mxu1 %v9148_v62 }
 0x30d   : > { %3598 = vmatprep.subr.mxu0 %v9287_v58  ;;  %3846 = vmatpush1.msra.mxu1 %v9289_v13  ;;  %v3143_v13 = vand.u32 4294901760, %v3142_v15  ;;  %v9296_v58 = vld [vmem:[#allocation144_spill] sm:$0xff]  ;;  %v8942_v15 = vand.u32 4294901760, %v7769_v61 }
 0x30e   : > { %3601 = vmatpush1.msra.mxu0 %v9290_v57  ;;  %3848 = vmatprep.subr.mxu1 %v9291_v40  ;;  %v3153_v57 = vsub.f32 %v7745_v39, %v9293_v25  ;;  %v8939_v40 = vand.u32 4294901760, %v7761_v4 }
 0x30f   : > { %3133 = vmatmul.mubr.f32.gmra.mxu0 %v3132_v60  ;;  %3508 = vmatmul.mubr.f32.gmra.mxu1 %v7725_v42  ;;  %v7776_v60 = vand.u32 4294901760, %v5445_v17  ;;  %v9295_v42 = vld [vmem:[#allocation149_spill] sm:$0xff] }
 0x310   : > { %3138 = vmatprep.mubr.f32.mxu0 %v9148_v62  ;;  %3513 = vmatprep.mubr.f32.mxu1 %v9148_v62  ;;  %v3154_v25 = vand.u32 4294901760, %v3153_v57  ;;  %v9303_v57 = vld [vmem:[#allocation150_spill] sm:$0xff] }
 0x311   : > { %3604 = vmatprep.subr.mxu0 %v9292_v27  ;;  %9294 = vst [vmem:[#allocation23_spill] sm:$0xff] %v7776_v60  ;;  %3850 = vmatpush1.msra.mxu1 %v9295_v42  ;;  %v3164_v42 = vsub.f32 %v7761_v4, %v8939_v40  ;;  %v9299_v27 = vld [vmem:[#allocation153_spill] sm:$0xff] }
 0x312   : > { %3607 = vmatpush1.msra.mxu0 %v9296_v58  ;;  %3852 = vmatprep.subr.mxu1 %v9297_v36  ;;  %v7790_v58 = vand.u32 4294901760, %v5447_v11  ;;  %v9302_v36 = vld [vmem:[#allocation155_spill] sm:$0xff] }
 0x313   : > { %3144 = vmatmul.mubr.f32.gmra.mxu0 %v3143_v13  ;;  %3515 = vmatmul.mubr.f32.gmra.mxu1 %v7741_v32  ;;  %v7793_v13 = vsub.f32 %v5445_v17, %v7776_v60  ;;  %v9301_v32 = vld [vmem:[#allocation147_spill] sm:$0xff]  ;;  %v3165_v40 = vand.u32 4294901760, %v3164_v42  ;;  %v9304_v17 = vld [vmem:[#allocation157_spill] sm:$0xff]  ;;  %v9307_v42 = vld [vmem:[#allocation154_spill] sm:$0xff] }
 0x314   : > { %3149 = vmatprep.mubr.f32.mxu0 %v9148_v62  ;;  %3520 = vmatprep.mubr.f32.mxu1 %v9148_v62  ;;  %9300 = vst [vmem:[#allocation48_spill] sm:$0xff] %v7790_v58 }
 0x315   : > { %3610 = vmatprep.subr.mxu0 %v9298_v50  ;;  %3854 = vmatpush1.msra.mxu1 %v9299_v27  ;;  %v3175_v27 = vsub.f32 %v7769_v61, %v8942_v15 }
 0x316   : > { %3613 = vmatpush1.msra.mxu0 %v9301_v32  ;;  %3856 = vmatprep.subr.mxu1 %v9302_v36  ;;  %v8945_v32 = vand.u32 4294901760, %v7793_v13  ;;  %v7807_v36 = vsub.f32 %v5447_v11, %v7790_v58 }
 0x317   : > { %3155 = vmatmul.mubr.f32.gmra.mxu0 %v3154_v25  ;;  %3522 = vmatmul.mubr.f32.gmra.mxu1 %v7752_v49  ;;  %v9305_v25 = vld [vmem:[#allocation152_spill] sm:$0xff]  ;;  %v9306_v49 = vld [vmem:[#allocation159_spill] sm:$0xff]  ;;  %v3176_v15 = vand.u32 4294901760, %v3175_v27 }
 0x318   : > { %3160 = vmatprep.mubr.f32.mxu0 %v9148_v62  ;;  %3527 = vmatprep.mubr.f32.mxu1 %v9148_v62  ;;  %v3186_v11 = vsub.f32 %v7793_v13, %v8945_v32 }
 0x319   : > { %3616 = vmatprep.subr.mxu0 %v9303_v57  ;;  %3858 = vmatpush1.msra.mxu1 %v9304_v17  ;;  %v9308_v17 = vld [vmem:[#allocation161_spill] sm:$0xff]  ;;  %v9309_v57 = vld [vmem:[#allocation156_spill] sm:$0xff] }
 0x31a   : > { %3619 = vmatpush1.msra.mxu0 %v9305_v25  ;;  %3860 = vmatprep.subr.mxu1 %v9306_v49  ;;  %v3196_v25 = vand.u32 4294901760, %v7807_v36  ;;  %v3187_v27 = vand.u32 4294901760, %v3186_v11  ;;  %v9313_v49 = vld [vmem:[#allocation162_spill] sm:$0xff]  ;;  %v9316_v11 = vld [vmem:[#allocation17_spill] sm:$0xff] }
 0x31b   : > { %3166 = vmatmul.mubr.f32.gmra.mxu0 %v3165_v40  ;;  %3529 = vmatmul.mubr.f32.gmra.mxu1 %v7776_v60  ;;  %v9310_v40 = vld [vmem:[#allocation80_spill] sm:$0xff]  ;;  %v9311_v60 = vld [vmem:[#allocation158_spill] sm:$0xff] }
 0x31c   : > { %3171 = vmatprep.mubr.f32.mxu0 %v9148_v62  ;;  %3534 = vmatprep.mubr.f32.mxu1 %v9148_v62  ;;  %v3197_v32 = vsub.f32 %v7807_v36, %v3196_v25 }
 0x31d   : > { %3622 = vmatprep.subr.mxu0 %v9307_v42  ;;  %3862 = vmatpush1.msra.mxu1 %v9308_v17  ;;  %v9312_v17 = vld [vmem:[#allocation160_spill] sm:$0xff] }
 0x31e   : > { %3625 = vmatpush1.msra.mxu0 %v9309_v57  ;;  %4314 = vmatprep.subr.mxu1 %v9310_v40  ;;  %v3198_v40 = vand.u32 4294901760, %v3197_v32  ;;  %v9320_v32 = vand.u32 4294901760, %v9235_v20  ;;  %v9331_v20 = vand.u32 4294901760, %v9263_v44 }
 0x31f   : > { %3177 = vmatmul.mubr.f32.gmra.mxu0 %v3176_v15  ;;  %3536 = vmatmul.mubr.f32.gmra.mxu1 %v7790_v58  ;;  %v9314_v15 = vand.u32 4294901760, %v7569_v54  ;;  %v9315_v58 = vld [vmem:[#allocation163_spill] sm:$0xff] }
 0x320   : > { %3182 = vmatprep.mubr.f32.mxu0 %v9148_v62  ;;  %3628 = vmatprep.subr.mxu0 %v9311_v60 }
 0x321   : > { %3895 = vmatprep.mubr.f32.mxu1 %v9148_v62  ;;  %3631 = vmatpush1.msra.mxu0 %v9312_v17  ;;  %v9317_v17 = vand.u32 4294901760, %v9316_v11 }
 0x322   : > { %3634 = vmatprep.subr.mxu0 %v9313_v49 }
 0x323   : > { %3188 = vmatmul.mubr.f32.gmra.mxu0 %v3187_v27  ;;  %3899 = vmatmul.mubr.f32.vlgmr.msra.gmra.mxu1 %v9314_v15  ;;  %v9318_v27 = vand.u32 4294901760, %v7564_v56  ;;  %v9366_v15 = vand.u32 4294901760, %v7769_v61 }
 0x324   : > { %3193 = vmatprep.mubr.f32.mxu0 %v9148_v62  ;;  %3904 = vmatprep.mubr.f32.mxu1 %v9148_v62 }
 0x325   : > { %3637 = vmatpush1.msra.mxu0 %v9315_v58  ;;  %4316 = vmatpush1.msra.mxu1 %v7099_v51  ;;  %v9319_v51 = vand.u32 4294901760, %v7593_v55 }
 0x326   : > { %4043 = vmatprep.subr.mxu0 %v9317_v17  ;;  %4318 = vmatprep.subr.mxu1 %v7104_v52  ;;  %v9321_v52 = vand.u32 4294901760, %v9236_v46  ;;  %v9322_v17 = vand.u32 4294901760, %v9241_v7  ;;  %v9333_v46 = vand.u32 4294901760, %v9266_v14  ;;  %v9334_v7 = vand.u32 4294901760, %v9268_v21  ;;  %v9344_v14 = vld [vmem:[#allocation50_spill] sm:$0xff] }
 0x327   : > { %3199 = vmatmul.mubr.f32.gmra.mxu0 %v3198_v40  ;;  %3908 = vmatmul.mubr.f32.gmra.mxu1 %v9318_v27  ;;  %v9360_v21 = vand.u32 4294901760, %v7761_v4  ;;  %v9367_v40 = vld [vmem:[#allocation150_spill] sm:$0xff]  ;;  %v9370_v27 = vld [vmem:[#allocation152_spill] sm:$0xff] }
 0x328   : > { %3670 = vmatprep.mubr.f32.mxu0 %v9148_v62  ;;  %3913 = vmatprep.mubr.f32.mxu1 %v9148_v62  ;;  %v9368_v11 = vand.u32 4294901760, %v9367_v40 }
 0x329   : > { %4320 = vmatpush1.msra.mxu1 %v7110_v23  ;;  %v9323_v23 = vand.u32 4294901760, %v7597_v41 }
 0x32a   : > { %4322 = vmatprep.subr.mxu1 %v7117_v6  ;;  %v9324_v6 = vand.u32 4294901760, %v9244_v8  ;;  %v9337_v8 = vand.u32 4294901760, %v9273_v33 }
 0x32b   : > { %3673 = vmatmul.mubr.f32.vlgmr.msra.gmra.mxu0 %v7569_v54  ;;  %3917 = vmatmul.mubr.f32.gmra.mxu1 %v9319_v51  ;;  %v9325_v54 = vand.u32 4294901760, %v9249_v43  ;;  %v9340_v43 = vand.u32 4294901760, %v9279_v26  ;;  %v9353_v26 = vand.u32 4294901760, %v7745_v39  ;;  %v9371_v51 = vand.u32 4294901760, %v9370_v27 }
 0x32c   : > { %4047 = vmatpush1.msra.mxu0 %v9320_v32  ;;  %3678 = vmatprep.mubr.f32.mxu0 %v9148_v62  ;;  %v9372_v32 = vld [vmem:[#allocation153_spill] sm:$0xff] }
 0x32d   : > { %3922 = vmatprep.mubr.f32.mxu1 %v9148_v62  ;;  %4051 = vmatprep.subr.mxu0 %v9321_v52  ;;  %v9374_v52 = vand.u32 4294901760, %v9307_v42  ;;  %v9380_v42 = vld [vmem:[#allocation161_spill] sm:$0xff] }
 0x32e   : > { %4055 = vmatpush1.msra.mxu0 %v9322_v17  ;;  %4324 = vmatpush1.msra.mxu1 %v9228_v47  ;;  %v9327_v47 = vand.u32 4294901760, %v9252_v1  ;;  %v9343_v1 = vand.u32 4294901760, %v9284_v28  ;;  %v9357_v28 = vld [vmem:[#allocation144_spill] sm:$0xff]  ;;  %v9375_v17 = vld [vmem:[#allocation155_spill] sm:$0xff] }
 0x32f   : > { %3681 = vmatmul.mubr.f32.gmra.mxu0 %v7564_v56  ;;  %3926 = vmatmul.mubr.f32.gmra.mxu1 %v9323_v23  ;;  %v9326_v56 = vand.u32 4294901760, %v7623_v0  ;;  %v9376_v23 = vand.u32 4294901760, %v9309_v57  ;;  %v9381_v57 = vld [vmem:[#allocation160_spill] sm:$0xff] }
 0x330   : > { %3686 = vmatprep.mubr.f32.mxu0 %v9148_v62  ;;  %3931 = vmatprep.mubr.f32.mxu1 %v9148_v62 }
 0x331   : > { %4059 = vmatprep.subr.mxu0 %v9324_v6  ;;  %4326 = vmatprep.subr.mxu1 %v9229_v24  ;;  %v9328_v24 = vand.u32 4294901760, %v9257_v2  ;;  %v9347_v2 = vld [vmem:[#allocation52_spill] sm:$0xff]  ;;  %v9377_v6 = vld [vmem:[#allocation157_spill] sm:$0xff] }
 0x332   : > { %4063 = vmatpush1.msra.mxu0 %v9325_v54  ;;  %4328 = vmatpush1.msra.mxu1 %v9233_v48  ;;  %v9330_v48 = vand.u32 4294901760, %v9259_v22  ;;  %v9379_v54 = vand.u32 4294901760, %v9311_v60  ;;  %v9385_v60 = vand.u32 4294901760, %v9315_v58  ;;  %v9388_v58 = vld [vmem:[#allocation181_spill] sm:$0xff] }
 0x333   : > { %3689 = vmatmul.mubr.f32.gmra.mxu0 %v7593_v55  ;;  %3935 = vmatmul.mubr.f32.gmra.mxu1 %v9326_v56  ;;  %v9329_v55 = vand.u32 4294901760, %v7643_v59  ;;  %v9382_v56 = vand.u32 4294901760, %v9381_v57 }
 0x334   : > { %3694 = vmatprep.mubr.f32.mxu0 %v9148_v62  ;;  %3940 = vmatprep.mubr.f32.mxu1 %v9148_v62 }
 0x335   : > { %4067 = vmatprep.subr.mxu0 %v9327_v47  ;;  %4330 = vmatprep.subr.mxu1 %v9242_v38  ;;  %v9336_v38 = vand.u32 4294901760, %v9270_v35  ;;  %v9352_v35 = vld [vmem:[#allocation63_spill] sm:$0xff] }
 0x336   : > { %4071 = vmatpush1.msra.mxu0 %v9328_v24  ;;  %4332 = vmatpush1.msra.mxu1 %v9246_v12  ;;  %v9338_v12 = vand.u32 4294901760, %v7697_v3  ;;  %v9386_v47 = vld [vmem:[#allocation179_spill] sm:$0xff]  ;;  %v9391_v24 = vld [vmem:[#allocation176_spill] sm:$0xff] }
 0x337   : > { %3697 = vmatmul.mubr.f32.gmra.mxu0 %v7597_v41  ;;  %3944 = vmatmul.mubr.f32.gmra.mxu1 %v9329_v55  ;;  %v9332_v41 = vand.u32 4294901760, %v7661_v45  ;;  %v9392_v55 = vld [vmem:[#allocation170_spill] sm:$0xff] }
 0x338   : > { %3702 = vmatprep.mubr.f32.mxu0 %v9148_v62  ;;  %3949 = vmatprep.mubr.f32.mxu1 %v9148_v62 }
 0x339   : > { %4075 = vmatprep.subr.mxu0 %v9330_v48  ;;  %4334 = vmatprep.subr.mxu1 %v9250_v19  ;;  %v9342_v19 = vand.u32 4294901760, %v9281_v34  ;;  %v9349_v34 = vld [vmem:[#allocation55_spill] sm:$0xff]  ;;  %v9393_v48 = vld [vmem:[#allocation28_spill] sm:$0xff] }
 0x33a   : > { %4079 = vmatpush1.msra.mxu0 %v9331_v20  ;;  %4336 = vmatpush1.msra.mxu1 %v9253_v31  ;;  %v9345_v31 = vld [vmem:[#allocation167_spill] sm:$0xff]  ;;  %v9394_v20 = vld [vmem:[#allocation168_spill] sm:$0xff] }
 0x33b   : > { %3705 = vmatmul.mubr.f32.gmra.mxu0 %v7623_v0  ;;  %3953 = vmatmul.mubr.f32.gmra.mxu1 %v9332_v41  ;;  %v9335_v0 = vand.u32 4294901760, %v7672_v16  ;;  %v9395_v41 = vld [vmem:[#allocation34_spill] sm:$0xff] }
 0x33c   : > { %3710 = vmatprep.mubr.f32.mxu0 %v9148_v62  ;;  %3958 = vmatprep.mubr.f32.mxu1 %v9148_v62 }
 0x33d   : > { %4083 = vmatprep.subr.mxu0 %v9333_v46  ;;  %4338 = vmatprep.subr.mxu1 %v9258_v10  ;;  %v9348_v10 = vand.u32 4294901760, %v9347_v2  ;;  %v9396_v46 = vld [vmem:[#allocation20_spill] sm:$0xff] }
 0x33e   : > { %4087 = vmatpush1.msra.mxu0 %v9334_v7  ;;  %4340 = vmatpush1.msra.mxu1 %v9261_v18  ;;  %v9354_v18 = vld [vmem:[#allocation142_spill] sm:$0xff]  ;;  %v9397_v7 = vld [vmem:[#allocation175_spill] sm:$0xff] }
 0x33f   : > { %3713 = vmatmul.mubr.f32.gmra.mxu0 %v7643_v59  ;;  %3962 = vmatmul.mubr.f32.gmra.mxu1 %v9335_v0  ;;  %v9339_v59 = vand.u32 4294901760, %v9275_v63  ;;  %v9355_v44 = vand.u32 4294901760, %v9354_v18  ;;  %v9358_v63 = vand.u32 4294901760, %v9357_v28  ;;  %v9398_v0 = vld [vmem:[#allocation172_spill] sm:$0xff] }
 0x340   : > { %3718 = vmatprep.mubr.f32.mxu0 %v9148_v62  ;;  %3967 = vmatprep.mubr.f32.mxu1 %v9148_v62 }
 0x341   : > { %4091 = vmatprep.subr.mxu0 %v9336_v38  ;;  %4342 = vmatprep.subr.mxu1 %v9264_v29  ;;  %v9356_v29 = vld [vmem:[#allocation143_spill] sm:$0xff] }
 0x342   : > { %4095 = vmatpush1.msra.mxu0 %v9337_v8  ;;  %4344 = vmatpush1.msra.mxu1 %v9267_v30  ;;  %v9341_v30 = vand.u32 4294901760, %v7705_v53  ;;  %v9399_v38 = vld [vmem:[#allocation23_spill] sm:$0xff]  ;;  %v9400_v8 = vld [vmem:[#allocation48_spill] sm:$0xff] }
 0x343   : > { %3721 = vmatmul.mubr.f32.gmra.mxu0 %v7661_v45  ;;  %3971 = vmatmul.mubr.f32.gmra.mxu1 %v9338_v12  ;;  %v9346_v45 = vand.u32 4294901760, %v9345_v31 }
 0x344   : > { %3726 = vmatprep.mubr.f32.mxu0 %v9148_v62  ;;  %3976 = vmatprep.mubr.f32.mxu1 %v9148_v62 }
 0x345   : > { %4099 = vmatprep.subr.mxu0 %v9339_v59  ;;  %4346 = vmatprep.subr.mxu1 %v9269_v37  ;;  %v9361_v37 = vand.u32 4294901760, %v9298_v50  ;;  %v9369_v50 = vld [vmem:[#allocation151_spill] sm:$0xff] }
 0x346   : > { %4103 = vmatpush1.msra.mxu0 %v9340_v43  ;;  %4348 = vmatpush1.msra.mxu1 %v9272_v9  ;;  %v9363_v9 = vld [vmem:[#allocation147_spill] sm:$0xff] }
 0x347   : > { %3729 = vmatmul.mubr.f32.gmra.mxu0 %v7672_v16  ;;  %3980 = vmatmul.mubr.f32.gmra.mxu1 %v9341_v30  ;;  %v9350_v16 = vld [vmem:[#allocation60_spill] sm:$0xff]  ;;  %v9364_v33 = vand.u32 4294901760, %v9363_v9  ;;  %v2920_v43 = vld [vmem:[#allocation2 + $0x230] ss:$8 sm:$0x3] }
 0x348   : > { %3734 = vmatprep.mubr.f32.mxu0 %v9148_v62  ;;  %3985 = vmatprep.mubr.f32.mxu1 %v9148_v62  ;;  %v9351_v22 = vand.u32 4294901760, %v9350_v16 }
 0x349   : > { %4107 = vmatprep.subr.mxu0 %v9342_v19  ;;  %4350 = vmatprep.subr.mxu1 %v9274_v5  ;;  %v9365_v5 = vld [vmem:[#allocation149_spill] sm:$0xff]  ;;  %v9401_v19 = vld [vmem:[#allocation8_spill] sm:$0xff] }
 0x34a   : > { %4111 = vmatpush1.msra.mxu0 %v9343_v1  ;;  %4352 = vmatpush1.msra.mxu1 %v9344_v14  ;;  %v9402_v1 = vsub.s32 0, %v9401_v19 }
 0x34b   : > { %3737 = vmatmul.mubr.f32.gmra.mxu0 %v7697_v3  ;;  %3989 = vmatmul.mubr.f32.gmra.mxu1 %v9346_v45  ;;  %v9359_v3 = vld [vmem:[#allocation145_spill] sm:$0xff]  ;;  %v9403_v45 = vsub.s32 1, %v9401_v19 }
 0x34c   : > { %3742 = vmatprep.mubr.f32.mxu0 %v9148_v62  ;;  %3994 = vmatprep.mubr.f32.mxu1 %v9148_v62  ;;  %v8073_v14 = vrot.slane %v2920_v43, %v9402_v1 }
 0x34d   : > { %4115 = vmatprep.subr.mxu0 %v9348_v10  ;;  %4354 = vmatprep.subr.mxu1 %v9349_v34  ;;  %v8077_v2 = vrot.slane %v2920_v43, %v9403_v45 }
 0x34e   : > { %4119 = vmatpush1.msra.mxu0 %v9351_v22  ;;  %4356 = vmatpush1.msra.mxu1 %v9352_v35 }
 0x34f   : > { %3745 = vmatmul.mubr.f32.gmra.mxu0 %v7705_v53  ;;  %3998 = vmatmul.mubr.f32.gmra.mxu1 %v9353_v26  ;;  %v9362_v53 = vld [vmem:[#allocation148_spill] sm:$0xff] }
 0x350   : > { %3750 = vmatprep.mubr.f32.mxu0 %v9148_v62  ;;  %4003 = vmatprep.mubr.f32.mxu1 %v9148_v62 }
 0x351   : > { %4123 = vmatprep.subr.mxu0 %v9355_v44  ;;  %4358 = vmatprep.subr.mxu1 %v9356_v29 }
 0x352   : > { %4127 = vmatpush1.msra.mxu0 %v9358_v63  ;;  %4360 = vmatpush1.msra.mxu1 %v9359_v3 }
 0x353   : > { %3753 = vmatmul.mubr.f32.gmra.mxu0 %v9345_v31  ;;  %4007 = vmatmul.mubr.f32.gmra.mxu1 %v9360_v21 }
 0x354   : > { %3758 = vmatprep.mubr.f32.mxu0 %v9148_v62  ;;  %4012 = vmatprep.mubr.f32.mxu1 %v9148_v62 }
 0x355   : > { %4131 = vmatprep.subr.mxu0 %v9361_v37  ;;  %4362 = vmatprep.subr.mxu1 %v9362_v53 }
 0x356   : > { %4135 = vmatpush1.msra.mxu0 %v9364_v33  ;;  %4364 = vmatpush1.msra.mxu1 %v9365_v5 }
 0x357   : > { %3761 = vmatmul.mubr.f32.gmra.mxu0 %v7745_v39  ;;  %4016 = vmatmul.mubr.f32.gmra.mxu1 %v9366_v15  ;;  %v9373_v39 = vand.u32 4294901760, %v7793_v13 }
 0x358   : > { %3766 = vmatprep.mubr.f32.mxu0 %v9148_v62  ;;  %4021 = vmatprep.mubr.f32.mxu1 %v9148_v62 }
 0x359   : > { %4139 = vmatprep.subr.mxu0 %v9368_v11  ;;  %4366 = vmatprep.subr.mxu1 %v9369_v50 }
 0x35a   : > { %4143 = vmatpush1.msra.mxu0 %v9371_v51  ;;  %4368 = vmatpush1.msra.mxu1 %v9372_v32 }
 0x35b   : > { %3769 = vmatmul.mubr.f32.gmra.mxu0 %v7761_v4  ;;  %4025 = vmatmul.mubr.f32.gmra.mxu1 %v9373_v39  ;;  %v9378_v4 = vld [vmem:[#allocation159_spill] sm:$0xff] }
 0x35c   : > { %3774 = vmatprep.mubr.f32.mxu0 %v9148_v62  ;;  %4030 = vmatprep.mubr.f32.mxu1 %v9148_v62 }
 0x35d   : > { %4147 = vmatprep.subr.mxu0 %v9374_v52  ;;  %4370 = vmatprep.subr.mxu1 %v9375_v17 }
 0x35e   : > { %4151 = vmatpush1.msra.mxu0 %v9376_v23  ;;  %4372 = vmatpush1.msra.mxu1 %v9377_v6 }
 0x35f   : > { %3777 = vmatmul.mubr.f32.gmra.mxu0 %v7769_v61  ;;  %4034 = vmatmul.mubr.f32.gmra.mxu1 %v3196_v25  ;;  %v9383_v61 = vld [vmem:[#allocation180_spill] sm:$0xff]  ;;  %v9384_v25 = vand.u32 4294901760, %v9313_v49  ;;  %v9390_v49 = vld [vmem:[#allocation26_spill] sm:$0xff] }
 0x360   : > { %4374 = vmatprep.subr.mxu1 %v9378_v4  ;;  %3782 = vmatprep.mubr.f32.mxu0 %v9148_v62 }
 0x361   : > { %4155 = vmatprep.subr.mxu0 %v9379_v54  ;;  %4376 = vmatpush1.msra.mxu1 %v9380_v42 }
 0x362   : > { %4409 = vmatprep.mubr.f32.mxu1 %v9148_v62  ;;  %4159 = vmatpush1.msra.mxu0 %v9382_v56 }
 0x363   : > { %3785 = vmatmul.mubr.f32.gmra.mxu0 %v7793_v13  ;;  %4411 = vmatmul.mubr.f32.vlgmr.msra.gmra.mxu1 %v9383_v61  ;;  %v9387_v13 = vld [vmem:[#allocation182_spill] sm:$0xff] }
 0x364   : > { %3790 = vmatprep.mubr.f32.mxu0 %v9148_v62  ;;  %4163 = vmatprep.subr.mxu0 %v9384_v25 }
 0x365   : > { %4416 = vmatprep.mubr.f32.mxu1 %v9148_v62  ;;  %4167 = vmatpush1.msra.mxu0 %v9385_v60 }
 0x367   : > { %3793 = vmatmul.mubr.f32.gmra.mxu0 %v7807_v36  ;;  %4418 = vmatmul.mubr.f32.gmra.mxu1 %v9386_v47  ;;  %v9389_v36 = vld [vmem:[#allocation38_spill] sm:$0xff] }
 0x368   : > { %4200 = vmatprep.mubr.f32.mxu0 %v9148_v62  ;;  %4423 = vmatprep.mubr.f32.mxu1 %v9148_v62 }
 0x36b   : > { %4202 = vmatmul.mubr.f32.vlgmr.msra.gmra.mxu0 %v9383_v61  ;;  %4425 = vmatmul.mubr.f32.gmra.mxu1 %v9387_v13 }
 0x36c   : > { %4207 = vmatprep.mubr.f32.mxu0 %v9148_v62  ;;  %4430 = vmatprep.mubr.f32.mxu1 %v9148_v62 }
 0x36f   : > { %4209 = vmatmul.mubr.f32.gmra.mxu0 %v9386_v47  ;;  %4432 = vmatmul.mubr.f32.gmra.mxu1 %v9388_v58 }
 0x370   : > { %4214 = vmatprep.mubr.f32.mxu0 %v9148_v62  ;;  %4437 = vmatprep.mubr.f32.mxu1 %v9148_v62 }
 0x373   : > { %4216 = vmatmul.mubr.f32.gmra.mxu0 %v9387_v13  ;;  %4439 = vmatmul.mubr.f32.gmra.mxu1 %v9389_v36 }
 0x374   : > { %4221 = vmatprep.mubr.f32.mxu0 %v9148_v62  ;;  %4444 = vmatprep.mubr.f32.mxu1 %v9148_v62 }
 0x377   : > { %4223 = vmatmul.mubr.f32.gmra.mxu0 %v9388_v58  ;;  %4446 = vmatmul.mubr.f32.gmra.mxu1 %v9390_v49 }
 0x378   : > { %4228 = vmatprep.mubr.f32.mxu0 %v9148_v62  ;;  %4451 = vmatprep.mubr.f32.mxu1 %v9148_v62 }
 0x37b   : > { %4230 = vmatmul.mubr.f32.gmra.mxu0 %v9389_v36  ;;  %4453 = vmatmul.mubr.f32.gmra.mxu1 %v9391_v24 }
 0x37c   : > { %4235 = vmatprep.mubr.f32.mxu0 %v9148_v62  ;;  %4458 = vmatprep.mubr.f32.mxu1 %v9148_v62 }
 0x37f   : > { %4237 = vmatmul.mubr.f32.gmra.mxu0 %v9390_v49  ;;  %4460 = vmatmul.mubr.f32.gmra.mxu1 %v9392_v55 }
 0x380   : > { %4242 = vmatprep.mubr.f32.mxu0 %v9148_v62  ;;  %4465 = vmatprep.mubr.f32.mxu1 %v9148_v62 }
 0x383   : > { %4244 = vmatmul.mubr.f32.gmra.mxu0 %v9391_v24  ;;  %4467 = vmatmul.mubr.f32.gmra.mxu1 %v9393_v48 }
 0x384   : > { %4249 = vmatprep.mubr.f32.mxu0 %v9148_v62  ;;  %4472 = vmatprep.mubr.f32.mxu1 %v9148_v62 }
 0x387   : > { %4251 = vmatmul.mubr.f32.gmra.mxu0 %v9392_v55  ;;  %4474 = vmatmul.mubr.f32.gmra.mxu1 %v9394_v20 }
 0x388   : > { %4256 = vmatprep.mubr.f32.mxu0 %v9148_v62  ;;  %4479 = vmatprep.mubr.f32.mxu1 %v9148_v62 }
 0x38b   : > { %4258 = vmatmul.mubr.f32.gmra.mxu0 %v9393_v48  ;;  %4481 = vmatmul.mubr.f32.gmra.mxu1 %v9395_v41 }
 0x38c   : > { %4263 = vmatprep.mubr.f32.mxu0 %v9148_v62  ;;  %4486 = vmatprep.mubr.f32.mxu1 %v9148_v62 }
 0x38f   : > { %4265 = vmatmul.mubr.f32.gmra.mxu0 %v9394_v20  ;;  %4488 = vmatmul.mubr.f32.gmra.mxu1 %v9396_v46 }
 0x390   : > { %4270 = vmatprep.mubr.f32.mxu0 %v9148_v62  ;;  %4493 = vmatprep.mubr.f32.mxu1 %v9148_v62 }
 0x393   : > { %4272 = vmatmul.mubr.f32.gmra.mxu0 %v9395_v41  ;;  %4495 = vmatmul.mubr.f32.gmra.mxu1 %v9397_v7 }
 0x394   : > { %4277 = vmatprep.mubr.f32.mxu0 %v9148_v62  ;;  %4500 = vmatprep.mubr.f32.mxu1 %v9148_v62 }
 0x397   : > { %4279 = vmatmul.mubr.f32.gmra.mxu0 %v9396_v46  ;;  %4502 = vmatmul.mubr.f32.gmra.mxu1 %v9398_v0 }
 0x398   : > { %4284 = vmatprep.mubr.f32.mxu0 %v9148_v62  ;;  %4507 = vmatprep.mubr.f32.mxu1 %v9148_v62 }
 0x39b   : > { %4286 = vmatmul.mubr.f32.gmra.mxu0 %v9397_v7  ;;  %4509 = vmatmul.mubr.f32.gmra.mxu1 %v9399_v38 }
 0x39c   : > { %4291 = vmatprep.mubr.f32.mxu0 %v9148_v62  ;;  %4514 = vmatprep.mubr.f32.mxu1 %v9148_v62 }
 0x39f   : > { %4293 = vmatmul.mubr.f32.gmra.mxu0 %v9398_v0  ;;  %4516 = vmatmul.mubr.f32.gmra.mxu1 %v9400_v8 }
 0x3a0   : > { %4298 = vmatprep.mubr.f32.mxu0 %v9148_v62 }
 0x3a3   : > { %v3432_v12 = vpop.f32.mrf.mxu1  ;;  %4300 = vmatmul.mubr.f32.gmra.mxu0 %v9399_v38 }
 0x3a4   : > { %4305 = vmatprep.mubr.f32.mxu0 %v9148_v62 }
 0x3a5   : > { %v3434_v59 = vpop.f32.mrf.mxu1 }
 0x3a7   : > { %v3439_v30 = vpop.f32.mrf.mxu1  ;;  %4307 = vmatmul.mubr.f32.gmra.mxu0 %v9400_v8 }
 0x3a9   : > { %v3441_v31 = vpop.f32.mrf.mxu1 }
 0x3ab   : > { %v3035_v10 = vpop.f32.mrf.mxu0  ;;  %v3446_v34 = vpop.f32.mrf.mxu1 }
 0x3ac   : > { %v3036_v16 = vadd.f32 %v3035_v10, %v8073_v14 }
 0x3ad   : > { %v3037_v22 = vpop.f32.mrf.mxu0  ;;  %v3448_v62 = vpop.f32.mrf.mxu1 }
 0x3ae   : > { %v3038_v35 = vadd.f32 %v3037_v22, %v8077_v2  ;;  %v8081_v26 = vadd.f32 %v3432_v12, %v3036_v16 }
 0x3af   : > { %v3046_v18 = vpop.f32.mrf.mxu0  ;;  %v3453_v44 = vpop.f32.mrf.mxu1 }
 0x3b0   : > { %v3047_v29 = vadd.f32 %v3046_v18, %v8073_v14  ;;  %v8084_v28 = vadd.f32 %v3434_v59, %v3038_v35 }
 0x3b1   : > { %v3048_v63 = vpop.f32.mrf.mxu0  ;;  %v3455_v3 = vpop.f32.mrf.mxu1 }
 0x3b2   : > { %v3049_v21 = vadd.f32 %v3048_v63, %v8077_v2  ;;  %v8087_v37 = vadd.f32 %v3439_v30, %v3047_v29 }
 0x3b3   : > { %v3057_v53 = vpop.f32.mrf.mxu0  ;;  %v3460_v9 = vpop.f32.mrf.mxu1 }
 0x3b4   : > { %v3058_v33 = vadd.f32 %v3057_v53, %v8073_v14  ;;  %v8090_v5 = vadd.f32 %v3441_v31, %v3049_v21 }
 0x3b5   : > { %v3059_v15 = vpop.f32.mrf.mxu0  ;;  %v3462_v40 = vpop.f32.mrf.mxu1 }
 0x3b6   : > { %v3060_v11 = vadd.f32 %v3059_v15, %v8077_v2  ;;  %v8093_v50 = vadd.f32 %v3446_v34, %v3058_v33 }
 0x3b7   : > { %v3068_v27 = vpop.f32.mrf.mxu0  ;;  %v3467_v51 = vpop.f32.mrf.mxu1 }
 0x3b8   : > { %v3069_v32 = vadd.f32 %v3068_v27, %v8073_v14  ;;  %v8096_v39 = vadd.f32 %v3448_v62, %v3060_v11 }
 0x3b9   : > { %v3070_v52 = vpop.f32.mrf.mxu0  ;;  %v3469_v17 = vpop.f32.mrf.mxu1 }
 0x3ba   : > { %v3071_v23 = vadd.f32 %v3070_v52, %v8077_v2  ;;  %v8099_v6 = vadd.f32 %v3453_v44, %v3069_v32 }
 0x3bb   : > { %v3079_v4 = vpop.f32.mrf.mxu0  ;;  %v3474_v54 = vpop.f32.mrf.mxu1 }
 0x3bc   : > { %v3080_v42 = vadd.f32 %v3079_v4, %v8073_v14  ;;  %v8102_v57 = vadd.f32 %v3455_v3, %v3071_v23 }
 0x3bd   : > { %v3081_v56 = vpop.f32.mrf.mxu0  ;;  %v3476_v61 = vpop.f32.mrf.mxu1 }
 0x3be   : > { %v3082_v25 = vadd.f32 %v3081_v56, %v8077_v2  ;;  %v8105_v60 = vadd.f32 %v3460_v9, %v3080_v42 }
 0x3bf   : > { %v3090_v47 = vpop.f32.mrf.mxu0  ;;  %v3481_v13 = vpop.f32.mrf.mxu1 }
 0x3c0   : > { %v3091_v58 = vadd.f32 %v3090_v47, %v8073_v14  ;;  %v8108_v36 = vadd.f32 %v3462_v40, %v3082_v25 }
 0x3c1   : > { %v3092_v49 = vpop.f32.mrf.mxu0  ;;  %v3483_v24 = vpop.f32.mrf.mxu1 }
 0x3c2   : > { %v3093_v55 = vadd.f32 %v3092_v49, %v8077_v2  ;;  %v8111_v48 = vadd.f32 %v3467_v51, %v3091_v58 }
 0x3c3   : > { %v3101_v20 = vpop.f32.mrf.mxu0  ;;  %v3488_v41 = vpop.f32.mrf.mxu1 }
 0x3c4   : > { %v3102_v46 = vadd.f32 %v3101_v20, %v8073_v14  ;;  %v8114_v7 = vadd.f32 %v3469_v17, %v3093_v55 }
 0x3c5   : > { %v3103_v0 = vpop.f32.mrf.mxu0  ;;  %v3490_v38 = vpop.f32.mrf.mxu1 }
 0x3c6   : > { %v3104_v8 = vadd.f32 %v3103_v0, %v8077_v2  ;;  %v8117_v12 = vadd.f32 %v3474_v54, %v3102_v46 }
 0x3c7   : > { %v3112_v59 = vpop.f32.mrf.mxu0  ;;  %v3495_v43 = vpop.f32.mrf.mxu1 }
 0x3c8   : > { %v3113_v30 = vadd.f32 %v3112_v59, %v8073_v14  ;;  %v8120_v19 = vadd.f32 %v3476_v61, %v3104_v8 }
 0x3c9   : > { %v3114_v1 = vpop.f32.mrf.mxu0  ;;  %v3497_v31 = vpop.f32.mrf.mxu1 }
 0x3ca   : > { %v3115_v45 = vadd.f32 %v3114_v1, %v8077_v2  ;;  %v8123_v10 = vadd.f32 %v3481_v13, %v3113_v30 }
 0x3cb   : > { %v3123_v34 = vpop.f32.mrf.mxu0  ;;  %v3502_v16 = vpop.f32.mrf.mxu1 }
 0x3cc   : > { %v3124_v22 = vadd.f32 %v3123_v34, %v8073_v14  ;;  %v8126_v62 = vadd.f32 %v3483_v24, %v3115_v45 }
 0x3cd   : > { %v3125_v35 = vpop.f32.mrf.mxu0  ;;  %v3504_v18 = vpop.f32.mrf.mxu1 }
 0x3ce   : > { %v3126_v44 = vadd.f32 %v3125_v35, %v8077_v2  ;;  %v8129_v29 = vadd.f32 %v3488_v41, %v3124_v22 }
 0x3cf   : > { %v3134_v63 = vpop.f32.mrf.mxu0  ;;  %v3509_v3 = vpop.f32.mrf.mxu1 }
 0x3d0   : > { %v3135_v21 = vadd.f32 %v3134_v63, %v8073_v14  ;;  %v8132_v53 = vadd.f32 %v3490_v38, %v3126_v44 }
 0x3d1   : > { %v3136_v9 = vpop.f32.mrf.mxu0  ;;  %v3511_v33 = vpop.f32.mrf.mxu1 }
 0x3d2   : > { %v3137_v15 = vadd.f32 %v3136_v9, %v8077_v2  ;;  %v8135_v40 = vadd.f32 %v3495_v43, %v3135_v21 }
 0x3d3   : > { %v3145_v11 = vpop.f32.mrf.mxu0  ;;  %v3516_v27 = vpop.f32.mrf.mxu1 }
 0x3d4   : > { %v3146_v51 = vadd.f32 %v3145_v11, %v8073_v14  ;;  %v8138_v32 = vadd.f32 %v3497_v31, %v3137_v15 }
 0x3d5   : > { %v3147_v52 = vpop.f32.mrf.mxu0  ;;  %v3518_v17 = vpop.f32.mrf.mxu1 }
 0x3d6   : > { %v3148_v23 = vadd.f32 %v3147_v52, %v8077_v2  ;;  %v8141_v4 = vadd.f32 %v3502_v16, %v3146_v51 }
 0x3d7   : > { %v3156_v54 = vpop.f32.mrf.mxu0  ;;  %v3523_v42 = vpop.f32.mrf.mxu1 }
 0x3d8   : > { %v3157_v56 = vadd.f32 %v3156_v54, %v8073_v14  ;;  %v8144_v61 = vadd.f32 %v3504_v18, %v3148_v23 }
 0x3d9   : > { %v3158_v25 = vpop.f32.mrf.mxu0  ;;  %v3525_v47 = vpop.f32.mrf.mxu1 }
 0x3da   : > { %v3159_v13 = vadd.f32 %v3158_v25, %v8077_v2  ;;  %v8147_v58 = vadd.f32 %v3509_v3, %v3157_v56 }
 0x3db   : > { %v3167_v49 = vpop.f32.mrf.mxu0  ;;  %v3530_v24 = vpop.f32.mrf.mxu1 }
 0x3dc   : > { %v3168_v55 = vadd.f32 %v3167_v49, %v8073_v14  ;;  %v8150_v20 = vadd.f32 %v3511_v33, %v3159_v13 }
 0x3dd   : > { %v3169_v41 = vpop.f32.mrf.mxu0  ;;  %v3532_v46 = vpop.f32.mrf.mxu1 }
 0x3de   : > { %v3170_v0 = vadd.f32 %v3169_v41, %v8077_v2  ;;  %v8153_v38 = vadd.f32 %v3516_v27, %v3168_v55 }
 0x3df   : > { %v3178_v8 = vpop.f32.mrf.mxu0  ;;  %v3537_v59 = vpop.f32.mrf.mxu1 }
 0x3e0   : > { %v3179_v43 = vadd.f32 %v3178_v8, %v8073_v14  ;;  %v8156_v30 = vadd.f32 %v3518_v17, %v3170_v0 }
 0x3e1   : > { %v3180_v1 = vpop.f32.mrf.mxu0  ;;  %v3539_v31 = vpop.f32.mrf.mxu1 }
 0x3e2   : > { %v3181_v45 = vadd.f32 %v3180_v1, %v8077_v2  ;;  %v8159_v34 = vadd.f32 %v3523_v42, %v3179_v43 }
 0x3e3   : > { %v3189_v16 = vpop.f32.mrf.mxu0  ;;  %v3900_v22 = vpop.f32.mrf.mxu1 }
 0x3e4   : > { %v3190_v35 = vadd.f32 %v3189_v16, %v8073_v14  ;;  %v8162_v18 = vadd.f32 %v3525_v47, %v3181_v45 }
 0x3e5   : > { %v3191_v44 = vpop.f32.mrf.mxu0  ;;  %v8164_v63 = vpop.f32.mrf.mxu1 }
 0x3e6   : > { %v3192_v3 = vadd.f32 %v3191_v44, %v8077_v2  ;;  %v8167_v21 = vadd.f32 %v3530_v24, %v3190_v35 }
 0x3e7   : > { %v3200_v9 = vpop.f32.mrf.mxu0  ;;  %v3909_v33 = vpop.f32.mrf.mxu1 }
 0x3e8   : > { %v3201_v15 = vadd.f32 %v3200_v9, %v8073_v14  ;;  %v8170_v11 = vadd.f32 %v3532_v46, %v3192_v3 }
 0x3e9   : > { %v3202_v27 = vpop.f32.mrf.mxu0  ;;  %v8172_v51 = vpop.f32.mrf.mxu1 }
 0x3ea   : > { %9404 = vst [vmem:[#allocation166_spill] sm:$0xff] %v8170_v11  ;;  %v3203_v52 = vadd.f32 %v3202_v27, %v8077_v2  ;;  %v8175_v17 = vadd.f32 %v3537_v59, %v3201_v15 }
 0x3eb   : > { %v3674_v23 = vpop.f32.mrf.mxu0  ;;  %v3918_v54 = vpop.f32.mrf.mxu1 }
 0x3ec   : > { %v3675_v42 = vadd.f32 %v3674_v23, %v8081_v26  ;;  %v8178_v56 = vadd.f32 %v3539_v31, %v3203_v52 }
 0x3ed   : > { %v8180_v25 = vpop.f32.mrf.mxu0  ;;  %v8182_v47 = vpop.f32.mrf.mxu1 }
 0x3ee   : > { %9405 = vst [vmem:[#allocation114_spill] sm:$0xff] %v8178_v56  ;;  %v8184_v14 = vadd.f32 %v3900_v22, %v3675_v42 }
 0x3ef   : > { %v3682_v13 = vpop.f32.mrf.mxu0  ;;  %v3927_v49 = vpop.f32.mrf.mxu1 }
 0x3f0   : > { %v3683_v24 = vadd.f32 %v3682_v13, %v8087_v37 }
 0x3f1   : > { %v8187_v55 = vpop.f32.mrf.mxu0  ;;  %v8189_v2 = vpop.f32.mrf.mxu1 }
 0x3f2   : > { %v8191_v41 = vadd.f32 %v3909_v33, %v3683_v24 }
 0x3f3   : > { %v3690_v46 = vpop.f32.mrf.mxu0  ;;  %v3936_v26 = vpop.f32.mrf.mxu1 }
 0x3f4   : > { %v3691_v0 = vadd.f32 %v3690_v46, %v8093_v50 }
 0x3f5   : > { %v8194_v8 = vpop.f32.mrf.mxu0  ;;  %v8196_v59 = vpop.f32.mrf.mxu1 }
 0x3f6   : > { %v8198_v43 = vadd.f32 %v3918_v54, %v3691_v0 }
 0x3f7   : > { %v3698_v1 = vpop.f32.mrf.mxu0  ;;  %v3945_v31 = vpop.f32.mrf.mxu1 }
 0x3f8   : > { %v3699_v37 = vadd.f32 %v3698_v1, %v8099_v6 }
 0x3f9   : > { %v8201_v45 = vpop.f32.mrf.mxu0  ;;  %v8203_v16 = vpop.f32.mrf.mxu1 }
 0x3fa   : > { %v8205_v22 = vadd.f32 %v3927_v49, %v3699_v37 }
 0x3fb   : > { %v3706_v35 = vpop.f32.mrf.mxu0  ;;  %v3954_v44 = vpop.f32.mrf.mxu1 }
 0x3fc   : > { %v3707_v50 = vadd.f32 %v3706_v35, %v8105_v60 }
 0x3fd   : > { %v8208_v3 = vpop.f32.mrf.mxu0  ;;  %v8210_v9 = vpop.f32.mrf.mxu1 }
 0x3fe   : > { %v8212_v33 = vadd.f32 %v3936_v26, %v3707_v50 }
 0x3ff   : > { %v3714_v15 = vpop.f32.mrf.mxu0  ;;  %v3963_v27 = vpop.f32.mrf.mxu1 }
 0x400   : > { %9406 = vst [vmem:[#allocation37_spill] sm:$0xff] %v8212_v33  ;;  %v3715_v6 = vadd.f32 %v3714_v15, %v8111_v48 }
 0x401   : > { %v8215_v52 = vpop.f32.mrf.mxu0  ;;  %v8217_v23 = vpop.f32.mrf.mxu1 }
 0x402   : > { %v8219_v54 = vadd.f32 %v3945_v31, %v3715_v6 }
 0x403   : > { %v3722_v42 = vpop.f32.mrf.mxu0  ;;  %v3972_v13 = vpop.f32.mrf.mxu1 }
 0x404   : > { %9407 = vst [vmem:[#allocation178_spill] sm:$0xff] %v8219_v54  ;;  %v3723_v60 = vadd.f32 %v3722_v42, %v8117_v12 }
 0x405   : > { %v8222_v49 = vpop.f32.mrf.mxu0  ;;  %v8224_v24 = vpop.f32.mrf.mxu1 }
 0x406   : > { %v8226_v46 = vadd.f32 %v3954_v44, %v3723_v60 }
 0x407   : > { %v3730_v26 = vpop.f32.mrf.mxu0  ;;  %v3981_v0 = vpop.f32.mrf.mxu1 }
 0x408   : > { %9408 = vst [vmem:[#allocation171_spill] sm:$0xff] %v8226_v46  ;;  %v3731_v48 = vadd.f32 %v3730_v26, %v8123_v10 }
 0x409   : > { %v8229_v1 = vpop.f32.mrf.mxu0  ;;  %v8231_v37 = vpop.f32.mrf.mxu1 }
 0x40a   : > { %v8233_v31 = vadd.f32 %v3963_v27, %v3731_v48 }
 0x40b   : > { %v3738_v35 = vpop.f32.mrf.mxu0  ;;  %v3990_v50 = vpop.f32.mrf.mxu1 }
 0x40c   : > { %9409 = vst [vmem:[#allocation42_spill] sm:$0xff] %v8233_v31  ;;  %v3739_v12 = vadd.f32 %v3738_v35, %v8129_v29 }
 0x40d   : > { %v8236_v15 = vpop.f32.mrf.mxu0  ;;  %v8238_v6 = vpop.f32.mrf.mxu1 }
 0x40e   : > { %v8240_v44 = vadd.f32 %v3972_v13, %v3739_v12 }
 0x40f   : > { %v3746_v42 = vpop.f32.mrf.mxu0  ;;  %v3999_v60 = vpop.f32.mrf.mxu1 }
 0x410   : > { %9410 = vst [vmem:[#allocation41_spill] sm:$0xff] %v8240_v44  ;;  %v3747_v10 = vadd.f32 %v3746_v42, %v8135_v40 }
 0x411   : > { %v8243_v26 = vpop.f32.mrf.mxu0  ;;  %v8245_v46 = vpop.f32.mrf.mxu1 }
 0x412   : > { %v8247_v27 = vadd.f32 %v3981_v0, %v3747_v10 }
 0x413   : > { %v3754_v48 = vpop.f32.mrf.mxu0  ;;  %v4008_v31 = vpop.f32.mrf.mxu1 }
 0x414   : > { %9411 = vst [vmem:[#allocation44_spill] sm:$0xff] %v8247_v27  ;;  %v3755_v29 = vadd.f32 %v3754_v48, %v8141_v4 }
 0x415   : > { %v8250_v35 = vpop.f32.mrf.mxu0  ;;  %v8252_v56 = vpop.f32.mrf.mxu1 }
 0x416   : > { %v8254_v13 = vadd.f32 %v3990_v50, %v3755_v29 }
 0x417   : > { %v3762_v12 = vpop.f32.mrf.mxu0  ;;  %v4017_v44 = vpop.f32.mrf.mxu1 }
 0x418   : > { %9412 = vst [vmem:[#allocation46_spill] sm:$0xff] %v8254_v13  ;;  %v3763_v40 = vadd.f32 %v3762_v12, %v8147_v58 }
 0x419   : > { %v8257_v42 = vpop.f32.mrf.mxu0  ;;  %v8259_v54 = vpop.f32.mrf.mxu1 }
 0x41a   : > { %9413 = vst [vmem:[#allocation169_spill] sm:$0xff] %v8259_v54  ;;  %v8261_v0 = vadd.f32 %v3999_v60, %v3763_v40 }
 0x41b   : > { %v3770_v10 = vpop.f32.mrf.mxu0  ;;  %v4026_v27 = vpop.f32.mrf.mxu1 }
 0x41c   : > { %9414 = vst [vmem:[#allocation177_spill] sm:$0xff] %v8261_v0  ;;  %v3771_v4 = vadd.f32 %v3770_v10, %v8153_v38 }
 0x41d   : > { %v8264_v48 = vpop.f32.mrf.mxu0  ;;  %v8266_v11 = vpop.f32.mrf.mxu1 }
 0x41e   : > { %9415 = vst [vmem:[#allocation174_spill] sm:$0xff] %v8266_v11  ;;  %v8268_v50 = vadd.f32 %v4008_v31, %v3771_v4 }
 0x41f   : > { %v3778_v29 = vpop.f32.mrf.mxu0  ;;  %v4035_v13 = vpop.f32.mrf.mxu1 }
 0x420   : > { %9416 = vst [vmem:[#allocation32_spill] sm:$0xff] %v8268_v50  ;;  %v3779_v58 = vadd.f32 %v3778_v29, %v8159_v34  ;;  %v3677_v34 = vadd.f32 %v8180_v25, %v8084_v28  ;;  %v3693_v25 = vadd.f32 %v8194_v8, %v8096_v39 }
 0x421   : > { %v8271_v12 = vpop.f32.mrf.mxu0  ;;  %v8273_v33 = vpop.f32.mrf.mxu1 }
 0x422   : > { %9417 = vst [vmem:[#allocation53_spill] sm:$0xff] %v8273_v33  ;;  %v8275_v60 = vadd.f32 %v4017_v44, %v3779_v58 }
 0x423   : > { %v3786_v40 = vpop.f32.mrf.mxu0  ;;  %v8277_v0 = vpop.f32.mrf.mxu1 }
 0x424   : > { %9418 = vst [vmem:[#allocation54_spill] sm:$0xff] %v8275_v60  ;;  %v3787_v38 = vadd.f32 %v3786_v40, %v8167_v21  ;;  %v3903_v40 = vadd.f32 %v8164_v63, %v3677_v34 }
 0x425   : > { %v8280_v10 = vpop.f32.mrf.mxu0  ;;  %v4414_v11 = vpop.f32.mrf.mxu1 }
 0x426   : > { %9419 = vst [vmem:[#allocation61_spill] sm:$0xff] %v8280_v10  ;;  %v8282_v31 = vadd.f32 %v4026_v27, %v3787_v38  ;;  %v3685_v27 = vadd.f32 %v8187_v55, %v8090_v5  ;;  %v3701_v55 = vadd.f32 %v8201_v45, %v8102_v57 }
 0x427   : > { %v3794_v4 = vpop.f32.mrf.mxu0  ;;  %v8284_v50 = vpop.f32.mrf.mxu1 }
 0x428   : > { %9420 = vst [vmem:[#allocation173_spill] sm:$0xff] %v8282_v31  ;;  %v3795_v29 = vadd.f32 %v3794_v4, %v8175_v17  ;;  %v3912_v4 = vadd.f32 %v8172_v51, %v3685_v27  ;;  %v3709_v27 = vadd.f32 %v8208_v3, %v8108_v36 }
 0x429   : > { %v8289_v44 = vpop.f32.mrf.mxu0  ;;  %v4421_v58 = vpop.f32.mrf.mxu1 }
 0x42a   : > { %9421 = vst [vmem:[#allocation58_spill] sm:$0xff] %v8289_v44  ;;  %v8291_v60 = vadd.f32 %v4035_v13, %v3795_v29 }
 0x42b   : > { %v8293_v33 = vpop.f32.mrf.mxu0  ;;  %v8295_v21 = vpop.f32.mrf.mxu1 }
 0x42c   : > { %9422 = vst [vmem:[#allocation12_spill] sm:$0xff] %v8291_v60 }
 0x42d   : > { %v4205_v38 = vpop.f32.mrf.mxu0  ;;  %v4428_v31 = vpop.f32.mrf.mxu1 }
 0x42e   : > { %v4206_v10 = vadd.f32 %v4205_v38, %v3903_v40  ;;  %v3921_v40 = vadd.f32 %v8182_v47, %v3693_v25  ;;  %v3717_v25 = vadd.f32 %v8215_v52, %v8114_v7 }
 0x42f   : > { %v8300_v28 = vpop.f32.mrf.mxu0  ;;  %v8302_v17 = vpop.f32.mrf.mxu1 }
 0x430   : > { %v4415_v13 = vadd.f32 %v4414_v11, %v4206_v10  ;;  %v3948_v52 = vadd.f32 %v8203_v16, %v3717_v25  ;;  %v3733_v25 = vadd.f32 %v8229_v1, %v8126_v62  ;;  %v9438_v1 = vld [vmem:[#allocation35_spill] sm:$0xff] }
 0x431   : > { %v4212_v29 = vpop.f32.mrf.mxu0  ;;  %v4435_v60 = vpop.f32.mrf.mxu1 }
 0x432   : > { %v4779_v44 = vmul.f32 -1.442695, %v4415_v13  ;;  %v4213_v54 = vadd.f32 %v4212_v29, %v3912_v4  ;;  %v3930_v4 = vadd.f32 %v8189_v2, %v3701_v55  ;;  %v9425_v2 = vld [vmem:[#allocation9_spill] sm:$0xff]  ;;  %v9426_v55 = vld [vmem:[#allocation14_spill] sm:$0xff] }
 0x433   : > { %v8307_v5 = vpop.f32.mrf.mxu0  ;;  %v8309_v63 = vpop.f32.mrf.mxu1 }
 0x434   : > { %5448 = vpow2.f32 %v4779_v44  ;;  %v4422_v34 = vadd.f32 %v4421_v58, %v4213_v54 }
 0x435   : > { %v4219_v38 = vpop.f32.mrf.mxu0  ;;  %v4442_v39 = vpop.f32.mrf.mxu1 }
 0x436   : > { %v4780_v11 = vmul.f32 -1.442695, %v4422_v34  ;;  %v4220_v8 = vadd.f32 %v4219_v38, %v3921_v40  ;;  %v3939_v34 = vadd.f32 %v8196_v59, %v3709_v27  ;;  %v316_v38 = vadd.f32 %v9426_v55, %v9425_v2  ;;  %v9430_v55 = vld [vmem:[#allocation24_spill] sm:$0xff] }
 0x437   : > { %v8314_v51 = vpop.f32.mrf.mxu0  ;;  %v8316_v10 = vpop.f32.mrf.mxu1 }
 0x438   : > { %9423 = vst [vmem:[#allocation47_spill] sm:$0xff] %v8316_v10  ;;  %5450 = vpow2.f32 %v4780_v11  ;;  %v4429_v13 = vadd.f32 %v4428_v31, %v4220_v8  ;;  %v9437_v10 = vld [vmem:[#allocation27_spill] sm:$0xff] }
 0x439   : > { %v4226_v57 = vpop.f32.mrf.mxu0  ;;  %v4449_v45 = vpop.f32.mrf.mxu1 }
 0x43a   : > { %v4781_v54 = vmul.f32 -1.442695, %v4429_v13  ;;  %v4227_v44 = vadd.f32 %v4226_v57, %v3930_v4  ;;  %v3725_v13 = vadd.f32 %v8222_v49, %v8120_v19  ;;  %v9431_v19 = vld [vmem:[#allocation33_spill] sm:$0xff] }
 0x43b   : > { %v8321_v47 = vpop.f32.mrf.mxu0  ;;  %v8323_v58 = vpop.f32.mrf.mxu1  ;;  %v349_v49 = vadd.f32 %v9431_v19, %v9425_v2 }
 0x43c   : > { %9424 = vst [vmem:[#allocation18_spill] sm:$0xff] %v8323_v58  ;;  %5452 = vpow2.f32 %v4781_v54  ;;  %v4436_v29 = vadd.f32 %v4435_v60, %v4227_v44  ;;  %v9428_v44 = vld [vmem:[#allocation15_spill] sm:$0xff] }
 0x43d   : > { %v4233_v36 = vpop.f32.mrf.mxu0  ;;  %v4456_v3 = vpop.f32.mrf.mxu1 }
 0x43e   : > { %v4782_v31 = vmul.f32 -1.442695, %v4436_v29  ;;  %v4234_v40 = vadd.f32 %v4233_v36, %v3939_v34  ;;  %v563_v29 = vadd.f32 %v9428_v44, %v316_v38  ;;  %v9429_v34 = vld [vmem:[#allocation19_spill] sm:$0xff] }
 0x43f   : > { %v8330_v11 = vpop.f32.mrf.mxu0  ;;  %v8332_v8 = vpop.f32.mrf.mxu1  ;;  %v327_v36 = vadd.f32 %v9429_v34, %v9425_v2 }
 0x440   : > { %9427 = vst [vmem:[#allocation57_spill] sm:$0xff] %v8332_v8  ;;  %5454 = vpow2.f32 %v4782_v31  ;;  %v4443_v7 = vadd.f32 %v4442_v39, %v4234_v40  ;;  %v338_v8 = vadd.f32 %v9430_v55, %v9425_v2  ;;  %v3957_v40 = vadd.f32 %v8210_v9, %v3725_v13  ;;  %v9439_v9 = vld [vmem:[#allocation49_spill] sm:$0xff] }
 0x441   : > { %v5449_v60 = vpop.eup %5448  ;;  %v4240_v59 = vpop.f32.mrf.mxu0  ;;  %v371_v13 = vadd.f32 %v9439_v9, %v9425_v2 }
 0x442   : > { %v4463_v27 = vpop.f32.mrf.mxu1  ;;  %v4570_v4 = vadd.f32 1.0, %v5449_v60  ;;  %v4783_v57 = vmul.f32 -1.442695, %v4443_v7  ;;  %v4241_v54 = vadd.f32 %v4240_v59, %v3948_v52  ;;  %v9434_v7 = vld [vmem:[#allocation39_spill] sm:$0xff]  ;;  %v9435_v60 = vld [vmem:[#allocation82_spill] sm:$0xff]  ;;  %v577_v62 = vadd.f32 %v9437_v10, %v338_v8 }
 0x443   : > { %v8344_v39 = vpop.f32.mrf.mxu0  ;;  %v360_v52 = vadd.f32 %v9434_v7, %v9425_v2  ;;  %v745_v59 = vadd.f32 %v9435_v60, %v563_v29  ;;  %v9441_v10 = vld [vmem:[#allocation83_spill] sm:$0xff] }
 0x444   : > { %9432 = vst [vmem:[#allocation30_spill] sm:$0xff] %v8344_v39  ;;  %v8346_v16 = vpop.f32.mrf.mxu1  ;;  %5456 = vrcp.f32 %v4570_v4  ;;  %v4450_v31 = vadd.f32 %v4449_v45, %v4241_v54  ;;  %v584_v45 = vadd.f32 %v9438_v1, %v349_v49  ;;  %v9442_v49 = vld [vmem:[#allocation84_spill] sm:$0xff] }
 0x445   : > { %9433 = vst [vmem:[#allocation10_spill] sm:$0xff] %v8346_v16  ;;  %v5451_v38 = vpop.eup %5450  ;;  %5458 = vpow2.f32 %v4783_v57  ;;  %v4247_v44 = vpop.f32.mrf.mxu0  ;;  %v9436_v16 = vld [vmem:[#allocation21_spill] sm:$0xff]  ;;  %v3741_v57 = vadd.f32 %v8236_v15, %v8132_v53  ;;  %v941_v8 = vadd.f32 %v9441_v10, %v745_v59 }
 0x446   : > { %v4470_v34 = vpop.f32.mrf.mxu1  ;;  %v4571_v55 = vadd.f32 1.0, %v5451_v38  ;;  %v4784_v19 = vmul.f32 -1.442695, %v4450_v31  ;;  %v4248_v58 = vadd.f32 %v4247_v44, %v3957_v40  ;;  %v570_v39 = vadd.f32 %v9436_v16, %v327_v36  ;;  %v9440_v36 = vld [vmem:[#allocation43_spill] sm:$0xff]  ;;  %v9443_v44 = vld [vmem:[#allocation56_spill] sm:$0xff]  ;;  %v9448_v10 = vld [vmem:[#allocation85_spill] sm:$0xff] }
 0x447   : > { %v8359_v4 = vpop.f32.mrf.mxu0  ;;  %v3966_v31 = vadd.f32 %v8217_v23, %v3733_v25  ;;  %v8367_v16 = vadd.f32 %v9440_v36, %v360_v52  ;;  %v382_v1 = vadd.f32 %v9443_v44, %v9425_v2  ;;  %v9446_v52 = vld [vmem:[#allocation65_spill] sm:$0xff] }
 0x448   : > { %v8361_v54 = vpop.f32.mrf.mxu1  ;;  %5460 = vrcp.f32 %v4571_v55  ;;  %v4457_v29 = vadd.f32 %v4456_v3, %v4248_v58  ;;  %v753_v38 = vadd.f32 %v9442_v49, %v570_v39  ;;  %v9444_v58 = vld [vmem:[#allocation51_spill] sm:$0xff]  ;;  %v9445_v3 = vld [vmem:[#allocation62_spill] sm:$0xff]  ;;  %v404_v59 = vadd.f32 %v9446_v52, %v9425_v2  ;;  %v9447_v39 = vld [vmem:[#allocation117_spill] sm:$0xff] }
 0x449   : > { %v5453_v40 = vpop.eup %5452  ;;  %5462 = vpow2.f32 %v4784_v19  ;;  %v4254_v7 = vpop.f32.mrf.mxu0  ;;  %v8374_v23 = vadd.f32 %v9444_v58, %v371_v13  ;;  %v393_v25 = vadd.f32 %v9445_v3, %v9425_v2  ;;  %v1154_v55 = vadd.f32 %v9447_v39, %v941_v8  ;;  %v9450_v52 = vld [vmem:[#allocation59_spill] sm:$0xff] }
 0x44a   : > { %v4477_v60 = vpop.f32.mrf.mxu1  ;;  %v4572_v9 = vadd.f32 1.0, %v5453_v40  ;;  %v4785_v53 = vmul.f32 -1.442695, %v4457_v29  ;;  %v4255_v15 = vadd.f32 %v4254_v7, %v3966_v31  ;;  %v3749_v29 = vadd.f32 %v8243_v26, %v8138_v32  ;;  %v9449_v7 = vld [vmem:[#allocation86_spill] sm:$0xff] }
 0x44b   : > { %v8381_v19 = vpop.f32.mrf.mxu0  ;;  %v3975_v13 = vadd.f32 %v8224_v24, %v3741_v57  ;;  %v950_v49 = vadd.f32 %v9448_v10, %v753_v38  ;;  %v761_v44 = vadd.f32 %v9449_v7, %v577_v62  ;;  %v4204_v58 = vadd.f32 %v8293_v33, %v8184_v14  ;;  %v9451_v24 = vld [vmem:[#allocation64_spill] sm:$0xff]  ;;  %v9452_v38 = vld [vmem:[#allocation66_spill] sm:$0xff]  ;;  %v9454_v14 = vld [vmem:[#allocation119_spill] sm:$0xff] }
 0x44c   : > { %v8383_v36 = vpop.f32.mrf.mxu1  ;;  %5464 = vrcp.f32 %v4572_v9  ;;  %v4464_v31 = vadd.f32 %v4463_v27, %v4255_v15  ;;  %v8394_v39 = vadd.f32 %v9450_v52, %v382_v1  ;;  %v8397_v57 = vadd.f32 %v9451_v24, %v393_v25  ;;  %v9453_v62 = vld [vmem:[#allocation118_spill] sm:$0xff] }
 0x44d   : > { %v5455_v40 = vpop.eup %5454  ;;  %5466 = vpow2.f32 %v4785_v53  ;;  %v4261_v8 = vpop.f32.mrf.mxu0  ;;  %v8400_v9 = vadd.f32 %v9452_v38, %v404_v59  ;;  %v1333_v15 = vadd.f32 %v9453_v62, %v1154_v55  ;;  %v1161_v33 = vadd.f32 %v9454_v14, %v950_v49  ;;  %v9456_v55 = vld [vmem:[#allocation88_spill] sm:$0xff] }
 0x44e   : > { %v4484_v3 = vpop.f32.mrf.mxu1  ;;  %v4573_v32 = vadd.f32 1.0, %v5455_v40  ;;  %v4786_v26 = vmul.f32 -1.442695, %v4464_v31  ;;  %v4262_v27 = vadd.f32 %v4261_v8, %v3975_v13  ;;  %v3757_v1 = vadd.f32 %v8250_v35, %v8144_v61  ;;  %v9455_v13 = vld [vmem:[#allocation87_spill] sm:$0xff] }
 0x44f   : > { %v8404_v10 = vpop.f32.mrf.mxu0  ;;  %v3984_v31 = vadd.f32 %v8231_v37, %v3749_v29  ;;  %v959_v40 = vadd.f32 %v9455_v13, %v761_v44  ;;  %v769_v7 = vadd.f32 %v9456_v55, %v584_v45  ;;  %v4413_v49 = vadd.f32 %v8277_v0, %v4204_v58  ;;  %v9458_v37 = vld [vmem:[#allocation121_spill] sm:$0xff] }
 0x450   : > { %v8406_v53 = vpop.f32.mrf.mxu1  ;;  %5468 = vrcp.f32 %v4573_v32  ;;  %v4471_v25 = vadd.f32 %v4470_v34, %v4262_v27  ;;  %v4211_v61 = vadd.f32 %v8300_v28, %v8191_v41  ;;  %v9457_v34 = vld [vmem:[#allocation120_spill] sm:$0xff]  ;;  %v3765_v44 = vadd.f32 %v8257_v42, %v8150_v20 }
 0x451   : > { %v5457_v59 = vpop.eup %5456  ;;  %5470 = vpow2.f32 %v4786_v26  ;;  %v4268_v8 = vpop.f32.mrf.mxu0  ;;  %v1340_v27 = vadd.f32 %v9457_v34, %v1161_v33  ;;  %v1168_v29 = vadd.f32 %v9458_v37, %v959_v40  ;;  %v3993_v41 = vadd.f32 %v8238_v6, %v3757_v1  ;;  %v9460_v33 = vld [vmem:[#allocation90_spill] sm:$0xff]  ;;  %v9464_v34 = vld [vmem:[#allocation91_spill] sm:$0xff] }
 0x452   : > { %v4491_v52 = vpop.f32.mrf.mxu1  ;;  %v5459_v24 = vpop.eup %5458  ;;  %v4618_v38 = vmul.f32 %v5457_v59, %v1333_v15  ;;  %v4787_v35 = vmul.f32 -1.442695, %v4471_v25  ;;  %v4269_v32 = vadd.f32 %v4268_v8, %v3984_v31  ;;  %v9459_v15 = vld [vmem:[#allocation89_spill] sm:$0xff]  ;;  %v777_v25 = vadd.f32 %v9460_v33, %v8367_v16  ;;  %v9461_v40 = vld [vmem:[#allocation122_spill] sm:$0xff] }
 0x453   : > { %v4574_v45 = vadd.f32 1.0, %v5459_v24  ;;  %v8424_v0 = vpop.f32.mrf.mxu0  ;;  %v968_v14 = vadd.f32 %v9459_v15, %v769_v7  ;;  %v4218_v20 = vadd.f32 %v8307_v5, %v8198_v43  ;;  %v1347_v55 = vadd.f32 %v9461_v40, %v1168_v29  ;;  %v9462_v7 = vld [vmem:[#allocation123_spill] sm:$0xff] }
 0x454   : > { %v8426_v58 = vpop.f32.mrf.mxu1  ;;  %v4634_v26 = vadd.f32 %v4618_v38, %v4413_v49  ;;  %5472 = vpow2.f32 %v4787_v35  ;;  %v4478_v62 = vadd.f32 %v4477_v60, %v4269_v32  ;;  %v4420_v60 = vadd.f32 %v8284_v50, %v4211_v61  ;;  %v9463_v35 = vld [vmem:[#allocation67_spill] sm:$0xff] }
 0x455   : > { %v5461_v28 = vpop.eup %5460  ;;  %5474 = vrcp.f32 %v4574_v45  ;;  %v4275_v42 = vpop.f32.mrf.mxu0  ;;  %v1175_v16 = vadd.f32 %v9462_v7, %v968_v14  ;;  %v4002_v8 = vadd.f32 %v8245_v46, %v3765_v44  ;;  %v3773_v24 = vadd.f32 %v8264_v48, %v8156_v30  ;;  %v9471_v7 = vld [vmem:[#allocation37_spill] sm:$0xff] }
 0x456   : > { %v4498_v31 = vpop.f32.mrf.mxu1  ;;  %v5463_v59 = vpop.eup %5462  ;;  %4650 = vst [vmem:[%s8435_s8] sm:$0xff] %v4634_v26  ;;  %v4619_v6 = vmul.f32 %v5461_v28, %v1340_v27  ;;  %v4788_v1 = vmul.f32 -1.442695, %v4478_v62  ;;  %v4276_v13 = vadd.f32 %v4275_v42, %v3993_v41  ;;  %v415_v32 = vadd.f32 %v9463_v35, %v9425_v2  ;;  %v9466_v62 = vld [vmem:[#allocation124_spill] sm:$0xff] }
 0x457   : > { %v4575_v49 = vadd.f32 1.0, %v5463_v59  ;;  %v8441_v43 = vpop.f32.mrf.mxu0  ;;  %v977_v27 = vadd.f32 %v9464_v34, %v777_v25  ;;  %v4427_v37 = vadd.f32 %v8295_v21, %v4218_v20  ;;  %v4225_v46 = vadd.f32 %v8314_v51, %v8205_v22  ;;  %v9467_v20 = vld [vmem:[#allocation68_spill] sm:$0xff] }
 0x458   : > { %v8443_v5 = vpop.f32.mrf.mxu1  ;;  %v4635_v38 = vadd.f32 %v4619_v6, %v4420_v60  ;;  %5476 = vpow2.f32 %v4788_v1  ;;  %v4485_v50 = vadd.f32 %v4484_v3, %v4276_v13  ;;  %v9465_v3 = vld [vmem:[#allocation92_spill] sm:$0xff]  ;;  %v1354_v41 = vadd.f32 %v9466_v62, %v1175_v16  ;;  %v9469_v60 = vld [vmem:[#allocation125_spill] sm:$0xff] }
 0x459   : > { %v5465_v61 = vpop.eup %5464  ;;  %5478 = vrcp.f32 %v4575_v49  ;;  %v4282_v29 = vpop.f32.mrf.mxu0  ;;  %v785_v44 = vadd.f32 %v9465_v3, %v8374_v23  ;;  %v3781_v28 = vadd.f32 %v8271_v12, %v8162_v18  ;;  %v4011_v22 = vadd.f32 %v8252_v56, %v3773_v24  ;;  %v9468_v23 = vld [vmem:[#allocation94_spill] sm:$0xff]  ;;  %v9472_v24 = vld [vmem:[#allocation169_spill] sm:$0xff] }
 0x45a   : > { %v5467_v45 = vpop.eup %5466  ;;  %4651 = vst [vmem:[%s8435_s8 + $0x8] sm:$0xff] %v4635_v38  ;;  %v4620_v26 = vmul.f32 %v5465_v61, %v1347_v55  ;;  %v4789_v30 = vmul.f32 -1.442695, %v4485_v50  ;;  %v4283_v48 = vadd.f32 %v4282_v29, %v4002_v8  ;;  %v4505_v15 = vpop.f32.mrf.mxu1  ;;  %v8464_v42 = vadd.f32 %v9467_v20, %v415_v32  ;;  %v9470_v55 = vld [vmem:[#allocation93_spill] sm:$0xff]  ;;  %v9473_v50 = vld [vmem:[#allocation166_spill] sm:$0xff] }
 0x45b   : > { %v4576_v21 = vadd.f32 1.0, %v5467_v45  ;;  %v8460_v14 = vpop.f32.mrf.mxu0  ;;  %v793_v59 = vadd.f32 %v9468_v23, %v8394_v39  ;;  %v1182_v6 = vadd.f32 %v9469_v60, %v977_v27  ;;  %v4434_v1 = vadd.f32 %v8302_v17, %v4225_v46  ;;  %v9474_v61 = vld [vmem:[#allocation61_spill] sm:$0xff]  ;;  %v9475_v27 = vld [vmem:[#allocation95_spill] sm:$0xff]  ;;  %v9476_v29 = vld [vmem:[#allocation126_spill] sm:$0xff] }
 0x45c   : > { %v4636_v33 = vadd.f32 %v4620_v26, %v4427_v37  ;;  %5480 = vpow2.f32 %v4789_v30  ;;  %v4492_v25 = vadd.f32 %v4491_v52, %v4283_v48  ;;  %v986_v56 = vadd.f32 %v9470_v55, %v785_v44  ;;  %v8474_v8 = vpop.f32.mrf.mxu1  ;;  %v9478_v48 = vld [vmem:[#allocation96_spill] sm:$0xff]  ;;  %v9481_v23 = vld [vmem:[#allocation114_spill] sm:$0xff]  ;;  %v9486_v55 = vld [vmem:[#allocation69_spill] sm:$0xff] }
 0x45d   : > { %v5469_v51 = vpop.eup %5468  ;;  %5482 = vrcp.f32 %v4576_v21  ;;  %v4289_v18 = vpop.f32.mrf.mxu0  ;;  %v4232_v16 = vadd.f32 %v8321_v47, %v9471_v7  ;;  %v4020_v38 = vadd.f32 %v9472_v24, %v3781_v28  ;;  %v3789_v35 = vadd.f32 %v9474_v61, %v9473_v50  ;;  %v9477_v47 = vld [vmem:[#allocation127_spill] sm:$0xff]  ;;  %v9479_v28 = vld [vmem:[#allocation98_spill] sm:$0xff]  ;;  %v9487_v24 = vld [vmem:[#allocation97_spill] sm:$0xff] }
 0x45e   : > { %v5471_v12 = vpop.eup %5470  ;;  %4652 = vst [vmem:[%s8435_s8 + $0x10] sm:$0xff] %v4636_v33  ;;  %v4621_v13 = vmul.f32 %v5469_v51, %v1354_v41  ;;  %v4790_v40 = vmul.f32 -1.442695, %v4492_v25  ;;  %v4290_v52 = vadd.f32 %v4289_v18, %v4011_v22  ;;  %v995_v37 = vadd.f32 %v9475_v27, %v793_v59  ;;  %v9480_v25 = vld [vmem:[#allocation178_spill] sm:$0xff]  ;;  %v4512_v51 = vpop.f32.mrf.mxu1 }
 0x45f   : > { %v4577_v49 = vadd.f32 1.0, %v5471_v12  ;;  %v8476_v39 = vpop.f32.mrf.mxu0  ;;  %v1361_v45 = vadd.f32 %v9476_v29, %v1182_v6  ;;  %v1189_v26 = vadd.f32 %v9477_v47, %v986_v56  ;;  %v801_v3 = vadd.f32 %v9478_v48, %v8397_v57  ;;  %v9482_v59 = vld [vmem:[#allocation58_spill] sm:$0xff]  ;;  %v9492_v47 = vld [vmem:[#allocation53_spill] sm:$0xff] }
 0x460   : > { %v4637_v17 = vadd.f32 %v4621_v13, %v4434_v1  ;;  %5484 = vpow2.f32 %v4790_v40  ;;  %v4499_v32 = vadd.f32 %v4498_v31, %v4290_v52  ;;  %v809_v31 = vadd.f32 %v9479_v28, %v8400_v9  ;;  %v9483_v6 = vld [vmem:[#allocation174_spill] sm:$0xff]  ;;  %v9484_v1 = vld [vmem:[#allocation128_spill] sm:$0xff]  ;;  %v9485_v13 = vld [vmem:[#allocation129_spill] sm:$0xff] }
 0x461   : > { %v5473_v34 = vpop.eup %5472  ;;  %5486 = vrcp.f32 %v4577_v49  ;;  %v4296_v46 = vpop.f32.mrf.mxu0  ;;  %v4441_v21 = vadd.f32 %v8309_v63, %v4232_v16  ;;  %v4239_v22 = vadd.f32 %v8330_v11, %v9480_v25  ;;  %v3797_v60 = vadd.f32 %v9482_v59, %v9481_v23  ;;  %v9496_v23 = vld [vmem:[#allocation70_spill] sm:$0xff] }
 0x462   : > { %v5475_v30 = vpop.eup %5474  ;;  %4653 = vst [vmem:[%s8435_s8 + $0x18] sm:$0xff] %v4637_v17  ;;  %v4578_v44 = vadd.f32 1.0, %v5473_v34  ;;  %v4791_v62 = vmul.f32 -1.442695, %v4499_v32  ;;  %v4297_v41 = vadd.f32 %v4296_v46, %v4020_v38  ;;  %v4029_v18 = vadd.f32 %v9483_v6, %v3789_v35  ;;  %v9489_v35 = vld [vmem:[#allocation171_spill] sm:$0xff]  ;;  %v9490_v17 = vld [vmem:[#allocation30_spill] sm:$0xff]  ;;  %v8506_v34 = vpop.f32.mrf.mxu1 }
 0x463   : > { %v4622_v33 = vmul.f32 %v5475_v30, %v1361_v45  ;;  %v8492_v20 = vpop.f32.mrf.mxu0  ;;  %v1368_v9 = vadd.f32 %v9484_v1, %v1189_v26  ;;  %v1196_v63 = vadd.f32 %v9485_v13, %v995_v37  ;;  %v426_v56 = vadd.f32 %v9486_v55, %v9425_v2  ;;  %v9491_v37 = vld [vmem:[#allocation99_spill] sm:$0xff]  ;;  %v9493_v30 = vld [vmem:[#allocation130_spill] sm:$0xff]  ;;  %v9500_v13 = vld [vmem:[#allocation133_spill] sm:$0xff] }
 0x464   : > { %5488 = vrcp.f32 %v4578_v44  ;;  %v4506_v57 = vadd.f32 %v4505_v15, %v4297_v41  ;;  %v1004_v38 = vadd.f32 %v9487_v24, %v801_v3  ;;  %v9488_v15 = vld [vmem:[#allocation47_spill] sm:$0xff]  ;;  %v4246_v32 = vadd.f32 %v9490_v17, %v9489_v35  ;;  %v9498_v6 = vld [vmem:[#allocation42_spill] sm:$0xff]  ;;  %v9502_v55 = vld [vmem:[#allocation132_spill] sm:$0xff] }
 0x465   : > { %v5477_v12 = vpop.eup %5476  ;;  %v4638_v40 = vadd.f32 %v4622_v33, %v4441_v21  ;;  %5490 = vpow2.f32 %v4791_v62  ;;  %v4303_v52 = vpop.f32.mrf.mxu0  ;;  %v4448_v50 = vadd.f32 %v9488_v15, %v4239_v22  ;;  %v1013_v29 = vadd.f32 %v9491_v37, %v809_v31  ;;  %v9494_v3 = vld [vmem:[#allocation131_spill] sm:$0xff]  ;;  %v9495_v21 = vld [vmem:[#allocation100_spill] sm:$0xff] }
 0x466   : > { %v5479_v11 = vpop.eup %5478  ;;  %v4579_v7 = vadd.f32 1.0, %v5477_v12  ;;  %v4792_v16 = vmul.f32 -1.442695, %v4506_v57  ;;  %v4304_v49 = vadd.f32 %v4303_v52, %v4029_v18  ;;  %v4038_v26 = vadd.f32 %v9492_v47, %v3797_v60  ;;  %v4519_v12 = vpop.f32.mrf.mxu1  ;;  %v9499_v1 = vld [vmem:[#allocation71_spill] sm:$0xff]  ;;  %v9501_v52 = vld [vmem:[#allocation102_spill] sm:$0xff] }
 0x467   : > { %4654 = vst [vmem:[%s8435_s8 + $0x20] sm:$0xff] %v4638_v40  ;;  %v4623_v61 = vmul.f32 %v5479_v11, %v1368_v9  ;;  %v8508_v27 = vpop.f32.mrf.mxu0  ;;  %v1375_v48 = vadd.f32 %v9493_v30, %v1196_v63  ;;  %v1203_v44 = vadd.f32 %v9494_v3, %v1004_v38  ;;  %v817_v33 = vadd.f32 %v9495_v21, %v8464_v42  ;;  %v9508_v47 = vld [vmem:[#allocation135_spill] sm:$0xff]  ;;  %v9509_v30 = vld [vmem:[#allocation73_spill] sm:$0xff]  ;;  %v9512_v21 = vld [vmem:[#allocation10_spill] sm:$0xff] }
 0x468   : > { %5492 = vrcp.f32 %v4579_v7  ;;  %v4513_v45 = vadd.f32 %v4512_v51, %v4304_v49  ;;  %v633_v59 = vadd.f32 %v9496_v23, %v426_v56  ;;  %v9497_v51 = vld [vmem:[#allocation18_spill] sm:$0xff]  ;;  %v4253_v18 = vadd.f32 %v8359_v4, %v9498_v6  ;;  %v9503_v49 = vld [vmem:[#allocation101_spill] sm:$0xff]  ;;  %v9510_v3 = vld [vmem:[#allocation103_spill] sm:$0xff] }
 0x469   : > { %v5481_v46 = vpop.eup %5480  ;;  %v4639_v62 = vadd.f32 %v4623_v61, %v4448_v50  ;;  %5494 = vpow2.f32 %v4792_v16  ;;  %v4310_v41 = vpop.f32.mrf.mxu0  ;;  %v4455_v60 = vadd.f32 %v9497_v51, %v4246_v32  ;;  %v437_v9 = vadd.f32 %v9499_v1, %v9425_v2  ;;  %v9504_v4 = vld [vmem:[#allocation41_spill] sm:$0xff]  ;;  %v9506_v32 = vld [vmem:[#allocation72_spill] sm:$0xff] }
 0x46a   : > { %v5483_v28 = vpop.eup %5482  ;;  %v4580_v25 = vadd.f32 1.0, %v5481_v46  ;;  %v4793_v22 = vmul.f32 -1.442695, %v4513_v45  ;;  %v4311_v31 = vadd.f32 %v4310_v41, %v4038_v26  ;;  %v1210_v63 = vadd.f32 %v9500_v13, %v1013_v29  ;;  %v9505_v61 = vld [vmem:[#allocation57_spill] sm:$0xff]  ;;  %v9507_v29 = vld [vmem:[#allocation134_spill] sm:$0xff]  ;;  %v9511_v41 = vld [vmem:[#allocation104_spill] sm:$0xff] }
 0x46b   : > { %4655 = vst [vmem:[%s8435_s8 + $0x28] sm:$0xff] %v4639_v62  ;;  %v4624_v57 = vmul.f32 %v5483_v28, %v1375_v48  ;;  %v825_v11 = vadd.f32 %v9501_v52, %v633_v59  ;;  %v1382_v56 = vadd.f32 %v9502_v55, %v1203_v44  ;;  %v1022_v24 = vadd.f32 %v9503_v49, %v817_v33  ;;  %v9514_v59 = vld [vmem:[#allocation136_spill] sm:$0xff]  ;;  %v9521_v49 = vld [vmem:[#allocation77_spill] sm:$0xff] }
 0x46c   : > { %5496 = vrcp.f32 %v4580_v25  ;;  %v4520_v42 = vadd.f32 %v4519_v12, %v4311_v31  ;;  %v4260_v38 = vadd.f32 %v8381_v19, %v9504_v4  ;;  %v4462_v35 = vadd.f32 %v9505_v61, %v4253_v18  ;;  %v9516_v12 = vld [vmem:[#allocation74_spill] sm:$0xff] }
 0x46d   : > { %v5485_v40 = vpop.eup %5484  ;;  %v4640_v7 = vadd.f32 %v4624_v57, %v4455_v60  ;;  %5498 = vpow2.f32 %v4793_v22  ;;  %v640_v37 = vadd.f32 %v9506_v32, %v437_v9  ;;  %v1389_v45 = vadd.f32 %v9507_v29, %v1210_v63  ;;  %v9513_v22 = vld [vmem:[#allocation44_spill] sm:$0xff]  ;;  %v9515_v60 = vld [vmem:[#allocation137_spill] sm:$0xff]  ;;  %v9517_v9 = vld [vmem:[#allocation75_spill] sm:$0xff] }
 0x46e   : > { %v5487_v16 = vpop.eup %5486  ;;  %v4581_v15 = vadd.f32 1.0, %v5485_v40  ;;  %v4794_v50 = vmul.f32 -1.442695, %v4520_v42  ;;  %v1217_v26 = vadd.f32 %v9508_v47, %v1022_v24  ;;  %v448_v48 = vadd.f32 %v9509_v30, %v9425_v2  ;;  %v9518_v42 = vld [vmem:[#allocation105_spill] sm:$0xff]  ;;  %v9522_v4 = vld [vmem:[#allocation138_spill] sm:$0xff]  ;;  %v9526_v47 = vld [vmem:[#allocation107_spill] sm:$0xff] }
 0x46f   : > { %4656 = vst [vmem:[%s8435_s8 + $0x30] sm:$0xff] %v4640_v7  ;;  %v4625_v17 = vmul.f32 %v5487_v16, %v1382_v56  ;;  %v1031_v19 = vadd.f32 %v9510_v3, %v825_v11  ;;  %v833_v28 = vadd.f32 %v9511_v41, %v640_v37  ;;  %v4469_v33 = vadd.f32 %v9512_v21, %v4260_v38  ;;  %v9519_v11 = vld [vmem:[#allocation46_spill] sm:$0xff]  ;;  %v9525_v29 = vld [vmem:[#allocation177_spill] sm:$0xff]  ;;  %v9530_v21 = vld [vmem:[#allocation79_spill] sm:$0xff] }
 0x470   : > { %5500 = vrcp.f32 %v4581_v15  ;;  %v4267_v31 = vadd.f32 %v8404_v10, %v9513_v22  ;;  %v1396_v51 = vadd.f32 %v9514_v59, %v1217_v26  ;;  %v647_v1 = vadd.f32 %v9516_v12, %v448_v48  ;;  %v9520_v56 = vld [vmem:[#allocation106_spill] sm:$0xff]  ;;  %v9523_v15 = vld [vmem:[#allocation139_spill] sm:$0xff] }
 0x471   : > { %v5489_v46 = vpop.eup %5488  ;;  %v4641_v44 = vadd.f32 %v4625_v17, %v4462_v35  ;;  %5502 = vpow2.f32 %v4794_v50  ;;  %v1224_v57 = vadd.f32 %v9515_v60, %v1031_v19  ;;  %v459_v13 = vadd.f32 %v9517_v9, %v9425_v2  ;;  %v9524_v17 = vld [vmem:[#allocation76_spill] sm:$0xff]  ;;  %v9528_v3 = vld [vmem:[#allocation78_spill] sm:$0xff] }
 0x472   : > { %v5491_v62 = vpop.eup %5490  ;;  %v4626_v25 = vmul.f32 %v5489_v46, %v1389_v45  ;;  %v1040_v40 = vadd.f32 %v9518_v42, %v833_v28  ;;  %v4476_v10 = vadd.f32 %v8361_v54, %v4267_v31  ;;  %v4274_v55 = vadd.f32 %v8424_v0, %v9519_v11  ;;  %v9527_v46 = vld [vmem:[#allocation109_spill] sm:$0xff]  ;;  %v9536_v9 = vld [vmem:[#allocation108_spill] sm:$0xff] }
 0x473   : > { %4657 = vst [vmem:[%s8435_s8 + $0x38] sm:$0xff] %v4641_v44  ;;  %v4582_v23 = vadd.f32 1.0, %v5491_v62  ;;  %v841_v7 = vadd.f32 %v9520_v56, %v647_v1  ;;  %v470_v24 = vadd.f32 %v9521_v49, %v9425_v2  ;;  %v1403_v38 = vadd.f32 %v9522_v4, %v1224_v57  ;;  %v9529_v44 = vld [vmem:[#allocation140_spill] sm:$0xff]  ;;  %v9535_v1 = vld [vmem:[#allocation81_spill] sm:$0xff]  ;;  %v9540_v56 = vld [vmem:[#allocation54_spill] sm:$0xff] }
 0x474   : > { %v4642_v6 = vadd.f32 %v4626_v25, %v4469_v33  ;;  %v1231_v50 = vadd.f32 %v9523_v15, %v1040_v40  ;;  %v654_v32 = vadd.f32 %v9524_v17, %v459_v13  ;;  %v4483_v0 = vadd.f32 %v8383_v36, %v4274_v55  ;;  %v9531_v25 = vld [vmem:[#allocation141_spill] sm:$0xff]  ;;  %v9534_v57 = vld [vmem:[#allocation32_spill] sm:$0xff] }
 0x475   : > { %v5493_v18 = vpop.eup %5492  ;;  %5504 = vrcp.f32 %v4582_v23  ;;  %v4281_v45 = vadd.f32 %v8441_v43, %v9525_v29  ;;  %v1049_v26 = vadd.f32 %v9526_v47, %v841_v7  ;;  %v661_v19 = vadd.f32 %v9528_v3, %v470_v24  ;;  %v9532_v43 = vld [vmem:[#allocation112_spill] sm:$0xff]  ;;  %v9542_v24 = vld [vmem:[#allocation111_spill] sm:$0xff]  ;;  %v9544_v17 = vld [vmem:[#allocation173_spill] sm:$0xff] }
 0x476   : > { %v5495_v63 = vpop.eup %5494  ;;  %4658 = vst [vmem:[%s8435_s8 + $0x40] sm:$0xff] %v4642_v6  ;;  %v4627_v52 = vmul.f32 %v5493_v18, %v1396_v51  ;;  %v849_v30 = vadd.f32 %v9527_v46, %v654_v32  ;;  %v1410_v62 = vadd.f32 %v9529_v44, %v1231_v50  ;;  %v481_v33 = vadd.f32 %v9530_v21, %v9425_v2  ;;  %v9533_v51 = vld [vmem:[#allocation110_spill] sm:$0xff]  ;;  %v9543_v50 = vld [vmem:[#allocation116_spill] sm:$0xff] }
 0x477   : > { %v4583_v16 = vadd.f32 1.0, %v5495_v63  ;;  %v1238_v36 = vadd.f32 %v9531_v25, %v1049_v26  ;;  %v857_v31 = vadd.f32 %v9532_v43, %v661_v19  ;;  %v4490_v23 = vadd.f32 %v8406_v53, %v4281_v45  ;;  %v9537_v63 = vld [vmem:[#allocation11_spill] sm:$0xff]  ;;  %v9547_v46 = vld [vmem:[#allocation12_spill] sm:$0xff] }
 0x478   : > { %v4643_v61 = vadd.f32 %v4627_v52, %v4476_v10  ;;  %v1058_v60 = vadd.f32 %v9533_v51, %v849_v30  ;;  %v4288_v6 = vadd.f32 %v8460_v14, %v9534_v57  ;;  %v668_v2 = vadd.f32 %v9535_v1, %v481_v33  ;;  %v9538_v10 = vld [vmem:[#allocation113_spill] sm:$0xff]  ;;  %v9539_v53 = vld [vmem:[#allocation115_spill] sm:$0xff] }
 0x479   : > { %v5497_v35 = vpop.eup %5496  ;;  %5506 = vrcp.f32 %v4583_v16  ;;  %v1417_v13 = vadd.f32 %v9536_v9, %v1238_v36  ;;  %v1067_v52 = vadd.f32 %v9538_v10, %v857_v31  ;;  %v4295_v7 = vadd.f32 %v8476_v39, %v9540_v56  ;;  %v9541_v16 = vld [vmem:[#allocation29_spill] sm:$0xff] }
 0x47a   : > { %v5499_v54 = vpop.eup %5498  ;;  %4659 = vst [vmem:[%s8435_s8 + $0x48] sm:$0xff] %v4643_v61  ;;  %v4628_v37 = vmul.f32 %v5497_v35, %v1403_v38  ;;  %v1245_v42 = vadd.f32 %v9537_v63, %v1058_v60  ;;  %v865_v11 = vadd.f32 %v9539_v53, %v668_v2  ;;  %v4497_v55 = vadd.f32 %v8426_v58, %v4288_v6  ;;  %v9548_v30 = vld [vmem:[#allocation165_spill] sm:$0xff] }
 0x47b   : > { %v4584_v48 = vadd.f32 1.0, %v5499_v54  ;;  %v1252_v4 = vadd.f32 %v9542_v24, %v1067_v52  ;;  %v4504_v35 = vadd.f32 %v8443_v5, %v4295_v7  ;;  %v4302_v32 = vadd.f32 %v8492_v20, %v9544_v17  ;;  %v9545_v54 = vld [vmem:[#allocation13_spill] sm:$0xff] }
 0x47c   : > { %v4644_v41 = vadd.f32 %v4628_v37, %v4483_v0  ;;  %v1424_v49 = vadd.f32 %v9541_v16, %v1245_v42  ;;  %v1076_v61 = vadd.f32 %v9543_v50, %v865_v11  ;;  %v9546_v0 = vld [vmem:[#allocation164_spill] sm:$0xff]  ;;  %v4309_v5 = vadd.f32 %v8508_v27, %v9547_v46 }
 0x47d   : > { %v5501_v28 = vpop.eup %5500  ;;  %5508 = vrcp.f32 %v4584_v48  ;;  %v1431_v39 = vadd.f32 %v9545_v54, %v1252_v4  ;;  %v4511_v47 = vadd.f32 %v8474_v8, %v4302_v32 }
 0x47e   : > { %v5503_v22 = vpop.eup %5502  ;;  %4660 = vst [vmem:[%s8435_s8 + $0x50] sm:$0xff] %v4644_v41  ;;  %v4629_v59 = vmul.f32 %v5501_v28, %v1410_v62  ;;  %v1259_v37 = vadd.f32 %v9546_v0, %v1076_v61  ;;  %v4518_v19 = vadd.f32 %v8506_v34, %v4309_v5 }
 0x47f   : > { %v4585_v18 = vadd.f32 1.0, %v5503_v22 }
 0x480   : > { %v4645_v12 = vadd.f32 %v4629_v59, %v4490_v23  ;;  %v1438_v48 = vadd.f32 %v9548_v30, %v1259_v37 }
 0x481   : > { %5510 = vrcp.f32 %v4585_v18 }
 0x482   : > { %v5505_v40 = vpop.eup %5504  ;;  %4661 = vst [vmem:[%s8435_s8 + $0x58] sm:$0xff] %v4645_v12 }
 0x483   : > { %v4630_v14 = vmul.f32 %v5505_v40, %v1417_v13 }
 0x485   : > { %v4646_v38 = vadd.f32 %v4630_v14, %v4497_v55 }
 0x486   : > { %v5507_v15 = vpop.eup %5506 }
 0x487   : > { %4662 = vst [vmem:[%s8435_s8 + $0x60] sm:$0xff] %v4646_v38  ;;  %v4631_v58 = vmul.f32 %v5507_v15, %v1424_v49 }
 0x489   : > { %v4647_v29 = vadd.f32 %v4631_v58, %v4504_v35 }
 0x48a   : > { %v5509_v45 = vpop.eup %5508 }
 0x48b   : > { %4663 = vst [vmem:[%s8435_s8 + $0x68] sm:$0xff] %v4647_v29  ;;  %v4632_v26 = vmul.f32 %v5509_v45, %v1431_v39 }
 0x48d   : > { %v4648_v3 = vadd.f32 %v4632_v26, %v4511_v47 }
 0x48e   : > { %v5511_v20 = vpop.eup %5510 }
 0x48f   : > { %4664 = vst [vmem:[%s8435_s8 + $0x70] sm:$0xff] %v4648_v3  ;;  %v4633_v44 = vmul.f32 %v5511_v20, %v1438_v48 }
 0x491   : > { %v4649_v8 = vadd.f32 %v4633_v44, %v4518_v19 }
 0x493   : > { %4665 = vst [vmem:[%s8435_s8 + $0x78] sm:$0xff] %v4649_v8 }
 0x494   : > { %5551 = shalt.err (!%p5548_p0)
}
 0x495   : > { %s5552_s27 = scalar_lea.hbm %s8605_s22, 2048  ;;  %s5556_s30 = scalar_lea.hbm %s8654_s2, 4096 }
 0x496   : > { %p5553_p1 = scmp.ne.s32.totalorder %s8605_s22, %s5552_s27  ;;  %p5557_p4 = scmp.lt.s32.totalorder %s8605_s22, %s8654_s2 }
 0x497   : > { %p5558_p7 = scmp.lt.s32.totalorder %s5556_s30, %s5552_s27 }
 0x498   : > { %p5554_p2 = pnand %p5553_p1, %p5664_p5 }
 0x499   : > { %p5559_p6 = por %p5558_p7, %p5557_p4 }
 0x49a   : > { %p5555_p3 = pneg %p5554_p2 }
 0x49c   : > { %p5560_p8 = pnand %p5559_p6, %p5555_p3 }
 0x49e   : > { %5563 = shalt.err (!%p5560_p8)
}
 0x49f   : > { %s5609_s5 = smov 128   ;;  %s5610_s6 = smov 8  }
 0x4a0   : > { %5333 = dma.vmem_to_hbm [thread:$0]  (%p5664_p5), %s8607_s16, 2048, %s8605_s22, %s8612_s13, %s5609_s5, %s5609_s5, %s5610_s6  }
 0x4a1 PF: > { %p5345_p9 = scmp.ge.s32.totalorder %s5602_s12, 2  ;;  %s4695_s7 = sand.u32 1, %s5590_s9  }
 0x4a2   : > { %p9549_p10 = scmp.ne.s32.totalorder %s8949_s20, 0  ;;  %s4696_s8 = scalar_lea.sflag [#allocation4], %s4695_s7 }
 0x4a4   : > { %p5340_p11 = pnand %p5345_p9, %p9549_p10 }
 0x4a6   : > { %p5341_p12 = pneg %p5340_p11 }
 0x4a8   : > { %5585 = dma.done.wait (%p5341_p12), %s4696_s8, 2048  }
 0x4a9   : > { %5587 = vsyncadd (%p5341_p12), %s4696_s8, 4294965248  ;;  %p13_p13 = scmp.ge.s32.totalorder %s5651_s15, 4   ;;  %s9550_s9 = smov %s5594_s10 }
 0x4aa   : > { %s9551_s10 = smov %s5598_s11  ;;  %s9552_s11 = smov %s5662_s18 }
 0x4ab   : > { %s9553_s12 = smov %s5651_s15  ;;  %15 = sbr.rel (!%p13_p13) target bundleno = 4 (0x4), region = 70 }
 0x4b0   :  { %4701 = vsyncpa [#allocation3], 1 }
 0x4b1   :  { %4703 = vsyncpa [#allocation3 + $0x1], 1 }
 0x4b2   :  { %4704 = vsyncpa [#allocation4], 1 }
 0x4b3   :  { %4706 = vsyncpa [#allocation4 + $0x1], 1 }

</bundles_post_ra>
